<compile_context>
chip_gen: v7x
topology: tpu7x:2x2x1
jax: 0.10.0
libtpu: 0.0.40
codegen_flags: <defaults>
</compile_context>

<pallas_src>
import math
import jax
import jax.numpy as jnp
from jax.experimental import pallas as pl
from jax.experimental.pallas import tpu as pltpu

LANE = 128
SUBLANE = 8


def _round_up(n, m):
    return ((n + m - 1) // m) * m


def _vmem_capacity_bytes():
    """Generation-aware VMEM capacity; conservative 64 MiB (v7x) fallback."""
    try:
        info = pltpu.get_tpu_info()
        cap = getattr(info, "vmem_capacity_bytes", None)
        if cap:
            return int(cap)
    except Exception:
        pass
    return 64 * 1024 * 1024


def _pick_t_chunk(T, b_chunk, D_max, H_pad, vmem_limit):
    """Largest t_chunk whose tiles fit an explicit VMEM byte budget."""
    # t_chunk-independent residency: bf16 single-buffered weights + f32 carries + slack.
    fixed = 2 * (D_max + H_pad) * 4 * H_pad + 2 * 4 * b_chunk * H_pad + (1 << 20)
    # Per-timestep: f32 xp_scr rows + double-buffered bf16 x tile + bf16 hseq tile.
    per_t = b_chunk * (4 * 4 * H_pad + 2 * 2 * D_max + 2 * 2 * H_pad)
    budget = int(vmem_limit * 0.8) - fixed
    tc = budget // max(per_t, 1)
    tc = max(8, min(tc, 256, _round_up(T, 8)))
    return max(8, (tc // 8) * 8)


def _pad_gates_last(w, H, H_pad):
    """Pad the trailing 4H gate axis so each gate slab occupies H_pad lanes."""
    r = w.shape[0]
    w = w.reshape(r, 4, H)
    w = jnp.pad(w, ((0, 0), (0, 0), (0, H_pad - H)))
    return w.reshape(r, 4 * H_pad)


# ----------------------------- Pallas kernels ------------------------------ #

def _make_lstm_layer_kernel(*, t_true, t_chunk, b_chunk, D, H_pad, last):
    """Per-layer kernel.

    Refs (non-last layer):
        x (t_chunk,b_chunk,D) bf16, wih (D,4Hp) bf16, whh (Hp,4Hp) bf16,
        b (1,4Hp) f32, hseq (t_chunk,b_chunk,Hp) bf16,
        h_scr/c_scr (b_chunk,Hp) f32, xp_scr (t_chunk*b_chunk,4Hp) f32
    Refs (last layer, fc fused):
        x, wih, whh, b, wfc (Hp,O) f32, bfc (1,O) f32, out (b_chunk,O) f32,
        h_scr, c_scr, xp_scr
    Gate order matches PyTorch: i, f, g, o.  Gate slabs are 128-lane aligned.
    """
    unroll = True if t_chunk <= 16 else 8
    Hp = H_pad

    def kernel(*refs):
        if last:
            (x_ref, wih_ref, whh_ref, b_ref, wfc_ref, bfc_ref,
             out_ref, h_scr, c_scr, xp_scr) = refs
        else:
            (x_ref, wih_ref, whh_ref, b_ref,
             hseq_ref, h_scr, c_scr, xp_scr) = refs

        tc = pl.program_id(1)            # serial T-chunk axis

        @pl.when(tc == 0)
        def _init():
            h_scr[...] = jnp.zeros_like(h_scr)
            c_scr[...] = jnp.zeros_like(c_scr)

        # Hoisted input projection (+ bias, broadcast once) for the whole chunk:
        # one (t_chunk*b_chunk, D) x (D, 4Hp) bf16 MXU matmul, f32 accumulation.
        xmat = x_ref[...].reshape(t_chunk * b_chunk, D)
        xp_scr[...] = (jnp.dot(xmat, wih_ref[...],
                               preferred_element_type=jnp.float32)
                       + b_ref[...])

        whh = whh_ref[...]               # bf16, resident & single-buffered

        def step(t, carry):
            h, c = carry                 # f32 carries
            row = pl.multiple_of(t * b_chunk, b_chunk)
            gates = xp_scr[pl.ds(row, b_chunk), :] + jnp.dot(
                h.astype(jnp.bfloat16), whh,
                preferred_element_type=jnp.float32)              # (b_chunk, 4Hp)
            i = jax.nn.sigmoid(gates[:, 0 * Hp:1 * Hp])          # lane-aligned slabs
            f = jax.nn.sigmoid(gates[:, 1 * Hp:2 * Hp])
            g = jnp.tanh(gates[:, 2 * Hp:3 * Hp])
            o = jax.nn.sigmoid(gates[:, 3 * Hp:4 * Hp])
            c_new = f * c + i * g
            h_new = o * jnp.tanh(c_new)
            # Mask timesteps past the true sequence length: hold state.
            valid = (tc * t_chunk + t) < t_true
            h_new = jnp.where(valid, h_new, h)
            c_new = jnp.where(valid, c_new, c)
            if not last:
                hseq_ref[t] = h_new.astype(hseq_ref.dtype)       # bf16 hseq
            return (h_new, c_new)

        h_fin, c_fin = jax.lax.fori_loop(
            0, t_chunk, step, (h_scr[...], c_scr[...]), unroll=unroll)
        h_scr[...] = h_fin
        c_scr[...] = c_fin

        if last:
            # Fused fc head: only on the final T-chunk, write (b_chunk, O).
            @pl.when(tc == pl.num_programs(1) - 1)
            def _fc():
                out_ref[...] = (jnp.dot(h_fin, wfc_ref[...],
                                        preferred_element_type=jnp.float32)
                                + bfc_ref[...])

    return kernel


# ------------------------------ JAX wrappers -------------------------------- #

def _run_lstm_layer(x_tm, w_ih, w_hh, bias, *, t_true, t_chunk, b_chunk,
                    vmem_limit, last=False, w_fc=None, b_fc=None):
    """x_tm: (T_pad, B_pad, D) time-major bf16; T_pad % t_chunk == 0,
    B_pad % b_chunk == 0.  Weights already gate-padded; w_ih/w_hh bf16."""
    T_pad, B_pad, D = x_tm.shape
    Hg4 = w_hh.shape[1]
    H_pad = Hg4 // 4
    nb = B_pad // b_chunk
    grid = (nb, T_pad // t_chunk)

    resident = dict(pipeline_mode=pl.Buffered(1))     # single-buffered weights
    in_specs = [
        pl.BlockSpec((t_chunk, b_chunk, D), lambda b, t: (t, b, 0)),  # streamed x
        pl.BlockSpec((D, Hg4), lambda b, t: (0, 0), **resident),
        pl.BlockSpec((H_pad, Hg4), lambda b, t: (0, 0), **resident),
        pl.BlockSpec((1, Hg4), lambda b, t: (0, 0), **resident),
    ]
    inputs = [x_tm, w_ih, w_hh, bias]

    if last:
        O = w_fc.shape[1]
        in_specs += [pl.BlockSpec((H_pad, O), lambda b, t: (0, 0), **resident),
                     pl.BlockSpec((1, O), lambda b, t: (0, 0), **resident)]
        inputs += [w_fc, b_fc]
        out_shape = jax.ShapeDtypeStruct((B_pad, O), jnp.float32)
        out_specs = pl.BlockSpec((b_chunk, O), lambda b, t: (b, 0))
    else:
        O = 0
        out_shape = jax.ShapeDtypeStruct((T_pad, B_pad, H_pad), jnp.bfloat16)
        out_specs = pl.BlockSpec((t_chunk, b_chunk, H_pad), lambda b, t: (t, b, 0))

    scratch_shapes = [
        pltpu.VMEM((b_chunk, H_pad), jnp.float32),            # h carry (persists)
        pltpu.VMEM((b_chunk, H_pad), jnp.float32),            # c carry (persists)
        pltpu.VMEM((t_chunk * b_chunk, Hg4), jnp.float32),    # hoisted X@W_ih chunk
    ]

    kernel = _make_lstm_layer_kernel(t_true=t_true, t_chunk=t_chunk,
                                     b_chunk=b_chunk, D=D, H_pad=H_pad, last=last)

    flops = (2 * T_pad * B_pad * (D + H_pad) * 4 * H_pad
             + (2 * B_pad * H_pad * O if last else 0))
    bytes_accessed = (x_tm.size * 2 + w_ih.size * 2 + w_hh.size * 2 + bias.size * 4
                      + (B_pad * O * 4 if last else T_pad * B_pad * H_pad * 2))
    cost = pl.CostEstimate(flops=flops,
                           transcendentals=5 * T_pad * B_pad * H_pad,
                           bytes_accessed=bytes_accessed)

    return pl.pallas_call(
        kernel,
        grid_spec=pltpu.PrefetchScalarGridSpec(
            num_scalar_prefetch=0,
            grid=grid,
            in_specs=in_specs,
            out_specs=out_specs,
            scratch_shapes=scratch_shapes),
        out_shape=out_shape,
        compiler_params=pltpu.CompilerParams(
            dimension_semantics=("parallel", "arbitrary"),  # batch ||, T serial
            vmem_limit_bytes=vmem_limit),
        cost_estimate=cost,
    )(*inputs)


def lstm_model_forward(x_btd, params, t_chunk=None):
    """Equivalent of LSTMModel.forward: x (B, T, D) -> (B, output_size)."""
    x_btd = x_btd.astype(jnp.float32)
    B, T, D_in = x_btd.shape
    layers = params["lstm_layers"]
    H = layers[0][1].shape[0]
    H_pad = _round_up(H, LANE)           # lane-aligned gate slabs
    B_pad = _round_up(B, SUBLANE)

    vmem_cap = _vmem_capacity_bytes()
    vmem_limit = int(vmem_cap * 0.6)

    # Batch split (leading "parallel" grid axis) only when halves stay
    # bf16-sublane clean; enables the v7x second TensorCore, no-op otherwise.
    b_chunk = B_pad // 2 if (B_pad % 32 == 0) else B_pad

    if t_chunk is None:
        t_chunk = _pick_t_chunk(T, b_chunk, max(D_in, H_pad), H_pad, vmem_limit)
    T_pad = _round_up(T, t_chunk)

    # batch-first -> time-major; pad T and B (padded timesteps masked in-kernel,
    # padded batch rows sliced off at the end); bf16 for MXU + HBM traffic.
    x_tm = jnp.transpose(x_btd, (1, 0, 2))
    x_tm = jnp.pad(x_tm, ((0, T_pad - T), (0, B_pad - B), (0, 0)))
    x_tm = x_tm.astype(jnp.bfloat16)

    fc_w = jnp.pad(params["fc_w"], ((0, H_pad - H), (0, 0))).astype(jnp.float32)
    fc_b = params["fc_b"].astype(jnp.float32)

    n_layers = len(layers)
    out = None
    for li, (w_ih, w_hh, bias) in enumerate(layers):
        d_in = w_ih.shape[0]
        w_ih_p = _pad_gates_last(w_ih, H, H_pad)
        if li > 0:                       # pad input rows (prev hidden) to H_pad
            w_ih_p = jnp.pad(w_ih_p, ((0, H_pad - d_in), (0, 0)))
        w_hh_p = jnp.pad(_pad_gates_last(w_hh, H, H_pad),
                         ((0, H_pad - H), (0, 0)))
        bias_p = _pad_gates_last(bias, H, H_pad).astype(jnp.float32)
        w_ih_p = w_ih_p.astype(jnp.bfloat16)
        w_hh_p = w_hh_p.astype(jnp.bfloat16)

        last = li == n_layers - 1
        if last:
            # last layer: no hseq writeback; fc head fused in-kernel.
            out = _run_lstm_layer(x_tm, w_ih_p, w_hh_p, bias_p, t_true=T,
                                  t_chunk=t_chunk, b_chunk=b_chunk,
                                  vmem_limit=vmem_limit, last=True,
                                  w_fc=fc_w, b_fc=fc_b)
        else:
            x_tm = _run_lstm_layer(x_tm, w_ih_p, w_hh_p, bias_p, t_true=T,
                                   t_chunk=t_chunk, b_chunk=b_chunk,
                                   vmem_limit=vmem_limit)
    return out[:B]


# --------------------------- parameter construction ------------------------- #

def init_params(key, input_size, hidden_size, num_layers, output_size):
    """Deterministic init mirroring PyTorch's LSTM/Linear shapes & uniform init."""
    params = {"lstm_layers": []}
    k_lstm = 1.0 / math.sqrt(hidden_size)
    for layer in range(num_layers):
        d_in = input_size if layer == 0 else hidden_size
        key, k1, k2, k3, k4 = jax.random.split(key, 5)
        # PyTorch stores (4H, d_in); we pre-transpose to (d_in, 4H). Gate order i,f,g,o.
        w_ih = jax.random.uniform(k1, (d_in, 4 * hidden_size), jnp.float32,
                                  -k_lstm, k_lstm)
        w_hh = jax.random.uniform(k2, (hidden_size, 4 * hidden_size), jnp.float32,
                                  -k_lstm, k_lstm)
        b_ih = jax.random.uniform(k3, (1, 4 * hidden_size), jnp.float32,
                                  -k_lstm, k_lstm)
        b_hh = jax.random.uniform(k4, (1, 4 * hidden_size), jnp.float32,
                                  -k_lstm, k_lstm)
        params["lstm_layers"].append((w_ih, w_hh, b_ih + b_hh))
    k_fc = 1.0 / math.sqrt(hidden_size)
    key, k1, k2 = jax.random.split(key, 3)
    params["fc_w"] = jax.random.uniform(k1, (hidden_size, output_size), jnp.float32,
                                        -k_fc, k_fc)
    params["fc_b"] = jax.random.uniform(k2, (1, output_size), jnp.float32,
                                        -k_fc, k_fc)
    return params


# ------------------------------ pure-JAX reference --------------------------- #

def reference_forward(x_btd, params):
    x_tm = jnp.transpose(x_btd, (1, 0, 2)).astype(jnp.float32)
    h_last = None
    for (w_ih, w_hh, bias) in params["lstm_layers"]:
        H = w_hh.shape[0]
        B = x_tm.shape[1]

        def step(carry, x_t):
            h, c = carry
            gates = x_t @ w_ih + h @ w_hh + bias
            i = jax.nn.sigmoid(gates[:, 0 * H:1 * H])
            f = jax.nn.sigmoid(gates[:, 1 * H:2 * H])
            g = jnp.tanh(gates[:, 2 * H:3 * H])
            o = jax.nn.sigmoid(gates[:, 3 * H:4 * H])
            c_new = f * c + i * g
            h_new = o * jnp.tanh(c_new)
            return (h_new, c_new), h_new

        init = (jnp.zeros((B, H), jnp.float32), jnp.zeros((B, H), jnp.float32))
        (h_last, _), hseq = jax.lax.scan(step, init, x_tm)
        x_tm = hseq
    return h_last @ params["fc_w"] + params["fc_b"]


# ----------------------------------- main ------------------------------------ #

if __name__ == "__main__":
    # seq=12 with t_chunk=8 exercises T-chunked pipelining, carry persistence
    # across grid steps, and in-kernel masking of padded timesteps.
    batch, seq = 2, 12
    input_size, hidden_size, num_layers, output_size = 4, 32, 2, 1

    key = jax.random.PRNGKey(0)
    key, xkey = jax.random.split(key)
    x = jax.random.normal(xkey, (batch, seq, input_size), jnp.float32)

    params = init_params(key, input_size, hidden_size, num_layers, output_size)

    fwd = jax.jit(lambda xb: lstm_model_forward(xb, params, t_chunk=8))
    out = jax.block_until_ready(fwd(x))

    ref = jax.block_until_ready(reference_forward(x, params))
    assert out.shape == (batch, output_size), out.shape
    # bf16 MXU operands (f32 accumulation/carries): loosened tolerance vs f32 ref.
    assert jnp.allclose(out, ref, atol=2e-2, rtol=2e-2), (out, ref)

    print("KERNEL_OK")
</pallas_src>

<mosaic_0001>
module attributes {stable_mosaic.version = 11 : i64} {
  func.func @kernel(%arg0: i32, %arg1: i32, %arg2: memref<8x8x4xbf16, #tpu.memory_space<vmem>>, %arg3: memref<4x512xbf16, #tpu.memory_space<vmem>>, %arg4: memref<128x512xbf16, #tpu.memory_space<vmem>>, %arg5: memref<1x512xf32, #tpu.memory_space<vmem>>, %arg6: memref<8x8x128xbf16, #tpu.memory_space<vmem>>, %arg7: memref<8x128xf32, #tpu.memory_space<vmem>>, %arg8: memref<8x128xf32, #tpu.memory_space<vmem>>, %arg9: memref<64x512xf32, #tpu.memory_space<vmem>>) attributes {dimension_semantics = [#tpu.dimension_semantics<parallel>, #tpu.dimension_semantics<arbitrary>], iteration_bounds = array<i64: 1, 2>, scalar_prefetch = 0 : i64, scratch_operands = 3 : i64, tpu.core_type = #tpu.core_type<tc>, window_params = [{transform_indices = @transform_0, window_bounds = array<i64: 8, 8, 4>}, {pipeline_mode = #tpu.pipeline_mode<synchronous>, transform_indices = @transform_1, window_bounds = array<i64: 4, 512>}, {pipeline_mode = #tpu.pipeline_mode<synchronous>, transform_indices = @transform_2, window_bounds = array<i64: 128, 512>}, {pipeline_mode = #tpu.pipeline_mode<synchronous>, transform_indices = @transform_3, window_bounds = array<i64: 1, 512>}, {transform_indices = @transform_4, window_bounds = array<i64: 8, 8, 128>}]} {
    %c0_i32 = arith.constant 0 : i32
    %0 = arith.cmpi eq, %arg1, %c0_i32 : i32
    %1 = arith.extui %0 : i1 to i32
    %c0_i32_0 = arith.constant 0 : i32
    %2 = arith.cmpi ne, %1, %c0_i32_0 : i32
    scf.if %2 {
      %cst_99 = arith.constant 0.000000e+00 : f32
      %352 = vector.broadcast %cst_99 : f32 to vector<8x128xf32>
      %c0_100 = arith.constant 0 : index
      %c0_101 = arith.constant 0 : index
      %353 = vector.load %arg7[%c0_100, %c0_101] : memref<8x128xf32, #tpu.memory_space<vmem>>, vector<8x128xf32>
      tpu.vector_store %arg7[%c0_100, %c0_101], %352 {strides = array<i32>} : memref<8x128xf32, #tpu.memory_space<vmem>>, vector<8x128xf32>,
      %cst_102 = arith.constant 0.000000e+00 : f32
      %354 = vector.broadcast %cst_102 : f32 to vector<8x128xf32>
      %c0_103 = arith.constant 0 : index
      %c0_104 = arith.constant 0 : index
      %355 = vector.load %arg8[%c0_103, %c0_104] : memref<8x128xf32, #tpu.memory_space<vmem>>, vector<8x128xf32>
      tpu.vector_store %arg8[%c0_103, %c0_104], %354 {strides = array<i32>} : memref<8x128xf32, #tpu.memory_space<vmem>>, vector<8x128xf32>,
    } else {
    }
    %c0 = arith.constant 0 : index
    %c0_1 = arith.constant 0 : index
    %c0_2 = arith.constant 0 : index
    %3 = vector.load %arg2[%c0, %c0_1, %c0_2] : memref<8x8x4xbf16, #tpu.memory_space<vmem>>, vector<8x8x4xbf16>
    %4 = vector.shape_cast %3 : vector<8x8x4xbf16> to vector<64x4xbf16>
    %c0_3 = arith.constant 0 : index
    %c0_4 = arith.constant 0 : index
    %5 = vector.load %arg3[%c0_3, %c0_4] : memref<4x512xbf16, #tpu.memory_space<vmem>>, vector<4x512xbf16>
    %cst = arith.constant dense<0.000000e+00> : vector<64x512xf32>
    %6 = tpu.matmul %4, %5, %cst {dimension_numbers = #tpu.dot_dimension_numbers<[1], [0], [0], [1], [0, 0, 1, 1], [], []>} : vector<64x4xbf16>, vector<4x512xbf16>, vector<64x512xf32> -> vector<64x512xf32>
    %c0_5 = arith.constant 0 : index
    %c0_6 = arith.constant 0 : index
    %7 = vector.load %arg5[%c0_5, %c0_6] : memref<1x512xf32, #tpu.memory_space<vmem>>, vector<1x512xf32>
    %8 = vector.broadcast %7 : vector<1x512xf32> to vector<64x512xf32>
    %9 = arith.addf %6, %8 : vector<64x512xf32>
    %c0_7 = arith.constant 0 : index
    %c0_8 = arith.constant 0 : index
    %10 = vector.load %arg9[%c0_7, %c0_8] : memref<64x512xf32, #tpu.memory_space<vmem>>, vector<64x512xf32>
    tpu.vector_store %arg9[%c0_7, %c0_8], %9 {strides = array<i32>} : memref<64x512xf32, #tpu.memory_space<vmem>>, vector<64x512xf32>,
    %c0_9 = arith.constant 0 : index
    %c0_10 = arith.constant 0 : index
    %11 = vector.load %arg4[%c0_9, %c0_10] : memref<128x512xbf16, #tpu.memory_space<vmem>>, vector<128x512xbf16>
    %c0_11 = arith.constant 0 : index
    %c0_12 = arith.constant 0 : index
    %12 = vector.load %arg7[%c0_11, %c0_12] : memref<8x128xf32, #tpu.memory_space<vmem>>, vector<8x128xf32>
    %c0_13 = arith.constant 0 : index
    %c0_14 = arith.constant 0 : index
    %13 = vector.load %arg8[%c0_13, %c0_14] : memref<8x128xf32, #tpu.memory_space<vmem>>, vector<8x128xf32>
    %c0_i32_15 = arith.constant 0 : i32
    %c8_i32 = arith.constant 8 : i32
    %14 = arith.muli %c0_i32_15, %c8_i32 : i32
    %15 = tpu.assume_multiple %14, 8 : i32
    %16 = arith.index_cast %15 : i32 to index
    %c0_16 = arith.constant 0 : index
    %17 = vector.load %arg9[%16, %c0_16] : memref<64x512xf32, #tpu.memory_space<vmem>>, vector<8x512xf32>
    %18 = arith.truncf %12 : vector<8x128xf32> to vector<8x128xbf16>
    %cst_17 = arith.constant dense<0.000000e+00> : vector<8x512xf32>
    %19 = tpu.matmul %18, %11, %cst_17 {dimension_numbers = #tpu.dot_dimension_numbers<[1], [0], [0], [1], [0, 0, 1, 1], [], []>} : vector<8x128xbf16>, vector<128x512xbf16>, vector<8x512xf32> -> vector<8x512xf32>
    %20 = arith.addf %17, %19 : vector<8x512xf32>
    %21 = vector.extract_strided_slice %20 {offsets = [0, 0], sizes = [8, 128], strides = [1, 1]} : vector<8x512xf32> to vector<8x128xf32>
    %22 = arith.negf %21 : vector<8x128xf32>
    %23 = math.exp %22 : vector<8x128xf32>
    %cst_18 = arith.constant 1.000000e+00 : f32
    %24 = vector.broadcast %cst_18 : f32 to vector<8x128xf32>
    %25 = arith.addf %24, %23 : vector<8x128xf32>
    %26 = arith.divf %24, %25 : vector<8x128xf32>
    %27 = vector.extract_strided_slice %20 {offsets = [0, 128], sizes = [8, 128], strides = [1, 1]} : vector<8x512xf32> to vector<8x128xf32>
    %28 = arith.negf %27 : vector<8x128xf32>
    %29 = math.exp %28 : vector<8x128xf32>
    %cst_19 = arith.constant 1.000000e+00 : f32
    %30 = vector.broadcast %cst_19 : f32 to vector<8x128xf32>
    %31 = arith.addf %30, %29 : vector<8x128xf32>
    %32 = arith.divf %30, %31 : vector<8x128xf32>
    %33 = vector.extract_strided_slice %20 {offsets = [0, 256], sizes = [8, 128], strides = [1, 1]} : vector<8x512xf32> to vector<8x128xf32>
    %34 = math.tanh %33 : vector<8x128xf32>
    %35 = vector.extract_strided_slice %20 {offsets = [0, 384], sizes = [8, 128], strides = [1, 1]} : vector<8x512xf32> to vector<8x128xf32>
    %36 = arith.negf %35 : vector<8x128xf32>
    %37 = math.exp %36 : vector<8x128xf32>
    %cst_20 = arith.constant 1.000000e+00 : f32
    %38 = vector.broadcast %cst_20 : f32 to vector<8x128xf32>
    %39 = arith.addf %38, %37 : vector<8x128xf32>
    %40 = arith.divf %38, %39 : vector<8x128xf32>
    %41 = arith.mulf %32, %13 : vector<8x128xf32>
    %42 = arith.mulf %26, %34 : vector<8x128xf32>
    %43 = arith.addf %41, %42 : vector<8x128xf32>
    %44 = math.tanh %43 : vector<8x128xf32>
    %45 = arith.mulf %40, %44 : vector<8x128xf32>
    %c8_i32_21 = arith.constant 8 : i32
    %46 = arith.muli %arg1, %c8_i32_21 : i32
    %47 = arith.addi %46, %c0_i32_15 : i32
    %c12_i32 = arith.constant 12 : i32
    %48 = arith.cmpi slt, %47, %c12_i32 : i32
    %49 = arith.select %48, %45, %12 : vector<8x128xf32>
    %50 = arith.select %48, %43, %13 : vector<8x128xf32>
    %51 = arith.truncf %49 : vector<8x128xf32> to vector<8x128xbf16>
    %52 = arith.index_cast %c0_i32_15 : i32 to index
    %c0_22 = arith.constant 0 : index
    %c0_23 = arith.constant 0 : index
    %53 = vector.load %arg6[%52, %c0_22, %c0_23] : memref<8x8x128xbf16, #tpu.memory_space<vmem>>, vector<1x8x128xbf16>
    %54 = vector.shape_cast %53 : vector<1x8x128xbf16> to vector<8x128xbf16>
    %55 = vector.shape_cast %51 : vector<8x128xbf16> to vector<1x8x128xbf16>
    tpu.vector_store %arg6[%52, %c0_22, %c0_23], %55 {strides = array<i32>} : memref<8x8x128xbf16, #tpu.memory_space<vmem>>, vector<1x8x128xbf16>,
    %c1_i32 = arith.constant 1 : i32
    %c8_i32_24 = arith.constant 8 : i32
    %56 = arith.muli %c1_i32, %c8_i32_24 : i32
    %57 = tpu.assume_multiple %56, 8 : i32
    %58 = arith.index_cast %57 : i32 to index
    %c0_25 = arith.constant 0 : index
    %59 = vector.load %arg9[%58, %c0_25] : memref<64x512xf32, #tpu.memory_space<vmem>>, vector<8x512xf32>
    %60 = arith.truncf %49 : vector<8x128xf32> to vector<8x128xbf16>
    %cst_26 = arith.constant dense<0.000000e+00> : vector<8x512xf32>
    %61 = tpu.matmul %60, %11, %cst_26 {dimension_numbers = #tpu.dot_dimension_numbers<[1], [0], [0], [1], [0, 0, 1, 1], [], []>} : vector<8x128xbf16>, vector<128x512xbf16>, vector<8x512xf32> -> vector<8x512xf32>
    %62 = arith.addf %59, %61 : vector<8x512xf32>
    %63 = vector.extract_strided_slice %62 {offsets = [0, 0], sizes = [8, 128], strides = [1, 1]} : vector<8x512xf32> to vector<8x128xf32>
    %64 = arith.negf %63 : vector<8x128xf32>
    %65 = math.exp %64 : vector<8x128xf32>
    %cst_27 = arith.constant 1.000000e+00 : f32
    %66 = vector.broadcast %cst_27 : f32 to vector<8x128xf32>
    %67 = arith.addf %66, %65 : vector<8x128xf32>
    %68 = arith.divf %66, %67 : vector<8x128xf32>
    %69 = vector.extract_strided_slice %62 {offsets = [0, 128], sizes = [8, 128], strides = [1, 1]} : vector<8x512xf32> to vector<8x128xf32>
    %70 = arith.negf %69 : vector<8x128xf32>
    %71 = math.exp %70 : vector<8x128xf32>
    %cst_28 = arith.constant 1.000000e+00 : f32
    %72 = vector.broadcast %cst_28 : f32 to vector<8x128xf32>
    %73 = arith.addf %72, %71 : vector<8x128xf32>
    %74 = arith.divf %72, %73 : vector<8x128xf32>
    %75 = vector.extract_strided_slice %62 {offsets = [0, 256], sizes = [8, 128], strides = [1, 1]} : vector<8x512xf32> to vector<8x128xf32>
    %76 = math.tanh %75 : vector<8x128xf32>
    %77 = vector.extract_strided_slice %62 {offsets = [0, 384], sizes = [8, 128], strides = [1, 1]} : vector<8x512xf32> to vector<8x128xf32>
    %78 = arith.negf %77 : vector<8x128xf32>
    %79 = math.exp %78 : vector<8x128xf32>
    %cst_29 = arith.constant 1.000000e+00 : f32
    %80 = vector.broadcast %cst_29 : f32 to vector<8x128xf32>
    %81 = arith.addf %80, %79 : vector<8x128xf32>
    %82 = arith.divf %80, %81 : vector<8x128xf32>
    %83 = arith.mulf %74, %50 : vector<8x128xf32>
    %84 = arith.mulf %68, %76 : vector<8x128xf32>
    %85 = arith.addf %83, %84 : vector<8x128xf32>
    %86 = math.tanh %85 : vector<8x128xf32>
    %87 = arith.mulf %82, %86 : vector<8x128xf32>
    %c8_i32_30 = arith.constant 8 : i32
    %88 = arith.muli %arg1, %c8_i32_30 : i32
    %89 = arith.addi %88, %c1_i32 : i32
    %c12_i32_31 = arith.constant 12 : i32
    %90 = arith.cmpi slt, %89, %c12_i32_31 : i32
    %91 = arith.select %90, %87, %49 : vector<8x128xf32>
    %92 = arith.select %90, %85, %50 : vector<8x128xf32>
    %93 = arith.truncf %91 : vector<8x128xf32> to vector<8x128xbf16>
    %94 = arith.index_cast %c1_i32 : i32 to index
    %c0_32 = arith.constant 0 : index
    %c0_33 = arith.constant 0 : index
    %95 = vector.load %arg6[%94, %c0_32, %c0_33] : memref<8x8x128xbf16, #tpu.memory_space<vmem>>, vector<1x8x128xbf16>
    %96 = vector.shape_cast %95 : vector<1x8x128xbf16> to vector<8x128xbf16>
    %97 = vector.shape_cast %93 : vector<8x128xbf16> to vector<1x8x128xbf16>
    tpu.vector_store %arg6[%94, %c0_32, %c0_33], %97 {strides = array<i32>} : memref<8x8x128xbf16, #tpu.memory_space<vmem>>, vector<1x8x128xbf16>,
    %c2_i32 = arith.constant 2 : i32
    %c8_i32_34 = arith.constant 8 : i32
    %98 = arith.muli %c2_i32, %c8_i32_34 : i32
    %99 = tpu.assume_multiple %98, 8 : i32
    %100 = arith.index_cast %99 : i32 to index
    %c0_35 = arith.constant 0 : index
    %101 = vector.load %arg9[%100, %c0_35] : memref<64x512xf32, #tpu.memory_space<vmem>>, vector<8x512xf32>
    %102 = arith.truncf %91 : vector<8x128xf32> to vector<8x128xbf16>
    %cst_36 = arith.constant dense<0.000000e+00> : vector<8x512xf32>
    %103 = tpu.matmul %102, %11, %cst_36 {dimension_numbers = #tpu.dot_dimension_numbers<[1], [0], [0], [1], [0, 0, 1, 1], [], []>} : vector<8x128xbf16>, vector<128x512xbf16>, vector<8x512xf32> -> vector<8x512xf32>
    %104 = arith.addf %101, %103 : vector<8x512xf32>
    %105 = vector.extract_strided_slice %104 {offsets = [0, 0], sizes = [8, 128], strides = [1, 1]} : vector<8x512xf32> to vector<8x128xf32>
    %106 = arith.negf %105 : vector<8x128xf32>
    %107 = math.exp %106 : vector<8x128xf32>
    %cst_37 = arith.constant 1.000000e+00 : f32
    %108 = vector.broadcast %cst_37 : f32 to vector<8x128xf32>
    %109 = arith.addf %108, %107 : vector<8x128xf32>
    %110 = arith.divf %108, %109 : vector<8x128xf32>
    %111 = vector.extract_strided_slice %104 {offsets = [0, 128], sizes = [8, 128], strides = [1, 1]} : vector<8x512xf32> to vector<8x128xf32>
    %112 = arith.negf %111 : vector<8x128xf32>
    %113 = math.exp %112 : vector<8x128xf32>
    %cst_38 = arith.constant 1.000000e+00 : f32
    %114 = vector.broadcast %cst_38 : f32 to vector<8x128xf32>
    %115 = arith.addf %114, %113 : vector<8x128xf32>
    %116 = arith.divf %114, %115 : vector<8x128xf32>
    %117 = vector.extract_strided_slice %104 {offsets = [0, 256], sizes = [8, 128], strides = [1, 1]} : vector<8x512xf32> to vector<8x128xf32>
    %118 = math.tanh %117 : vector<8x128xf32>
    %119 = vector.extract_strided_slice %104 {offsets = [0, 384], sizes = [8, 128], strides = [1, 1]} : vector<8x512xf32> to vector<8x128xf32>
    %120 = arith.negf %119 : vector<8x128xf32>
    %121 = math.exp %120 : vector<8x128xf32>
    %cst_39 = arith.constant 1.000000e+00 : f32
    %122 = vector.broadcast %cst_39 : f32 to vector<8x128xf32>
    %123 = arith.addf %122, %121 : vector<8x128xf32>
    %124 = arith.divf %122, %123 : vector<8x128xf32>
    %125 = arith.mulf %116, %92 : vector<8x128xf32>
    %126 = arith.mulf %110, %118 : vector<8x128xf32>
    %127 = arith.addf %125, %126 : vector<8x128xf32>
    %128 = math.tanh %127 : vector<8x128xf32>
    %129 = arith.mulf %124, %128 : vector<8x128xf32>
    %c8_i32_40 = arith.constant 8 : i32
    %130 = arith.muli %arg1, %c8_i32_40 : i32
    %131 = arith.addi %130, %c2_i32 : i32
    %c12_i32_41 = arith.constant 12 : i32
    %132 = arith.cmpi slt, %131, %c12_i32_41 : i32
    %133 = arith.select %132, %129, %91 : vector<8x128xf32>
    %134 = arith.select %132, %127, %92 : vector<8x128xf32>
    %135 = arith.truncf %133 : vector<8x128xf32> to vector<8x128xbf16>
    %136 = arith.index_cast %c2_i32 : i32 to index
    %c0_42 = arith.constant 0 : index
    %c0_43 = arith.constant 0 : index
    %137 = vector.load %arg6[%136, %c0_42, %c0_43] : memref<8x8x128xbf16, #tpu.memory_space<vmem>>, vector<1x8x128xbf16>
    %138 = vector.shape_cast %137 : vector<1x8x128xbf16> to vector<8x128xbf16>
    %139 = vector.shape_cast %135 : vector<8x128xbf16> to vector<1x8x128xbf16>
    tpu.vector_store %arg6[%136, %c0_42, %c0_43], %139 {strides = array<i32>} : memref<8x8x128xbf16, #tpu.memory_space<vmem>>, vector<1x8x128xbf16>,
    %c3_i32 = arith.constant 3 : i32
    %c8_i32_44 = arith.constant 8 : i32
    %140 = arith.muli %c3_i32, %c8_i32_44 : i32
    %141 = tpu.assume_multiple %140, 8 : i32
    %142 = arith.index_cast %141 : i32 to index
    %c0_45 = arith.constant 0 : index
    %143 = vector.load %arg9[%142, %c0_45] : memref<64x512xf32, #tpu.memory_space<vmem>>, vector<8x512xf32>
    %144 = arith.truncf %133 : vector<8x128xf32> to vector<8x128xbf16>
    %cst_46 = arith.constant dense<0.000000e+00> : vector<8x512xf32>
    %145 = tpu.matmul %144, %11, %cst_46 {dimension_numbers = #tpu.dot_dimension_numbers<[1], [0], [0], [1], [0, 0, 1, 1], [], []>} : vector<8x128xbf16>, vector<128x512xbf16>, vector<8x512xf32> -> vector<8x512xf32>
    %146 = arith.addf %143, %145 : vector<8x512xf32>
    %147 = vector.extract_strided_slice %146 {offsets = [0, 0], sizes = [8, 128], strides = [1, 1]} : vector<8x512xf32> to vector<8x128xf32>
    %148 = arith.negf %147 : vector<8x128xf32>
    %149 = math.exp %148 : vector<8x128xf32>
    %cst_47 = arith.constant 1.000000e+00 : f32
    %150 = vector.broadcast %cst_47 : f32 to vector<8x128xf32>
    %151 = arith.addf %150, %149 : vector<8x128xf32>
    %152 = arith.divf %150, %151 : vector<8x128xf32>
    %153 = vector.extract_strided_slice %146 {offsets = [0, 128], sizes = [8, 128], strides = [1, 1]} : vector<8x512xf32> to vector<8x128xf32>
    %154 = arith.negf %153 : vector<8x128xf32>
    %155 = math.exp %154 : vector<8x128xf32>
    %cst_48 = arith.constant 1.000000e+00 : f32
    %156 = vector.broadcast %cst_48 : f32 to vector<8x128xf32>
    %157 = arith.addf %156, %155 : vector<8x128xf32>
    %158 = arith.divf %156, %157 : vector<8x128xf32>
    %159 = vector.extract_strided_slice %146 {offsets = [0, 256], sizes = [8, 128], strides = [1, 1]} : vector<8x512xf32> to vector<8x128xf32>
    %160 = math.tanh %159 : vector<8x128xf32>
    %161 = vector.extract_strided_slice %146 {offsets = [0, 384], sizes = [8, 128], strides = [1, 1]} : vector<8x512xf32> to vector<8x128xf32>
    %162 = arith.negf %161 : vector<8x128xf32>
    %163 = math.exp %162 : vector<8x128xf32>
    %cst_49 = arith.constant 1.000000e+00 : f32
    %164 = vector.broadcast %cst_49 : f32 to vector<8x128xf32>
    %165 = arith.addf %164, %163 : vector<8x128xf32>
    %166 = arith.divf %164, %165 : vector<8x128xf32>
    %167 = arith.mulf %158, %134 : vector<8x128xf32>
    %168 = arith.mulf %152, %160 : vector<8x128xf32>
    %169 = arith.addf %167, %168 : vector<8x128xf32>
    %170 = math.tanh %169 : vector<8x128xf32>
    %171 = arith.mulf %166, %170 : vector<8x128xf32>
    %c8_i32_50 = arith.constant 8 : i32
    %172 = arith.muli %arg1, %c8_i32_50 : i32
    %173 = arith.addi %172, %c3_i32 : i32
    %c12_i32_51 = arith.constant 12 : i32
    %174 = arith.cmpi slt, %173, %c12_i32_51 : i32
    %175 = arith.select %174, %171, %133 : vector<8x128xf32>
    %176 = arith.select %174, %169, %134 : vector<8x128xf32>
    %177 = arith.truncf %175 : vector<8x128xf32> to vector<8x128xbf16>
    %178 = arith.index_cast %c3_i32 : i32 to index
    %c0_52 = arith.constant 0 : index
    %c0_53 = arith.constant 0 : index
    %179 = vector.load %arg6[%178, %c0_52, %c0_53] : memref<8x8x128xbf16, #tpu.memory_space<vmem>>, vector<1x8x128xbf16>
    %180 = vector.shape_cast %179 : vector<1x8x128xbf16> to vector<8x128xbf16>
    %181 = vector.shape_cast %177 : vector<8x128xbf16> to vector<1x8x128xbf16>
    tpu.vector_store %arg6[%178, %c0_52, %c0_53], %181 {strides = array<i32>} : memref<8x8x128xbf16, #tpu.memory_space<vmem>>, vector<1x8x128xbf16>,
    %c4_i32 = arith.constant 4 : i32
    %c8_i32_54 = arith.constant 8 : i32
    %182 = arith.muli %c4_i32, %c8_i32_54 : i32
    %183 = tpu.assume_multiple %182, 8 : i32
    %184 = arith.index_cast %183 : i32 to index
    %c0_55 = arith.constant 0 : index
    %185 = vector.load %arg9[%184, %c0_55] : memref<64x512xf32, #tpu.memory_space<vmem>>, vector<8x512xf32>
    %186 = arith.truncf %175 : vector<8x128xf32> to vector<8x128xbf16>
    %cst_56 = arith.constant dense<0.000000e+00> : vector<8x512xf32>
    %187 = tpu.matmul %186, %11, %cst_56 {dimension_numbers = #tpu.dot_dimension_numbers<[1], [0], [0], [1], [0, 0, 1, 1], [], []>} : vector<8x128xbf16>, vector<128x512xbf16>, vector<8x512xf32> -> vector<8x512xf32>
    %188 = arith.addf %185, %187 : vector<8x512xf32>
    %189 = vector.extract_strided_slice %188 {offsets = [0, 0], sizes = [8, 128], strides = [1, 1]} : vector<8x512xf32> to vector<8x128xf32>
    %190 = arith.negf %189 : vector<8x128xf32>
    %191 = math.exp %190 : vector<8x128xf32>
    %cst_57 = arith.constant 1.000000e+00 : f32
    %192 = vector.broadcast %cst_57 : f32 to vector<8x128xf32>
    %193 = arith.addf %192, %191 : vector<8x128xf32>
    %194 = arith.divf %192, %193 : vector<8x128xf32>
    %195 = vector.extract_strided_slice %188 {offsets = [0, 128], sizes = [8, 128], strides = [1, 1]} : vector<8x512xf32> to vector<8x128xf32>
    %196 = arith.negf %195 : vector<8x128xf32>
    %197 = math.exp %196 : vector<8x128xf32>
    %cst_58 = arith.constant 1.000000e+00 : f32
    %198 = vector.broadcast %cst_58 : f32 to vector<8x128xf32>
    %199 = arith.addf %198, %197 : vector<8x128xf32>
    %200 = arith.divf %198, %199 : vector<8x128xf32>
    %201 = vector.extract_strided_slice %188 {offsets = [0, 256], sizes = [8, 128], strides = [1, 1]} : vector<8x512xf32> to vector<8x128xf32>
    %202 = math.tanh %201 : vector<8x128xf32>
    %203 = vector.extract_strided_slice %188 {offsets = [0, 384], sizes = [8, 128], strides = [1, 1]} : vector<8x512xf32> to vector<8x128xf32>
    %204 = arith.negf %203 : vector<8x128xf32>
    %205 = math.exp %204 : vector<8x128xf32>
    %cst_59 = arith.constant 1.000000e+00 : f32
    %206 = vector.broadcast %cst_59 : f32 to vector<8x128xf32>
    %207 = arith.addf %206, %205 : vector<8x128xf32>
    %208 = arith.divf %206, %207 : vector<8x128xf32>
    %209 = arith.mulf %200, %176 : vector<8x128xf32>
    %210 = arith.mulf %194, %202 : vector<8x128xf32>
    %211 = arith.addf %209, %210 : vector<8x128xf32>
    %212 = math.tanh %211 : vector<8x128xf32>
    %213 = arith.mulf %208, %212 : vector<8x128xf32>
    %c8_i32_60 = arith.constant 8 : i32
    %214 = arith.muli %arg1, %c8_i32_60 : i32
    %215 = arith.addi %214, %c4_i32 : i32
    %c12_i32_61 = arith.constant 12 : i32
    %216 = arith.cmpi slt, %215, %c12_i32_61 : i32
    %217 = arith.select %216, %213, %175 : vector<8x128xf32>
    %218 = arith.select %216, %211, %176 : vector<8x128xf32>
    %219 = arith.truncf %217 : vector<8x128xf32> to vector<8x128xbf16>
    %220 = arith.index_cast %c4_i32 : i32 to index
    %c0_62 = arith.constant 0 : index
    %c0_63 = arith.constant 0 : index
    %221 = vector.load %arg6[%220, %c0_62, %c0_63] : memref<8x8x128xbf16, #tpu.memory_space<vmem>>, vector<1x8x128xbf16>
    %222 = vector.shape_cast %221 : vector<1x8x128xbf16> to vector<8x128xbf16>
    %223 = vector.shape_cast %219 : vector<8x128xbf16> to vector<1x8x128xbf16>
    tpu.vector_store %arg6[%220, %c0_62, %c0_63], %223 {strides = array<i32>} : memref<8x8x128xbf16, #tpu.memory_space<vmem>>, vector<1x8x128xbf16>,
    %c5_i32 = arith.constant 5 : i32
    %c8_i32_64 = arith.constant 8 : i32
    %224 = arith.muli %c5_i32, %c8_i32_64 : i32
    %225 = tpu.assume_multiple %224, 8 : i32
    %226 = arith.index_cast %225 : i32 to index
    %c0_65 = arith.constant 0 : index
    %227 = vector.load %arg9[%226, %c0_65] : memref<64x512xf32, #tpu.memory_space<vmem>>, vector<8x512xf32>
    %228 = arith.truncf %217 : vector<8x128xf32> to vector<8x128xbf16>
    %cst_66 = arith.constant dense<0.000000e+00> : vector<8x512xf32>
    %229 = tpu.matmul %228, %11, %cst_66 {dimension_numbers = #tpu.dot_dimension_numbers<[1], [0], [0], [1], [0, 0, 1, 1], [], []>} : vector<8x128xbf16>, vector<128x512xbf16>, vector<8x512xf32> -> vector<8x512xf32>
    %230 = arith.addf %227, %229 : vector<8x512xf32>
    %231 = vector.extract_strided_slice %230 {offsets = [0, 0], sizes = [8, 128], strides = [1, 1]} : vector<8x512xf32> to vector<8x128xf32>
    %232 = arith.negf %231 : vector<8x128xf32>
    %233 = math.exp %232 : vector<8x128xf32>
    %cst_67 = arith.constant 1.000000e+00 : f32
    %234 = vector.broadcast %cst_67 : f32 to vector<8x128xf32>
    %235 = arith.addf %234, %233 : vector<8x128xf32>
    %236 = arith.divf %234, %235 : vector<8x128xf32>
    %237 = vector.extract_strided_slice %230 {offsets = [0, 128], sizes = [8, 128], strides = [1, 1]} : vector<8x512xf32> to vector<8x128xf32>
    %238 = arith.negf %237 : vector<8x128xf32>
    %239 = math.exp %238 : vector<8x128xf32>
    %cst_68 = arith.constant 1.000000e+00 : f32
    %240 = vector.broadcast %cst_68 : f32 to vector<8x128xf32>
    %241 = arith.addf %240, %239 : vector<8x128xf32>
    %242 = arith.divf %240, %241 : vector<8x128xf32>
    %243 = vector.extract_strided_slice %230 {offsets = [0, 256], sizes = [8, 128], strides = [1, 1]} : vector<8x512xf32> to vector<8x128xf32>
    %244 = math.tanh %243 : vector<8x128xf32>
    %245 = vector.extract_strided_slice %230 {offsets = [0, 384], sizes = [8, 128], strides = [1, 1]} : vector<8x512xf32> to vector<8x128xf32>
    %246 = arith.negf %245 : vector<8x128xf32>
    %247 = math.exp %246 : vector<8x128xf32>
    %cst_69 = arith.constant 1.000000e+00 : f32
    %248 = vector.broadcast %cst_69 : f32 to vector<8x128xf32>
    %249 = arith.addf %248, %247 : vector<8x128xf32>
    %250 = arith.divf %248, %249 : vector<8x128xf32>
    %251 = arith.mulf %242, %218 : vector<8x128xf32>
    %252 = arith.mulf %236, %244 : vector<8x128xf32>
    %253 = arith.addf %251, %252 : vector<8x128xf32>
    %254 = math.tanh %253 : vector<8x128xf32>
    %255 = arith.mulf %250, %254 : vector<8x128xf32>
    %c8_i32_70 = arith.constant 8 : i32
    %256 = arith.muli %arg1, %c8_i32_70 : i32
    %257 = arith.addi %256, %c5_i32 : i32
    %c12_i32_71 = arith.constant 12 : i32
    %258 = arith.cmpi slt, %257, %c12_i32_71 : i32
    %259 = arith.select %258, %255, %217 : vector<8x128xf32>
    %260 = arith.select %258, %253, %218 : vector<8x128xf32>
    %261 = arith.truncf %259 : vector<8x128xf32> to vector<8x128xbf16>
    %262 = arith.index_cast %c5_i32 : i32 to index
    %c0_72 = arith.constant 0 : index
    %c0_73 = arith.constant 0 : index
    %263 = vector.load %arg6[%262, %c0_72, %c0_73] : memref<8x8x128xbf16, #tpu.memory_space<vmem>>, vector<1x8x128xbf16>
    %264 = vector.shape_cast %263 : vector<1x8x128xbf16> to vector<8x128xbf16>
    %265 = vector.shape_cast %261 : vector<8x128xbf16> to vector<1x8x128xbf16>
    tpu.vector_store %arg6[%262, %c0_72, %c0_73], %265 {strides = array<i32>} : memref<8x8x128xbf16, #tpu.memory_space<vmem>>, vector<1x8x128xbf16>,
    %c6_i32 = arith.constant 6 : i32
    %c8_i32_74 = arith.constant 8 : i32
    %266 = arith.muli %c6_i32, %c8_i32_74 : i32
    %267 = tpu.assume_multiple %266, 8 : i32
    %268 = arith.index_cast %267 : i32 to index
    %c0_75 = arith.constant 0 : index
    %269 = vector.load %arg9[%268, %c0_75] : memref<64x512xf32, #tpu.memory_space<vmem>>, vector<8x512xf32>
    %270 = arith.truncf %259 : vector<8x128xf32> to vector<8x128xbf16>
    %cst_76 = arith.constant dense<0.000000e+00> : vector<8x512xf32>
    %271 = tpu.matmul %270, %11, %cst_76 {dimension_numbers = #tpu.dot_dimension_numbers<[1], [0], [0], [1], [0, 0, 1, 1], [], []>} : vector<8x128xbf16>, vector<128x512xbf16>, vector<8x512xf32> -> vector<8x512xf32>
    %272 = arith.addf %269, %271 : vector<8x512xf32>
    %273 = vector.extract_strided_slice %272 {offsets = [0, 0], sizes = [8, 128], strides = [1, 1]} : vector<8x512xf32> to vector<8x128xf32>
    %274 = arith.negf %273 : vector<8x128xf32>
    %275 = math.exp %274 : vector<8x128xf32>
    %cst_77 = arith.constant 1.000000e+00 : f32
    %276 = vector.broadcast %cst_77 : f32 to vector<8x128xf32>
    %277 = arith.addf %276, %275 : vector<8x128xf32>
    %278 = arith.divf %276, %277 : vector<8x128xf32>
    %279 = vector.extract_strided_slice %272 {offsets = [0, 128], sizes = [8, 128], strides = [1, 1]} : vector<8x512xf32> to vector<8x128xf32>
    %280 = arith.negf %279 : vector<8x128xf32>
    %281 = math.exp %280 : vector<8x128xf32>
    %cst_78 = arith.constant 1.000000e+00 : f32
    %282 = vector.broadcast %cst_78 : f32 to vector<8x128xf32>
    %283 = arith.addf %282, %281 : vector<8x128xf32>
    %284 = arith.divf %282, %283 : vector<8x128xf32>
    %285 = vector.extract_strided_slice %272 {offsets = [0, 256], sizes = [8, 128], strides = [1, 1]} : vector<8x512xf32> to vector<8x128xf32>
    %286 = math.tanh %285 : vector<8x128xf32>
    %287 = vector.extract_strided_slice %272 {offsets = [0, 384], sizes = [8, 128], strides = [1, 1]} : vector<8x512xf32> to vector<8x128xf32>
    %288 = arith.negf %287 : vector<8x128xf32>
    %289 = math.exp %288 : vector<8x128xf32>
    %cst_79 = arith.constant 1.000000e+00 : f32
    %290 = vector.broadcast %cst_79 : f32 to vector<8x128xf32>
    %291 = arith.addf %290, %289 : vector<8x128xf32>
    %292 = arith.divf %290, %291 : vector<8x128xf32>
    %293 = arith.mulf %284, %260 : vector<8x128xf32>
    %294 = arith.mulf %278, %286 : vector<8x128xf32>
    %295 = arith.addf %293, %294 : vector<8x128xf32>
    %296 = math.tanh %295 : vector<8x128xf32>
    %297 = arith.mulf %292, %296 : vector<8x128xf32>
    %c8_i32_80 = arith.constant 8 : i32
    %298 = arith.muli %arg1, %c8_i32_80 : i32
    %299 = arith.addi %298, %c6_i32 : i32
    %c12_i32_81 = arith.constant 12 : i32
    %300 = arith.cmpi slt, %299, %c12_i32_81 : i32
    %301 = arith.select %300, %297, %259 : vector<8x128xf32>
    %302 = arith.select %300, %295, %260 : vector<8x128xf32>
    %303 = arith.truncf %301 : vector<8x128xf32> to vector<8x128xbf16>
    %304 = arith.index_cast %c6_i32 : i32 to index
    %c0_82 = arith.constant 0 : index
    %c0_83 = arith.constant 0 : index
    %305 = vector.load %arg6[%304, %c0_82, %c0_83] : memref<8x8x128xbf16, #tpu.memory_space<vmem>>, vector<1x8x128xbf16>
    %306 = vector.shape_cast %305 : vector<1x8x128xbf16> to vector<8x128xbf16>
    %307 = vector.shape_cast %303 : vector<8x128xbf16> to vector<1x8x128xbf16>
    tpu.vector_store %arg6[%304, %c0_82, %c0_83], %307 {strides = array<i32>} : memref<8x8x128xbf16, #tpu.memory_space<vmem>>, vector<1x8x128xbf16>,
    %c7_i32 = arith.constant 7 : i32
    %c8_i32_84 = arith.constant 8 : i32
    %308 = arith.muli %c7_i32, %c8_i32_84 : i32
    %309 = tpu.assume_multiple %308, 8 : i32
    %310 = arith.index_cast %309 : i32 to index
    %c0_85 = arith.constant 0 : index
    %311 = vector.load %arg9[%310, %c0_85] : memref<64x512xf32, #tpu.memory_space<vmem>>, vector<8x512xf32>
    %312 = arith.truncf %301 : vector<8x128xf32> to vector<8x128xbf16>
    %cst_86 = arith.constant dense<0.000000e+00> : vector<8x512xf32>
    %313 = tpu.matmul %312, %11, %cst_86 {dimension_numbers = #tpu.dot_dimension_numbers<[1], [0], [0], [1], [0, 0, 1, 1], [], []>} : vector<8x128xbf16>, vector<128x512xbf16>, vector<8x512xf32> -> vector<8x512xf32>
    %314 = arith.addf %311, %313 : vector<8x512xf32>
    %315 = vector.extract_strided_slice %314 {offsets = [0, 0], sizes = [8, 128], strides = [1, 1]} : vector<8x512xf32> to vector<8x128xf32>
    %316 = arith.negf %315 : vector<8x128xf32>
    %317 = math.exp %316 : vector<8x128xf32>
    %cst_87 = arith.constant 1.000000e+00 : f32
    %318 = vector.broadcast %cst_87 : f32 to vector<8x128xf32>
    %319 = arith.addf %318, %317 : vector<8x128xf32>
    %320 = arith.divf %318, %319 : vector<8x128xf32>
    %321 = vector.extract_strided_slice %314 {offsets = [0, 128], sizes = [8, 128], strides = [1, 1]} : vector<8x512xf32> to vector<8x128xf32>
    %322 = arith.negf %321 : vector<8x128xf32>
    %323 = math.exp %322 : vector<8x128xf32>
    %cst_88 = arith.constant 1.000000e+00 : f32
    %324 = vector.broadcast %cst_88 : f32 to vector<8x128xf32>
    %325 = arith.addf %324, %323 : vector<8x128xf32>
    %326 = arith.divf %324, %325 : vector<8x128xf32>
    %327 = vector.extract_strided_slice %314 {offsets = [0, 256], sizes = [8, 128], strides = [1, 1]} : vector<8x512xf32> to vector<8x128xf32>
    %328 = math.tanh %327 : vector<8x128xf32>
    %329 = vector.extract_strided_slice %314 {offsets = [0, 384], sizes = [8, 128], strides = [1, 1]} : vector<8x512xf32> to vector<8x128xf32>
    %330 = arith.negf %329 : vector<8x128xf32>
    %331 = math.exp %330 : vector<8x128xf32>
    %cst_89 = arith.constant 1.000000e+00 : f32
    %332 = vector.broadcast %cst_89 : f32 to vector<8x128xf32>
    %333 = arith.addf %332, %331 : vector<8x128xf32>
    %334 = arith.divf %332, %333 : vector<8x128xf32>
    %335 = arith.mulf %326, %302 : vector<8x128xf32>
    %336 = arith.mulf %320, %328 : vector<8x128xf32>
    %337 = arith.addf %335, %336 : vector<8x128xf32>
    %338 = math.tanh %337 : vector<8x128xf32>
    %339 = arith.mulf %334, %338 : vector<8x128xf32>
    %c8_i32_90 = arith.constant 8 : i32
    %340 = arith.muli %arg1, %c8_i32_90 : i32
    %341 = arith.addi %340, %c7_i32 : i32
    %c12_i32_91 = arith.constant 12 : i32
    %342 = arith.cmpi slt, %341, %c12_i32_91 : i32
    %343 = arith.select %342, %339, %301 : vector<8x128xf32>
    %344 = arith.select %342, %337, %302 : vector<8x128xf32>
    %345 = arith.truncf %343 : vector<8x128xf32> to vector<8x128xbf16>
    %346 = arith.index_cast %c7_i32 : i32 to index
    %c0_92 = arith.constant 0 : index
    %c0_93 = arith.constant 0 : index
    %347 = vector.load %arg6[%346, %c0_92, %c0_93] : memref<8x8x128xbf16, #tpu.memory_space<vmem>>, vector<1x8x128xbf16>
    %348 = vector.shape_cast %347 : vector<1x8x128xbf16> to vector<8x128xbf16>
    %349 = vector.shape_cast %345 : vector<8x128xbf16> to vector<1x8x128xbf16>
    tpu.vector_store %arg6[%346, %c0_92, %c0_93], %349 {strides = array<i32>} : memref<8x8x128xbf16, #tpu.memory_space<vmem>>, vector<1x8x128xbf16>,
    %c8_i32_94 = arith.constant 8 : i32
    %c0_95 = arith.constant 0 : index
    %c0_96 = arith.constant 0 : index
    %350 = vector.load %arg7[%c0_95, %c0_96] : memref<8x128xf32, #tpu.memory_space<vmem>>, vector<8x128xf32>
    tpu.vector_store %arg7[%c0_95, %c0_96], %343 {strides = array<i32>} : memref<8x128xf32, #tpu.memory_space<vmem>>, vector<8x128xf32>,
    %c0_97 = arith.constant 0 : index
    %c0_98 = arith.constant 0 : index
    %351 = vector.load %arg8[%c0_97, %c0_98] : memref<8x128xf32, #tpu.memory_space<vmem>>, vector<8x128xf32>
    tpu.vector_store %arg8[%c0_97, %c0_98], %344 {strides = array<i32>} : memref<8x128xf32, #tpu.memory_space<vmem>>, vector<8x128xf32>,
    return
  }
  func.func @transform_0(%arg0: i32, %arg1: i32) -> (i32, i32, i32) {
    %c0_i32 = arith.constant 0 : i32
    %c0_i32_0 = arith.constant 0 : i32
    return %arg1, %arg0, %c0_i32 : i32, i32, i32
  }
  func.func @transform_1(%arg0: i32, %arg1: i32) -> (i32, i32) {
    %c0_i32 = arith.constant 0 : i32
    %c0_i32_0 = arith.constant 0 : i32
    %c0_i32_1 = arith.constant 0 : i32
    return %c0_i32, %c0_i32_0 : i32, i32
  }
  func.func @transform_2(%arg0: i32, %arg1: i32) -> (i32, i32) {
    %c0_i32 = arith.constant 0 : i32
    %c0_i32_0 = arith.constant 0 : i32
    %c0_i32_1 = arith.constant 0 : i32
    return %c0_i32, %c0_i32_0 : i32, i32
  }
  func.func @transform_3(%arg0: i32, %arg1: i32) -> (i32, i32) {
    %c0_i32 = arith.constant 0 : i32
    %c0_i32_0 = arith.constant 0 : i32
    %c0_i32_1 = arith.constant 0 : i32
    return %c0_i32, %c0_i32_0 : i32, i32
  }
  func.func @transform_4(%arg0: i32, %arg1: i32) -> (i32, i32, i32) {
    %c0_i32 = arith.constant 0 : i32
    %c0_i32_0 = arith.constant 0 : i32
    return %arg1, %arg0, %c0_i32 : i32, i32, i32
  }
}

module attributes {stable_mosaic.version = 11 : i64} {
  func.func @kernel(%arg0: i32, %arg1: i32, %arg2: memref<8x8x128xbf16, #tpu.memory_space<vmem>>, %arg3: memref<128x512xbf16, #tpu.memory_space<vmem>>, %arg4: memref<128x512xbf16, #tpu.memory_space<vmem>>, %arg5: memref<1x512xf32, #tpu.memory_space<vmem>>, %arg6: memref<128x1xf32, #tpu.memory_space<vmem>>, %arg7: memref<1x1xf32, #tpu.memory_space<vmem>>, %arg8: memref<8x1xf32, #tpu.memory_space<vmem>>, %arg9: memref<8x128xf32, #tpu.memory_space<vmem>>, %arg10: memref<8x128xf32, #tpu.memory_space<vmem>>, %arg11: memref<64x512xf32, #tpu.memory_space<vmem>>) attributes {dimension_semantics = [#tpu.dimension_semantics<parallel>, #tpu.dimension_semantics<arbitrary>], iteration_bounds = array<i64: 1, 2>, scalar_prefetch = 0 : i64, scratch_operands = 3 : i64, tpu.core_type = #tpu.core_type<tc>, window_params = [{transform_indices = @transform_0, window_bounds = array<i64: 8, 8, 128>}, {pipeline_mode = #tpu.pipeline_mode<synchronous>, transform_indices = @transform_1, window_bounds = array<i64: 128, 512>}, {pipeline_mode = #tpu.pipeline_mode<synchronous>, transform_indices = @transform_2, window_bounds = array<i64: 128, 512>}, {pipeline_mode = #tpu.pipeline_mode<synchronous>, transform_indices = @transform_3, window_bounds = array<i64: 1, 512>}, {pipeline_mode = #tpu.pipeline_mode<synchronous>, transform_indices = @transform_4, window_bounds = array<i64: 128, 1>}, {pipeline_mode = #tpu.pipeline_mode<synchronous>, transform_indices = @transform_5, window_bounds = array<i64: 1, 1>}, {transform_indices = @transform_6, window_bounds = array<i64: 8, 1>}]} {
    %c0_i32 = arith.constant 0 : i32
    %0 = arith.cmpi eq, %arg1, %c0_i32 : i32
    %1 = arith.extui %0 : i1 to i32
    %c0_i32_0 = arith.constant 0 : i32
    %2 = arith.cmpi ne, %1, %c0_i32_0 : i32
    scf.if %2 {
      %cst_85 = arith.constant 0.000000e+00 : f32
      %315 = vector.broadcast %cst_85 : f32 to vector<8x128xf32>
      %c0_86 = arith.constant 0 : index
      %c0_87 = arith.constant 0 : index
      %316 = vector.load %arg9[%c0_86, %c0_87] : memref<8x128xf32, #tpu.memory_space<vmem>>, vector<8x128xf32>
      tpu.vector_store %arg9[%c0_86, %c0_87], %315 {strides = array<i32>} : memref<8x128xf32, #tpu.memory_space<vmem>>, vector<8x128xf32>,
      %cst_88 = arith.constant 0.000000e+00 : f32
      %317 = vector.broadcast %cst_88 : f32 to vector<8x128xf32>
      %c0_89 = arith.constant 0 : index
      %c0_90 = arith.constant 0 : index
      %318 = vector.load %arg10[%c0_89, %c0_90] : memref<8x128xf32, #tpu.memory_space<vmem>>, vector<8x128xf32>
      tpu.vector_store %arg10[%c0_89, %c0_90], %317 {strides = array<i32>} : memref<8x128xf32, #tpu.memory_space<vmem>>, vector<8x128xf32>,
    } else {
    }
    %c0 = arith.constant 0 : index
    %c0_1 = arith.constant 0 : index
    %c0_2 = arith.constant 0 : index
    %3 = vector.load %arg2[%c0, %c0_1, %c0_2] : memref<8x8x128xbf16, #tpu.memory_space<vmem>>, vector<8x8x128xbf16>
    %4 = vector.shape_cast %3 : vector<8x8x128xbf16> to vector<64x128xbf16>
    %c0_3 = arith.constant 0 : index
    %c0_4 = arith.constant 0 : index
    %5 = vector.load %arg3[%c0_3, %c0_4] : memref<128x512xbf16, #tpu.memory_space<vmem>>, vector<128x512xbf16>
    %cst = arith.constant dense<0.000000e+00> : vector<64x512xf32>
    %6 = tpu.matmul %4, %5, %cst {dimension_numbers = #tpu.dot_dimension_numbers<[1], [0], [0], [1], [0, 0, 1, 1], [], []>} : vector<64x128xbf16>, vector<128x512xbf16>, vector<64x512xf32> -> vector<64x512xf32>
    %c0_5 = arith.constant 0 : index
    %c0_6 = arith.constant 0 : index
    %7 = vector.load %arg5[%c0_5, %c0_6] : memref<1x512xf32, #tpu.memory_space<vmem>>, vector<1x512xf32>
    %8 = vector.broadcast %7 : vector<1x512xf32> to vector<64x512xf32>
    %9 = arith.addf %6, %8 : vector<64x512xf32>
    %c0_7 = arith.constant 0 : index
    %c0_8 = arith.constant 0 : index
    %10 = vector.load %arg11[%c0_7, %c0_8] : memref<64x512xf32, #tpu.memory_space<vmem>>, vector<64x512xf32>
    tpu.vector_store %arg11[%c0_7, %c0_8], %9 {strides = array<i32>} : memref<64x512xf32, #tpu.memory_space<vmem>>, vector<64x512xf32>,
    %c0_9 = arith.constant 0 : index
    %c0_10 = arith.constant 0 : index
    %11 = vector.load %arg4[%c0_9, %c0_10] : memref<128x512xbf16, #tpu.memory_space<vmem>>, vector<128x512xbf16>
    %c0_11 = arith.constant 0 : index
    %c0_12 = arith.constant 0 : index
    %12 = vector.load %arg9[%c0_11, %c0_12] : memref<8x128xf32, #tpu.memory_space<vmem>>, vector<8x128xf32>
    %c0_13 = arith.constant 0 : index
    %c0_14 = arith.constant 0 : index
    %13 = vector.load %arg10[%c0_13, %c0_14] : memref<8x128xf32, #tpu.memory_space<vmem>>, vector<8x128xf32>
    %c0_i32_15 = arith.constant 0 : i32
    %c8_i32 = arith.constant 8 : i32
    %14 = arith.muli %c0_i32_15, %c8_i32 : i32
    %15 = tpu.assume_multiple %14, 8 : i32
    %16 = arith.index_cast %15 : i32 to index
    %c0_16 = arith.constant 0 : index
    %17 = vector.load %arg11[%16, %c0_16] : memref<64x512xf32, #tpu.memory_space<vmem>>, vector<8x512xf32>
    %18 = arith.truncf %12 : vector<8x128xf32> to vector<8x128xbf16>
    %cst_17 = arith.constant dense<0.000000e+00> : vector<8x512xf32>
    %19 = tpu.matmul %18, %11, %cst_17 {dimension_numbers = #tpu.dot_dimension_numbers<[1], [0], [0], [1], [0, 0, 1, 1], [], []>} : vector<8x128xbf16>, vector<128x512xbf16>, vector<8x512xf32> -> vector<8x512xf32>
    %20 = arith.addf %17, %19 : vector<8x512xf32>
    %21 = vector.extract_strided_slice %20 {offsets = [0, 0], sizes = [8, 128], strides = [1, 1]} : vector<8x512xf32> to vector<8x128xf32>
    %22 = arith.negf %21 : vector<8x128xf32>
    %23 = math.exp %22 : vector<8x128xf32>
    %cst_18 = arith.constant 1.000000e+00 : f32
    %24 = vector.broadcast %cst_18 : f32 to vector<8x128xf32>
    %25 = arith.addf %24, %23 : vector<8x128xf32>
    %26 = arith.divf %24, %25 : vector<8x128xf32>
    %27 = vector.extract_strided_slice %20 {offsets = [0, 128], sizes = [8, 128], strides = [1, 1]} : vector<8x512xf32> to vector<8x128xf32>
    %28 = arith.negf %27 : vector<8x128xf32>
    %29 = math.exp %28 : vector<8x128xf32>
    %cst_19 = arith.constant 1.000000e+00 : f32
    %30 = vector.broadcast %cst_19 : f32 to vector<8x128xf32>
    %31 = arith.addf %30, %29 : vector<8x128xf32>
    %32 = arith.divf %30, %31 : vector<8x128xf32>
    %33 = vector.extract_strided_slice %20 {offsets = [0, 256], sizes = [8, 128], strides = [1, 1]} : vector<8x512xf32> to vector<8x128xf32>
    %34 = math.tanh %33 : vector<8x128xf32>
    %35 = vector.extract_strided_slice %20 {offsets = [0, 384], sizes = [8, 128], strides = [1, 1]} : vector<8x512xf32> to vector<8x128xf32>
    %36 = arith.negf %35 : vector<8x128xf32>
    %37 = math.exp %36 : vector<8x128xf32>
    %cst_20 = arith.constant 1.000000e+00 : f32
    %38 = vector.broadcast %cst_20 : f32 to vector<8x128xf32>
    %39 = arith.addf %38, %37 : vector<8x128xf32>
    %40 = arith.divf %38, %39 : vector<8x128xf32>
    %41 = arith.mulf %32, %13 : vector<8x128xf32>
    %42 = arith.mulf %26, %34 : vector<8x128xf32>
    %43 = arith.addf %41, %42 : vector<8x128xf32>
    %44 = math.tanh %43 : vector<8x128xf32>
    %45 = arith.mulf %40, %44 : vector<8x128xf32>
    %c8_i32_21 = arith.constant 8 : i32
    %46 = arith.muli %arg1, %c8_i32_21 : i32
    %47 = arith.addi %46, %c0_i32_15 : i32
    %c12_i32 = arith.constant 12 : i32
    %48 = arith.cmpi slt, %47, %c12_i32 : i32
    %49 = arith.select %48, %45, %12 : vector<8x128xf32>
    %50 = arith.select %48, %43, %13 : vector<8x128xf32>
    %c1_i32 = arith.constant 1 : i32
    %c8_i32_22 = arith.constant 8 : i32
    %51 = arith.muli %c1_i32, %c8_i32_22 : i32
    %52 = tpu.assume_multiple %51, 8 : i32
    %53 = arith.index_cast %52 : i32 to index
    %c0_23 = arith.constant 0 : index
    %54 = vector.load %arg11[%53, %c0_23] : memref<64x512xf32, #tpu.memory_space<vmem>>, vector<8x512xf32>
    %55 = arith.truncf %49 : vector<8x128xf32> to vector<8x128xbf16>
    %cst_24 = arith.constant dense<0.000000e+00> : vector<8x512xf32>
    %56 = tpu.matmul %55, %11, %cst_24 {dimension_numbers = #tpu.dot_dimension_numbers<[1], [0], [0], [1], [0, 0, 1, 1], [], []>} : vector<8x128xbf16>, vector<128x512xbf16>, vector<8x512xf32> -> vector<8x512xf32>
    %57 = arith.addf %54, %56 : vector<8x512xf32>
    %58 = vector.extract_strided_slice %57 {offsets = [0, 0], sizes = [8, 128], strides = [1, 1]} : vector<8x512xf32> to vector<8x128xf32>
    %59 = arith.negf %58 : vector<8x128xf32>
    %60 = math.exp %59 : vector<8x128xf32>
    %cst_25 = arith.constant 1.000000e+00 : f32
    %61 = vector.broadcast %cst_25 : f32 to vector<8x128xf32>
    %62 = arith.addf %61, %60 : vector<8x128xf32>
    %63 = arith.divf %61, %62 : vector<8x128xf32>
    %64 = vector.extract_strided_slice %57 {offsets = [0, 128], sizes = [8, 128], strides = [1, 1]} : vector<8x512xf32> to vector<8x128xf32>
    %65 = arith.negf %64 : vector<8x128xf32>
    %66 = math.exp %65 : vector<8x128xf32>
    %cst_26 = arith.constant 1.000000e+00 : f32
    %67 = vector.broadcast %cst_26 : f32 to vector<8x128xf32>
    %68 = arith.addf %67, %66 : vector<8x128xf32>
    %69 = arith.divf %67, %68 : vector<8x128xf32>
    %70 = vector.extract_strided_slice %57 {offsets = [0, 256], sizes = [8, 128], strides = [1, 1]} : vector<8x512xf32> to vector<8x128xf32>
    %71 = math.tanh %70 : vector<8x128xf32>
    %72 = vector.extract_strided_slice %57 {offsets = [0, 384], sizes = [8, 128], strides = [1, 1]} : vector<8x512xf32> to vector<8x128xf32>
    %73 = arith.negf %72 : vector<8x128xf32>
    %74 = math.exp %73 : vector<8x128xf32>
    %cst_27 = arith.constant 1.000000e+00 : f32
    %75 = vector.broadcast %cst_27 : f32 to vector<8x128xf32>
    %76 = arith.addf %75, %74 : vector<8x128xf32>
    %77 = arith.divf %75, %76 : vector<8x128xf32>
    %78 = arith.mulf %69, %50 : vector<8x128xf32>
    %79 = arith.mulf %63, %71 : vector<8x128xf32>
    %80 = arith.addf %78, %79 : vector<8x128xf32>
    %81 = math.tanh %80 : vector<8x128xf32>
    %82 = arith.mulf %77, %81 : vector<8x128xf32>
    %c8_i32_28 = arith.constant 8 : i32
    %83 = arith.muli %arg1, %c8_i32_28 : i32
    %84 = arith.addi %83, %c1_i32 : i32
    %c12_i32_29 = arith.constant 12 : i32
    %85 = arith.cmpi slt, %84, %c12_i32_29 : i32
    %86 = arith.select %85, %82, %49 : vector<8x128xf32>
    %87 = arith.select %85, %80, %50 : vector<8x128xf32>
    %c2_i32 = arith.constant 2 : i32
    %c8_i32_30 = arith.constant 8 : i32
    %88 = arith.muli %c2_i32, %c8_i32_30 : i32
    %89 = tpu.assume_multiple %88, 8 : i32
    %90 = arith.index_cast %89 : i32 to index
    %c0_31 = arith.constant 0 : index
    %91 = vector.load %arg11[%90, %c0_31] : memref<64x512xf32, #tpu.memory_space<vmem>>, vector<8x512xf32>
    %92 = arith.truncf %86 : vector<8x128xf32> to vector<8x128xbf16>
    %cst_32 = arith.constant dense<0.000000e+00> : vector<8x512xf32>
    %93 = tpu.matmul %92, %11, %cst_32 {dimension_numbers = #tpu.dot_dimension_numbers<[1], [0], [0], [1], [0, 0, 1, 1], [], []>} : vector<8x128xbf16>, vector<128x512xbf16>, vector<8x512xf32> -> vector<8x512xf32>
    %94 = arith.addf %91, %93 : vector<8x512xf32>
    %95 = vector.extract_strided_slice %94 {offsets = [0, 0], sizes = [8, 128], strides = [1, 1]} : vector<8x512xf32> to vector<8x128xf32>
    %96 = arith.negf %95 : vector<8x128xf32>
    %97 = math.exp %96 : vector<8x128xf32>
    %cst_33 = arith.constant 1.000000e+00 : f32
    %98 = vector.broadcast %cst_33 : f32 to vector<8x128xf32>
    %99 = arith.addf %98, %97 : vector<8x128xf32>
    %100 = arith.divf %98, %99 : vector<8x128xf32>
    %101 = vector.extract_strided_slice %94 {offsets = [0, 128], sizes = [8, 128], strides = [1, 1]} : vector<8x512xf32> to vector<8x128xf32>
    %102 = arith.negf %101 : vector<8x128xf32>
    %103 = math.exp %102 : vector<8x128xf32>
    %cst_34 = arith.constant 1.000000e+00 : f32
    %104 = vector.broadcast %cst_34 : f32 to vector<8x128xf32>
    %105 = arith.addf %104, %103 : vector<8x128xf32>
    %106 = arith.divf %104, %105 : vector<8x128xf32>
    %107 = vector.extract_strided_slice %94 {offsets = [0, 256], sizes = [8, 128], strides = [1, 1]} : vector<8x512xf32> to vector<8x128xf32>
    %108 = math.tanh %107 : vector<8x128xf32>
    %109 = vector.extract_strided_slice %94 {offsets = [0, 384], sizes = [8, 128], strides = [1, 1]} : vector<8x512xf32> to vector<8x128xf32>
    %110 = arith.negf %109 : vector<8x128xf32>
    %111 = math.exp %110 : vector<8x128xf32>
    %cst_35 = arith.constant 1.000000e+00 : f32
    %112 = vector.broadcast %cst_35 : f32 to vector<8x128xf32>
    %113 = arith.addf %112, %111 : vector<8x128xf32>
    %114 = arith.divf %112, %113 : vector<8x128xf32>
    %115 = arith.mulf %106, %87 : vector<8x128xf32>
    %116 = arith.mulf %100, %108 : vector<8x128xf32>
    %117 = arith.addf %115, %116 : vector<8x128xf32>
    %118 = math.tanh %117 : vector<8x128xf32>
    %119 = arith.mulf %114, %118 : vector<8x128xf32>
    %c8_i32_36 = arith.constant 8 : i32
    %120 = arith.muli %arg1, %c8_i32_36 : i32
    %121 = arith.addi %120, %c2_i32 : i32
    %c12_i32_37 = arith.constant 12 : i32
    %122 = arith.cmpi slt, %121, %c12_i32_37 : i32
    %123 = arith.select %122, %119, %86 : vector<8x128xf32>
    %124 = arith.select %122, %117, %87 : vector<8x128xf32>
    %c3_i32 = arith.constant 3 : i32
    %c8_i32_38 = arith.constant 8 : i32
    %125 = arith.muli %c3_i32, %c8_i32_38 : i32
    %126 = tpu.assume_multiple %125, 8 : i32
    %127 = arith.index_cast %126 : i32 to index
    %c0_39 = arith.constant 0 : index
    %128 = vector.load %arg11[%127, %c0_39] : memref<64x512xf32, #tpu.memory_space<vmem>>, vector<8x512xf32>
    %129 = arith.truncf %123 : vector<8x128xf32> to vector<8x128xbf16>
    %cst_40 = arith.constant dense<0.000000e+00> : vector<8x512xf32>
    %130 = tpu.matmul %129, %11, %cst_40 {dimension_numbers = #tpu.dot_dimension_numbers<[1], [0], [0], [1], [0, 0, 1, 1], [], []>} : vector<8x128xbf16>, vector<128x512xbf16>, vector<8x512xf32> -> vector<8x512xf32>
    %131 = arith.addf %128, %130 : vector<8x512xf32>
    %132 = vector.extract_strided_slice %131 {offsets = [0, 0], sizes = [8, 128], strides = [1, 1]} : vector<8x512xf32> to vector<8x128xf32>
    %133 = arith.negf %132 : vector<8x128xf32>
    %134 = math.exp %133 : vector<8x128xf32>
    %cst_41 = arith.constant 1.000000e+00 : f32
    %135 = vector.broadcast %cst_41 : f32 to vector<8x128xf32>
    %136 = arith.addf %135, %134 : vector<8x128xf32>
    %137 = arith.divf %135, %136 : vector<8x128xf32>
    %138 = vector.extract_strided_slice %131 {offsets = [0, 128], sizes = [8, 128], strides = [1, 1]} : vector<8x512xf32> to vector<8x128xf32>
    %139 = arith.negf %138 : vector<8x128xf32>
    %140 = math.exp %139 : vector<8x128xf32>
    %cst_42 = arith.constant 1.000000e+00 : f32
    %141 = vector.broadcast %cst_42 : f32 to vector<8x128xf32>
    %142 = arith.addf %141, %140 : vector<8x128xf32>
    %143 = arith.divf %141, %142 : vector<8x128xf32>
    %144 = vector.extract_strided_slice %131 {offsets = [0, 256], sizes = [8, 128], strides = [1, 1]} : vector<8x512xf32> to vector<8x128xf32>
    %145 = math.tanh %144 : vector<8x128xf32>
    %146 = vector.extract_strided_slice %131 {offsets = [0, 384], sizes = [8, 128], strides = [1, 1]} : vector<8x512xf32> to vector<8x128xf32>
    %147 = arith.negf %146 : vector<8x128xf32>
    %148 = math.exp %147 : vector<8x128xf32>
    %cst_43 = arith.constant 1.000000e+00 : f32
    %149 = vector.broadcast %cst_43 : f32 to vector<8x128xf32>
    %150 = arith.addf %149, %148 : vector<8x128xf32>
    %151 = arith.divf %149, %150 : vector<8x128xf32>
    %152 = arith.mulf %143, %124 : vector<8x128xf32>
    %153 = arith.mulf %137, %145 : vector<8x128xf32>
    %154 = arith.addf %152, %153 : vector<8x128xf32>
    %155 = math.tanh %154 : vector<8x128xf32>
    %156 = arith.mulf %151, %155 : vector<8x128xf32>
    %c8_i32_44 = arith.constant 8 : i32
    %157 = arith.muli %arg1, %c8_i32_44 : i32
    %158 = arith.addi %157, %c3_i32 : i32
    %c12_i32_45 = arith.constant 12 : i32
    %159 = arith.cmpi slt, %158, %c12_i32_45 : i32
    %160 = arith.select %159, %156, %123 : vector<8x128xf32>
    %161 = arith.select %159, %154, %124 : vector<8x128xf32>
    %c4_i32 = arith.constant 4 : i32
    %c8_i32_46 = arith.constant 8 : i32
    %162 = arith.muli %c4_i32, %c8_i32_46 : i32
    %163 = tpu.assume_multiple %162, 8 : i32
    %164 = arith.index_cast %163 : i32 to index
    %c0_47 = arith.constant 0 : index
    %165 = vector.load %arg11[%164, %c0_47] : memref<64x512xf32, #tpu.memory_space<vmem>>, vector<8x512xf32>
    %166 = arith.truncf %160 : vector<8x128xf32> to vector<8x128xbf16>
    %cst_48 = arith.constant dense<0.000000e+00> : vector<8x512xf32>
    %167 = tpu.matmul %166, %11, %cst_48 {dimension_numbers = #tpu.dot_dimension_numbers<[1], [0], [0], [1], [0, 0, 1, 1], [], []>} : vector<8x128xbf16>, vector<128x512xbf16>, vector<8x512xf32> -> vector<8x512xf32>
    %168 = arith.addf %165, %167 : vector<8x512xf32>
    %169 = vector.extract_strided_slice %168 {offsets = [0, 0], sizes = [8, 128], strides = [1, 1]} : vector<8x512xf32> to vector<8x128xf32>
    %170 = arith.negf %169 : vector<8x128xf32>
    %171 = math.exp %170 : vector<8x128xf32>
    %cst_49 = arith.constant 1.000000e+00 : f32
    %172 = vector.broadcast %cst_49 : f32 to vector<8x128xf32>
    %173 = arith.addf %172, %171 : vector<8x128xf32>
    %174 = arith.divf %172, %173 : vector<8x128xf32>
    %175 = vector.extract_strided_slice %168 {offsets = [0, 128], sizes = [8, 128], strides = [1, 1]} : vector<8x512xf32> to vector<8x128xf32>
    %176 = arith.negf %175 : vector<8x128xf32>
    %177 = math.exp %176 : vector<8x128xf32>
    %cst_50 = arith.constant 1.000000e+00 : f32
    %178 = vector.broadcast %cst_50 : f32 to vector<8x128xf32>
    %179 = arith.addf %178, %177 : vector<8x128xf32>
    %180 = arith.divf %178, %179 : vector<8x128xf32>
    %181 = vector.extract_strided_slice %168 {offsets = [0, 256], sizes = [8, 128], strides = [1, 1]} : vector<8x512xf32> to vector<8x128xf32>
    %182 = math.tanh %181 : vector<8x128xf32>
    %183 = vector.extract_strided_slice %168 {offsets = [0, 384], sizes = [8, 128], strides = [1, 1]} : vector<8x512xf32> to vector<8x128xf32>
    %184 = arith.negf %183 : vector<8x128xf32>
    %185 = math.exp %184 : vector<8x128xf32>
    %cst_51 = arith.constant 1.000000e+00 : f32
    %186 = vector.broadcast %cst_51 : f32 to vector<8x128xf32>
    %187 = arith.addf %186, %185 : vector<8x128xf32>
    %188 = arith.divf %186, %187 : vector<8x128xf32>
    %189 = arith.mulf %180, %161 : vector<8x128xf32>
    %190 = arith.mulf %174, %182 : vector<8x128xf32>
    %191 = arith.addf %189, %190 : vector<8x128xf32>
    %192 = math.tanh %191 : vector<8x128xf32>
    %193 = arith.mulf %188, %192 : vector<8x128xf32>
    %c8_i32_52 = arith.constant 8 : i32
    %194 = arith.muli %arg1, %c8_i32_52 : i32
    %195 = arith.addi %194, %c4_i32 : i32
    %c12_i32_53 = arith.constant 12 : i32
    %196 = arith.cmpi slt, %195, %c12_i32_53 : i32
    %197 = arith.select %196, %193, %160 : vector<8x128xf32>
    %198 = arith.select %196, %191, %161 : vector<8x128xf32>
    %c5_i32 = arith.constant 5 : i32
    %c8_i32_54 = arith.constant 8 : i32
    %199 = arith.muli %c5_i32, %c8_i32_54 : i32
    %200 = tpu.assume_multiple %199, 8 : i32
    %201 = arith.index_cast %200 : i32 to index
    %c0_55 = arith.constant 0 : index
    %202 = vector.load %arg11[%201, %c0_55] : memref<64x512xf32, #tpu.memory_space<vmem>>, vector<8x512xf32>
    %203 = arith.truncf %197 : vector<8x128xf32> to vector<8x128xbf16>
    %cst_56 = arith.constant dense<0.000000e+00> : vector<8x512xf32>
    %204 = tpu.matmul %203, %11, %cst_56 {dimension_numbers = #tpu.dot_dimension_numbers<[1], [0], [0], [1], [0, 0, 1, 1], [], []>} : vector<8x128xbf16>, vector<128x512xbf16>, vector<8x512xf32> -> vector<8x512xf32>
    %205 = arith.addf %202, %204 : vector<8x512xf32>
    %206 = vector.extract_strided_slice %205 {offsets = [0, 0], sizes = [8, 128], strides = [1, 1]} : vector<8x512xf32> to vector<8x128xf32>
    %207 = arith.negf %206 : vector<8x128xf32>
    %208 = math.exp %207 : vector<8x128xf32>
    %cst_57 = arith.constant 1.000000e+00 : f32
    %209 = vector.broadcast %cst_57 : f32 to vector<8x128xf32>
    %210 = arith.addf %209, %208 : vector<8x128xf32>
    %211 = arith.divf %209, %210 : vector<8x128xf32>
    %212 = vector.extract_strided_slice %205 {offsets = [0, 128], sizes = [8, 128], strides = [1, 1]} : vector<8x512xf32> to vector<8x128xf32>
    %213 = arith.negf %212 : vector<8x128xf32>
    %214 = math.exp %213 : vector<8x128xf32>
    %cst_58 = arith.constant 1.000000e+00 : f32
    %215 = vector.broadcast %cst_58 : f32 to vector<8x128xf32>
    %216 = arith.addf %215, %214 : vector<8x128xf32>
    %217 = arith.divf %215, %216 : vector<8x128xf32>
    %218 = vector.extract_strided_slice %205 {offsets = [0, 256], sizes = [8, 128], strides = [1, 1]} : vector<8x512xf32> to vector<8x128xf32>
    %219 = math.tanh %218 : vector<8x128xf32>
    %220 = vector.extract_strided_slice %205 {offsets = [0, 384], sizes = [8, 128], strides = [1, 1]} : vector<8x512xf32> to vector<8x128xf32>
    %221 = arith.negf %220 : vector<8x128xf32>
    %222 = math.exp %221 : vector<8x128xf32>
    %cst_59 = arith.constant 1.000000e+00 : f32
    %223 = vector.broadcast %cst_59 : f32 to vector<8x128xf32>
    %224 = arith.addf %223, %222 : vector<8x128xf32>
    %225 = arith.divf %223, %224 : vector<8x128xf32>
    %226 = arith.mulf %217, %198 : vector<8x128xf32>
    %227 = arith.mulf %211, %219 : vector<8x128xf32>
    %228 = arith.addf %226, %227 : vector<8x128xf32>
    %229 = math.tanh %228 : vector<8x128xf32>
    %230 = arith.mulf %225, %229 : vector<8x128xf32>
    %c8_i32_60 = arith.constant 8 : i32
    %231 = arith.muli %arg1, %c8_i32_60 : i32
    %232 = arith.addi %231, %c5_i32 : i32
    %c12_i32_61 = arith.constant 12 : i32
    %233 = arith.cmpi slt, %232, %c12_i32_61 : i32
    %234 = arith.select %233, %230, %197 : vector<8x128xf32>
    %235 = arith.select %233, %228, %198 : vector<8x128xf32>
    %c6_i32 = arith.constant 6 : i32
    %c8_i32_62 = arith.constant 8 : i32
    %236 = arith.muli %c6_i32, %c8_i32_62 : i32
    %237 = tpu.assume_multiple %236, 8 : i32
    %238 = arith.index_cast %237 : i32 to index
    %c0_63 = arith.constant 0 : index
    %239 = vector.load %arg11[%238, %c0_63] : memref<64x512xf32, #tpu.memory_space<vmem>>, vector<8x512xf32>
    %240 = arith.truncf %234 : vector<8x128xf32> to vector<8x128xbf16>
    %cst_64 = arith.constant dense<0.000000e+00> : vector<8x512xf32>
    %241 = tpu.matmul %240, %11, %cst_64 {dimension_numbers = #tpu.dot_dimension_numbers<[1], [0], [0], [1], [0, 0, 1, 1], [], []>} : vector<8x128xbf16>, vector<128x512xbf16>, vector<8x512xf32> -> vector<8x512xf32>
    %242 = arith.addf %239, %241 : vector<8x512xf32>
    %243 = vector.extract_strided_slice %242 {offsets = [0, 0], sizes = [8, 128], strides = [1, 1]} : vector<8x512xf32> to vector<8x128xf32>
    %244 = arith.negf %243 : vector<8x128xf32>
    %245 = math.exp %244 : vector<8x128xf32>
    %cst_65 = arith.constant 1.000000e+00 : f32
    %246 = vector.broadcast %cst_65 : f32 to vector<8x128xf32>
    %247 = arith.addf %246, %245 : vector<8x128xf32>
    %248 = arith.divf %246, %247 : vector<8x128xf32>
    %249 = vector.extract_strided_slice %242 {offsets = [0, 128], sizes = [8, 128], strides = [1, 1]} : vector<8x512xf32> to vector<8x128xf32>
    %250 = arith.negf %249 : vector<8x128xf32>
    %251 = math.exp %250 : vector<8x128xf32>
    %cst_66 = arith.constant 1.000000e+00 : f32
    %252 = vector.broadcast %cst_66 : f32 to vector<8x128xf32>
    %253 = arith.addf %252, %251 : vector<8x128xf32>
    %254 = arith.divf %252, %253 : vector<8x128xf32>
    %255 = vector.extract_strided_slice %242 {offsets = [0, 256], sizes = [8, 128], strides = [1, 1]} : vector<8x512xf32> to vector<8x128xf32>
    %256 = math.tanh %255 : vector<8x128xf32>
    %257 = vector.extract_strided_slice %242 {offsets = [0, 384], sizes = [8, 128], strides = [1, 1]} : vector<8x512xf32> to vector<8x128xf32>
    %258 = arith.negf %257 : vector<8x128xf32>
    %259 = math.exp %258 : vector<8x128xf32>
    %cst_67 = arith.constant 1.000000e+00 : f32
    %260 = vector.broadcast %cst_67 : f32 to vector<8x128xf32>
    %261 = arith.addf %260, %259 : vector<8x128xf32>
    %262 = arith.divf %260, %261 : vector<8x128xf32>
    %263 = arith.mulf %254, %235 : vector<8x128xf32>
    %264 = arith.mulf %248, %256 : vector<8x128xf32>
    %265 = arith.addf %263, %264 : vector<8x128xf32>
    %266 = math.tanh %265 : vector<8x128xf32>
    %267 = arith.mulf %262, %266 : vector<8x128xf32>
    %c8_i32_68 = arith.constant 8 : i32
    %268 = arith.muli %arg1, %c8_i32_68 : i32
    %269 = arith.addi %268, %c6_i32 : i32
    %c12_i32_69 = arith.constant 12 : i32
    %270 = arith.cmpi slt, %269, %c12_i32_69 : i32
    %271 = arith.select %270, %267, %234 : vector<8x128xf32>
    %272 = arith.select %270, %265, %235 : vector<8x128xf32>
    %c7_i32 = arith.constant 7 : i32
    %c8_i32_70 = arith.constant 8 : i32
    %273 = arith.muli %c7_i32, %c8_i32_70 : i32
    %274 = tpu.assume_multiple %273, 8 : i32
    %275 = arith.index_cast %274 : i32 to index
    %c0_71 = arith.constant 0 : index
    %276 = vector.load %arg11[%275, %c0_71] : memref<64x512xf32, #tpu.memory_space<vmem>>, vector<8x512xf32>
    %277 = arith.truncf %271 : vector<8x128xf32> to vector<8x128xbf16>
    %cst_72 = arith.constant dense<0.000000e+00> : vector<8x512xf32>
    %278 = tpu.matmul %277, %11, %cst_72 {dimension_numbers = #tpu.dot_dimension_numbers<[1], [0], [0], [1], [0, 0, 1, 1], [], []>} : vector<8x128xbf16>, vector<128x512xbf16>, vector<8x512xf32> -> vector<8x512xf32>
    %279 = arith.addf %276, %278 : vector<8x512xf32>
    %280 = vector.extract_strided_slice %279 {offsets = [0, 0], sizes = [8, 128], strides = [1, 1]} : vector<8x512xf32> to vector<8x128xf32>
    %281 = arith.negf %280 : vector<8x128xf32>
    %282 = math.exp %281 : vector<8x128xf32>
    %cst_73 = arith.constant 1.000000e+00 : f32
    %283 = vector.broadcast %cst_73 : f32 to vector<8x128xf32>
    %284 = arith.addf %283, %282 : vector<8x128xf32>
    %285 = arith.divf %283, %284 : vector<8x128xf32>
    %286 = vector.extract_strided_slice %279 {offsets = [0, 128], sizes = [8, 128], strides = [1, 1]} : vector<8x512xf32> to vector<8x128xf32>
    %287 = arith.negf %286 : vector<8x128xf32>
    %288 = math.exp %287 : vector<8x128xf32>
    %cst_74 = arith.constant 1.000000e+00 : f32
    %289 = vector.broadcast %cst_74 : f32 to vector<8x128xf32>
    %290 = arith.addf %289, %288 : vector<8x128xf32>
    %291 = arith.divf %289, %290 : vector<8x128xf32>
    %292 = vector.extract_strided_slice %279 {offsets = [0, 256], sizes = [8, 128], strides = [1, 1]} : vector<8x512xf32> to vector<8x128xf32>
    %293 = math.tanh %292 : vector<8x128xf32>
    %294 = vector.extract_strided_slice %279 {offsets = [0, 384], sizes = [8, 128], strides = [1, 1]} : vector<8x512xf32> to vector<8x128xf32>
    %295 = arith.negf %294 : vector<8x128xf32>
    %296 = math.exp %295 : vector<8x128xf32>
    %cst_75 = arith.constant 1.000000e+00 : f32
    %297 = vector.broadcast %cst_75 : f32 to vector<8x128xf32>
    %298 = arith.addf %297, %296 : vector<8x128xf32>
    %299 = arith.divf %297, %298 : vector<8x128xf32>
    %300 = arith.mulf %291, %272 : vector<8x128xf32>
    %301 = arith.mulf %285, %293 : vector<8x128xf32>
    %302 = arith.addf %300, %301 : vector<8x128xf32>
    %303 = math.tanh %302 : vector<8x128xf32>
    %304 = arith.mulf %299, %303 : vector<8x128xf32>
    %c8_i32_76 = arith.constant 8 : i32
    %305 = arith.muli %arg1, %c8_i32_76 : i32
    %306 = arith.addi %305, %c7_i32 : i32
    %c12_i32_77 = arith.constant 12 : i32
    %307 = arith.cmpi slt, %306, %c12_i32_77 : i32
    %308 = arith.select %307, %304, %271 : vector<8x128xf32>
    %309 = arith.select %307, %302, %272 : vector<8x128xf32>
    %c8_i32_78 = arith.constant 8 : i32
    %c0_79 = arith.constant 0 : index
    %c0_80 = arith.constant 0 : index
    %310 = vector.load %arg9[%c0_79, %c0_80] : memref<8x128xf32, #tpu.memory_space<vmem>>, vector<8x128xf32>
    tpu.vector_store %arg9[%c0_79, %c0_80], %308 {strides = array<i32>} : memref<8x128xf32, #tpu.memory_space<vmem>>, vector<8x128xf32>,
    %c0_81 = arith.constant 0 : index
    %c0_82 = arith.constant 0 : index
    %311 = vector.load %arg10[%c0_81, %c0_82] : memref<8x128xf32, #tpu.memory_space<vmem>>, vector<8x128xf32>
    tpu.vector_store %arg10[%c0_81, %c0_82], %309 {strides = array<i32>} : memref<8x128xf32, #tpu.memory_space<vmem>>, vector<8x128xf32>,
    %c1_i32_83 = arith.constant 1 : i32
    %312 = arith.cmpi eq, %arg1, %c1_i32_83 : i32
    %313 = arith.extui %312 : i1 to i32
    %c0_i32_84 = arith.constant 0 : i32
    %314 = arith.cmpi ne, %313, %c0_i32_84 : i32
    scf.if %314 {
      %c0_85 = arith.constant 0 : index
      %c0_86 = arith.constant 0 : index
      %315 = vector.load %arg6[%c0_85, %c0_86] : memref<128x1xf32, #tpu.memory_space<vmem>>, vector<128x1xf32>
      %cst_87 = arith.constant dense<0.000000e+00> : vector<8x1xf32>
      %316 = tpu.matmul %308, %315, %cst_87 {dimension_numbers = #tpu.dot_dimension_numbers<[1], [0], [0], [1], [0, 0, 1, 1], [], []>} : vector<8x128xf32>, vector<128x1xf32>, vector<8x1xf32> -> vector<8x1xf32>
      %c0_88 = arith.constant 0 : index
      %c0_89 = arith.constant 0 : index
      %317 = vector.load %arg7[%c0_88, %c0_89] : memref<1x1xf32, #tpu.memory_space<vmem>>, vector<1x1xf32>
      %318 = vector.broadcast %317 : vector<1x1xf32> to vector<8x1xf32>
      %319 = arith.addf %316, %318 : vector<8x1xf32>
      %c0_90 = arith.constant 0 : index
      %c0_91 = arith.constant 0 : index
      %320 = vector.load %arg8[%c0_90, %c0_91] : memref<8x1xf32, #tpu.memory_space<vmem>>, vector<8x1xf32>
      tpu.vector_store %arg8[%c0_90, %c0_91], %319 {strides = array<i32>} : memref<8x1xf32, #tpu.memory_space<vmem>>, vector<8x1xf32>,
    } else {
    }
    return
  }
  func.func @transform_0(%arg0: i32, %arg1: i32) -> (i32, i32, i32) {
    %c0_i32 = arith.constant 0 : i32
    %c0_i32_0 = arith.constant 0 : i32
    return %arg1, %arg0, %c0_i32 : i32, i32, i32
  }
  func.func @transform_1(%arg0: i32, %arg1: i32) -> (i32, i32) {
    %c0_i32 = arith.constant 0 : i32
    %c0_i32_0 = arith.constant 0 : i32
    %c0_i32_1 = arith.constant 0 : i32
    return %c0_i32, %c0_i32_0 : i32, i32
  }
  func.func @transform_2(%arg0: i32, %arg1: i32) -> (i32, i32) {
    %c0_i32 = arith.constant 0 : i32
    %c0_i32_0 = arith.constant 0 : i32
    %c0_i32_1 = arith.constant 0 : i32
    return %c0_i32, %c0_i32_0 : i32, i32
  }
  func.func @transform_3(%arg0: i32, %arg1: i32) -> (i32, i32) {
    %c0_i32 = arith.constant 0 : i32
    %c0_i32_0 = arith.constant 0 : i32
    %c0_i32_1 = arith.constant 0 : i32
    return %c0_i32, %c0_i32_0 : i32, i32
  }
  func.func @transform_4(%arg0: i32, %arg1: i32) -> (i32, i32) {
    %c0_i32 = arith.constant 0 : i32
    %c0_i32_0 = arith.constant 0 : i32
    %c0_i32_1 = arith.constant 0 : i32
    return %c0_i32, %c0_i32_0 : i32, i32
  }
  func.func @transform_5(%arg0: i32, %arg1: i32) -> (i32, i32) {
    %c0_i32 = arith.constant 0 : i32
    %c0_i32_0 = arith.constant 0 : i32
    %c0_i32_1 = arith.constant 0 : i32
    return %c0_i32, %c0_i32_0 : i32, i32
  }
  func.func @transform_6(%arg0: i32, %arg1: i32) -> (i32, i32) {
    %c0_i32 = arith.constant 0 : i32
    %c0_i32_0 = arith.constant 0 : i32
    return %arg0, %c0_i32 : i32, i32
  }
}

</mosaic_0001>

<bundles_post_ra>
// kernel: _lambda_.2
= control target key start
LH: loop header
LB: loop body
LE: loop exit
PB: predicated region body
PF: predicated region fallthrough
CT: control target
= control target key end

     0   :  { %s2191_s15 = smov 0   ;;  %s2193_s16 = smov 0   ;;  %s3042_s0 = inlined_call_operand.vmem [shape: bf16[16,8,4], index: 0, kind: input, shape index: {}]   ;;  %s3043_s1 = inlined_call_operand.vmem [shape: bf16[4,512], index: 1, kind: input, shape index: {}]   ;;  %s3044_s2 = inlined_call_operand.vmem [shape: bf16[128,512], index: 2, kind: input, shape index: {}]   ;;  %s3045_s3 = inlined_call_operand.vmem [shape: f32[1,512], index: 3, kind: input, shape index: {}]   ;;  %s3046_s4 = inlined_call_operand.vmem [shape: bf16[16,8,128], index: 4, kind: output, shape index: {}]  }
   0x1   :  { %s2195_s17 = smov 0  }
   0x2 LB: > { %s23_s18 = sadd.s32 1, %s2157_s16  ;;  %p1813_p0 = scmp.ge.s32.totalorder %s2161_s17, 1  ;;  %s2161_s17 = sphi %s2195_s17, %s14_s17   ;;  %s2157_s16 = sphi %s2193_s16, %s3093_s16   ;;  %s2153_s15 = sphi %s2191_s15, %s3092_s15  }
   0x3   : > { %p24_p1 = scmp.ge.s32.totalorder %s23_s18, 2  ;;  %p182_p2 = scmp.lt.s32.totalorder %s2161_s17, 3 }
   0x5   : > { %s3095_s18 = smov (%p24_p1, %s23_s18), 0  ;;  %p183_p3 = pnand %p1813_p0, %p182_p2 }
   0x7   : > { %186 = sbr.rel (%p183_p3) target bundleno = 2159 (0x86f), region = 36 }
   0xe   : > { %s2209_s19 = sshll.u32 %s2153_s15, 3  ;;  %p1818_p5 = scmp.ne.s32.totalorder %s2153_s15, 0 }
   0xf   : > { %p215_p4 = scmp.lt.s32.totalorder %s2209_s19, 15  ;;  %v2163_v0 = vmov (!%p1818_p5), 0.0  }
  0x10   : > { %236 = sbr.rel (%p1818_p5) target bundleno = 23 (0x17), region = 40  ;;  %237 = vst [vmem:[#allocation2] sm:$0xff] (!%p1818_p5), %v2163_v0  ;;  %238 = vst [vmem:[#allocation3] sm:$0xff] (!%p1818_p5), %v2163_v0 }
  0x11   : > { %s216_s20 = scalar_select %p215_p4, %s2209_s19, 15 }
  0x13   : > { %s1815_s21 = sshll.u32 %s216_s20, 2 }
  0x14   : > { %s2216_s24 = scalar_lea.vmem %s3042_s0, %s1815_s21  ;;  %s2221_s27 = scalar_lea.vmem %s3046_s4, %s1815_s21 }
  0x17 PF: > { %v247_v1 = vld [vmem:[%s3043_s1] sm:$0xff]  ;;  %v250_v2 = vlaneseq  ;;  %v2164_v3 = vmov 1983009808   ;;  %v3047_v5 = vmov 0   ;;  %vm321_vm0 = vcmask 1041408   ;;  %v1940_v27 = vld [vmem:[%s2216_s24 + $0x8] sm:$0xff]  }
  0x18   : > { %v293_v4 = vunpack.c.l.s4 %v2164_v3  ;;  %366 = vmatprep.mubr.bf16.mxu0 %v3047_v5  ;;  %439 = vmatprep.mubr.bf16.mxu1 %v3047_v5  ;;  %v291_v8 = vcombine.high %v247_v1, %v247_v1  ;;  %v2234_v12 = vld [vmem:[%s3044_s2 + $0x4] ss:$16 sps:$4 sm:$0xff]   ;;  %v2239_v17 = vld [vmem:[%s3044_s2 + $0xc] ss:$16 sps:$4 sm:$0xff]   ;;  %v2245_v19 = vld [vmem:[%s3044_s2] ss:$16 sps:$4 sm:$0xff]  }
  0x19   : > { %v2228_v6 = vshrl.u32 %v250_v2, 7  ;;  %v1927_v18 = vld [vmem:[%s2216_s24] sm:$0xff]   ;;  %vm308_vm1 = vcmask 31744   ;;  %v2250_v20 = vld [vmem:[%s3044_s2 + $0x8] ss:$16 sps:$4 sm:$0xff]   ;;  %v1953_v36 = vld [vmem:[%s2216_s24 + $0x10] sm:$0xff]  }
  0x1a   : > { %v294_v7 = vunpack.c.0.s8 %v293_v4  ;;  %v2255_v21 = vld [vmem:[%s3044_s2 + $0x24] ss:$16 sps:$4 sm:$0xff]   ;;  %v2262_v22 = vld [vmem:[%s3044_s2 + $0x2c] ss:$16 sps:$4 sm:$0xff]   ;;  %v2271_v23 = vld [vmem:[%s3044_s2 + $0x20] ss:$16 sps:$4 sm:$0xff]  }
  0x1b   : > { %v2276_v24 = vld [vmem:[%s3044_s2 + $0x28] ss:$16 sps:$4 sm:$0xff]   ;;  %v2281_v25 = vld [vmem:[%s3044_s2 + $0x44] ss:$16 sps:$4 sm:$0xff]   ;;  %v2288_v26 = vld [vmem:[%s3044_s2 + $0x4c] ss:$16 sps:$4 sm:$0xff]  }
  0x1c   : > { %v297_v9 = vsub.s32 %v294_v7, %v2228_v6  ;;  %v2296_v28 = vld [vmem:[%s3044_s2 + $0x40] ss:$16 sps:$4 sm:$0xff]   ;;  %v2301_v29 = vld [vmem:[%s3044_s2 + $0x48] ss:$16 sps:$4 sm:$0xff]   ;;  %v2308_v30 = vld [vmem:[%s3044_s2 + $0x64] ss:$16 sps:$4 sm:$0xff]  }
  0x1d   : > { %v2315_v31 = vld [vmem:[%s3044_s2 + $0x6c] ss:$16 sps:$4 sm:$0xff]   ;;  %v2322_v32 = vld [vmem:[%s3044_s2 + $0x60] ss:$16 sps:$4 sm:$0xff]   ;;  %v2329_v33 = vld [vmem:[%s3044_s2 + $0x68] ss:$16 sps:$4 sm:$0xff]  }
  0x1e   : > { %v298_v10 = vrot.slane %v247_v1, %v297_v9  ;;  %v305_v11 = vrot.slane %v291_v8, %v297_v9  ;;  %v2336_v34 = vld [vmem:[%s3044_s2 + $0x84] ss:$16 sps:$4 sm:$0xff]   ;;  %v2341_v35 = vld [vmem:[%s3044_s2 + $0x8c] ss:$16 sps:$4 sm:$0xff]   ;;  %v2351_v37 = vld [vmem:[%s3044_s2 + $0x80] ss:$16 sps:$4 sm:$0xff]  }
  0x1f   : > { %v2356_v38 = vld [vmem:[%s3044_s2 + $0x88] ss:$16 sps:$4 sm:$0xff]   ;;  %v2363_v39 = vld [vmem:[%s3044_s2 + $0xa4] ss:$16 sps:$4 sm:$0xff]   ;;  %v2368_v40 = vld [vmem:[%s3044_s2 + $0xac] ss:$16 sps:$4 sm:$0xff]  }
  0x20   : > { %v306_v13 = vcombine.high %v298_v10, %v298_v10  ;;  %v307_v14 = vcombine.high %v305_v11, %v305_v11  ;;  %v323_v15 = vsel %vm321_vm0, %v298_v10, 0  ;;  %v329_v16 = vsel %vm321_vm0, %v305_v11, 0  ;;  %v2377_v41 = vld [vmem:[%s3044_s2 + $0xa0] ss:$16 sps:$4 sm:$0xff]   ;;  %v2382_v42 = vld [vmem:[%s3044_s2 + $0xa8] ss:$16 sps:$4 sm:$0xff]  }
  0x21   : > { %v2389_v43 = vld [vmem:[%s3044_s2 + $0xc4] ss:$16 sps:$4 sm:$0xff]   ;;  %v2394_v44 = vld [vmem:[%s3044_s2 + $0xcc] ss:$16 sps:$4 sm:$0xff]   ;;  %v2404_v46 = vld [vmem:[%s3044_s2 + $0xc0] ss:$16 sps:$4 sm:$0xff]  }
  0x22   : > { %1823 = vmatprep.subr.msk.bf16.mxu0 %vm321_vm0, %v306_v13  ;;  %1828 = vmatprep.subr.msk.bf16.mxu1 %vm321_vm0, %v307_v14  ;;  %v1966_v45 = vld [vmem:[%s2216_s24 + $0x18] sm:$0xff]   ;;  %v2416_v48 = vld [vmem:[%s3044_s2 + $0xe4] ss:$16 sps:$4 sm:$0xff]   ;;  %v2430_v50 = vld [vmem:[%s3044_s2 + $0xe0] ss:$16 sps:$4 sm:$0xff]   ;;  %v260_v54 = vsub.s32 2, %v2228_v6 }
  0x23   : > { %335 = vmatpush1.bf16.msra.mxu0 %v323_v15  ;;  %408 = vmatpush1.bf16.msra.mxu1 %v329_v16  ;;  %v2409_v47 = vld [vmem:[%s3044_s2 + $0xc8] ss:$16 sps:$4 sm:$0xff]   ;;  %v2421_v49 = vld [vmem:[%s3044_s2 + $0xec] ss:$16 sps:$4 sm:$0xff]   ;;  %v2437_v52 = vld [vmem:[#allocation2] sm:$0xff]  ;;  %v264_v55 = vsub.s32 3, %v2228_v6 }
  0x24   : > { %714 = vmatprep.subr.bf16.mxu0 %v2234_v12  ;;  %755 = vmatprep.subr.bf16.mxu1 %v2239_v17  ;;  %v2435_v51 = vld [vmem:[%s3044_s2 + $0xe8] ss:$16 sps:$4 sm:$0xff]   ;;  %v553_v53 = vpack.c.bf16 %v2437_v52, %v2437_v52  ;;  %v252_v56 = vsub.s32 0, %v2228_v6  ;;  %v248_v57 = vld [vmem:[%s3045_s3] sm:$0xf]  ;;  %v256_v58 = vsub.s32 1, %v2228_v6 }
  0x25   : > { %v2490_v59 = vrot.slane %v248_v57, %v260_v54  ;;  %v2496_v62 = vrot.slane %v248_v57, %v264_v55  ;;  %p825_p6 = scmp.lt.s32.totalorder %s2209_s19, 12  ;;  %s950_s10 = sadd.s32 1, %s2209_s19 }
  0x26   : > { %1824 = vmatmul.mubr.msk.bf16.vlgmr.msra.gmra.mrb[0].mxu0 %vm308_vm1, %v1927_v18  ;;  %1829 = vmatmul.mubr.msk.bf16.vlgmr.msra.gmra.mrb[0].mxu1 %vm308_vm1, %v1927_v18  ;;  %v253_v63 = vrot.slane %v248_v57, %v252_v56  ;;  %v257_v2 = vrot.slane %v248_v57, %v256_v58  ;;  %p951_p7 = scmp.lt.s32.totalorder %s950_s10, 12  ;;  %s1077_s12 = sadd.s32 2, %s2209_s19 }
  0x27   : > { %715 = vmatpush1.bf16.msra.mxu0 %v2245_v19  ;;  %756 = vmatpush1.bf16.msra.mxu1 %v2250_v20  ;;  %s826_s9 = scalar_select %p825_p6, 1, 0 }
  0x28   : > { %716 = vmatprep.subr.bf16.mxu0 %v2255_v21  ;;  %757 = vmatprep.subr.bf16.mxu1 %v2262_v22  ;;  %s952_s11 = scalar_select %p951_p7, 1, 0 }
  0x29   : > { %376 = vmatprep.mubr.bf16.mxu0 %v3047_v5  ;;  %449 = vmatprep.mubr.bf16.mxu1 %v3047_v5  ;;  %p1078_p8 = scmp.lt.s32.totalorder %s1077_s12, 12  ;;  %s1204_s14 = sadd.s32 3, %s2209_s19 }
  0x2a   : > { %p1205_p9 = scmp.lt.s32.totalorder %s1204_s14, 12  ;;  %s1331_s5 = sadd.s32 4, %s2209_s19 }
  0x2b   : > { %717 = vmatpush1.bf16.msra.mxu0 %v2271_v23  ;;  %758 = vmatpush1.bf16.msra.mxu1 %v2276_v24  ;;  %s1079_s13 = scalar_select %p1078_p8, 1, 0 }
  0x2c   : > { %718 = vmatprep.subr.bf16.mxu0 %v2281_v25  ;;  %759 = vmatprep.subr.bf16.mxu1 %v2288_v26  ;;  %s1206_s15 = scalar_select %p1205_p9, 1, 0 }
  0x2d   : > { %p1332_p10 = scmp.lt.s32.totalorder %s1331_s5, 12  ;;  %s1458_s23 = sadd.s32 5, %s2209_s19 }
  0x2e   : > { %1825 = vmatmul.mubr.msk.bf16.gmra.mrb[4].mxu0 %vm308_vm1, %v1940_v27  ;;  %1830 = vmatmul.mubr.msk.bf16.gmra.mrb[4].mxu1 %vm308_vm1, %v1940_v27  ;;  %p1459_p11 = scmp.lt.s32.totalorder %s1458_s23, 12  ;;  %s1585_s24 = sadd.s32 6, %s2209_s19 }
  0x2f   : > { %719 = vmatpush1.bf16.msra.mxu0 %v2296_v28  ;;  %760 = vmatpush1.bf16.msra.mxu1 %v2301_v29  ;;  %s1333_s6 = scalar_select %p1332_p10, 1, 0 }
  0x30   : > { %720 = vmatprep.subr.bf16.mxu0 %v2308_v30  ;;  %761 = vmatprep.subr.bf16.mxu1 %v2315_v31  ;;  %s1460_s25 = scalar_select %p1459_p11, 1, 0 }
  0x31   : > { %386 = vmatprep.mubr.bf16.mxu0 %v3047_v5  ;;  %459 = vmatprep.mubr.bf16.mxu1 %v3047_v5  ;;  %p1586_p12 = scmp.lt.s32.totalorder %s1585_s24, 12  ;;  %s1712_s28 = sadd.s32 7, %s2209_s19 }
  0x32   : > { %p1713_p13 = scmp.lt.s32.totalorder %s1712_s28, 12 }
  0x33   : > { %721 = vmatpush1.bf16.msra.mxu0 %v2322_v32  ;;  %762 = vmatpush1.bf16.msra.mxu1 %v2329_v33  ;;  %s1587_s26 = scalar_select %p1586_p12, 1, 0 }
  0x34   : > { %722 = vmatprep.subr.bf16.mxu0 %v2336_v34  ;;  %763 = vmatprep.subr.bf16.mxu1 %v2341_v35  ;;  %s1714_s29 = scalar_select %p1713_p13, 1, 0 }
  0x36   : > { %1826 = vmatmul.mubr.msk.bf16.gmra.mrb[8].mxu0 %vm308_vm1, %v1953_v36  ;;  %1831 = vmatmul.mubr.msk.bf16.gmra.mrb[8].mxu1 %vm308_vm1, %v1953_v36 }
  0x37   : > { %723 = vmatpush1.bf16.msra.mxu0 %v2351_v37  ;;  %764 = vmatpush1.bf16.msra.mxu1 %v2356_v38 }
  0x38   : > { %724 = vmatprep.subr.bf16.mxu0 %v2363_v39  ;;  %765 = vmatprep.subr.bf16.mxu1 %v2368_v40 }
  0x39   : > { %396 = vmatprep.mubr.bf16.mxu0 %v3047_v5  ;;  %469 = vmatprep.mubr.bf16.mxu1 %v3047_v5 }
  0x3b   : > { %725 = vmatpush1.bf16.msra.mxu0 %v2377_v41  ;;  %766 = vmatpush1.bf16.msra.mxu1 %v2382_v42 }
  0x3c   : > { %726 = vmatprep.subr.bf16.mxu0 %v2389_v43  ;;  %767 = vmatprep.subr.bf16.mxu1 %v2394_v44 }
  0x3e   : > { %1827 = vmatmul.mubr.msk.bf16.gmra.mrb[12].mxu0 %vm308_vm1, %v1966_v45  ;;  %1832 = vmatmul.mubr.msk.bf16.gmra.mrb[12].mxu1 %vm308_vm1, %v1966_v45 }
  0x3f   : > { %727 = vmatpush1.bf16.msra.mxu0 %v2404_v46  ;;  %768 = vmatpush1.bf16.msra.mxu1 %v2409_v47 }
  0x40   : > { %728 = vmatprep.subr.bf16.mxu0 %v2416_v48  ;;  %769 = vmatprep.subr.bf16.mxu1 %v2421_v49 }
  0x41   : > { %746 = vmatprep.mubr.bf16.mxu0 %v3047_v5  ;;  %787 = vmatprep.mubr.bf16.mxu1 %v3047_v5 }
  0x43   : > { %729 = vmatpush1.bf16.msra.mxu0 %v2430_v50  ;;  %770 = vmatpush1.bf16.msra.mxu1 %v2435_v51 }
  0x44   : > { %840 = vmatprep.subr.bf16.mxu0 %v2234_v12  ;;  %881 = vmatprep.subr.bf16.mxu1 %v2239_v17 }
  0x46   : > { %747 = vmatmul.mubr.bf16.vlgmr.msra.gmra.mrb[16].mxu0 %v553_v53  ;;  %788 = vmatmul.mubr.bf16.vlgmr.msra.gmra.mrb[16].mxu1 %v553_v53 }
  0x47   : > { %841 = vmatpush1.bf16.msra.mxu0 %v2245_v19  ;;  %882 = vmatpush1.bf16.msra.mxu1 %v2250_v20 }
  0x48   : > { %842 = vmatprep.subr.bf16.mxu0 %v2255_v21  ;;  %883 = vmatprep.subr.bf16.mxu1 %v2262_v22 }
  0x49   : > { %872 = vmatprep.mubr.bf16.mxu0 %v3047_v5  ;;  %913 = vmatprep.mubr.bf16.mxu1 %v3047_v5 }
  0x4b   : > { %843 = vmatpush1.bf16.msra.mxu0 %v2271_v23  ;;  %884 = vmatpush1.bf16.msra.mxu1 %v2276_v24 }
  0x4c   : > { %844 = vmatprep.subr.bf16.mxu0 %v2281_v25  ;;  %885 = vmatprep.subr.bf16.mxu1 %v2288_v26 }
  0x4f   : > { %845 = vmatpush1.bf16.msra.mxu0 %v2296_v28  ;;  %886 = vmatpush1.bf16.msra.mxu1 %v2301_v29 }
  0x50   : > { %846 = vmatprep.subr.bf16.mxu0 %v2308_v30  ;;  %887 = vmatprep.subr.bf16.mxu1 %v2315_v31 }
  0x53   : > { %847 = vmatpush1.bf16.msra.mxu0 %v2322_v32  ;;  %888 = vmatpush1.bf16.msra.mxu1 %v2329_v33 }
  0x54   : > { %848 = vmatprep.subr.bf16.mxu0 %v2336_v34  ;;  %889 = vmatprep.subr.bf16.mxu1 %v2341_v35 }
  0x57   : > { %849 = vmatpush1.bf16.msra.mxu0 %v2351_v37  ;;  %890 = vmatpush1.bf16.msra.mxu1 %v2356_v38 }
  0x58   : > { %850 = vmatprep.subr.bf16.mxu0 %v2363_v39  ;;  %891 = vmatprep.subr.bf16.mxu1 %v2368_v40 }
  0x5b   : > { %851 = vmatpush1.bf16.msra.mxu0 %v2377_v41  ;;  %892 = vmatpush1.bf16.msra.mxu1 %v2382_v42 }
  0x5c   : > { %852 = vmatprep.subr.bf16.mxu0 %v2389_v43  ;;  %893 = vmatprep.subr.bf16.mxu1 %v2394_v44 }
  0x5f   : > { %853 = vmatpush1.bf16.msra.mxu0 %v2404_v46  ;;  %894 = vmatpush1.bf16.msra.mxu1 %v2409_v47 }
  0x60   : > { %854 = vmatprep.subr.bf16.mxu0 %v2416_v48  ;;  %895 = vmatprep.subr.bf16.mxu1 %v2421_v49 }
  0x63   : > { %855 = vmatpush1.bf16.msra.mxu0 %v2430_v50  ;;  %896 = vmatpush1.bf16.msra.mxu1 %v2435_v51 }
  0x64   : > { %967 = vmatprep.subr.bf16.mxu0 %v2234_v12  ;;  %1008 = vmatprep.subr.bf16.mxu1 %v2239_v17 }
  0xf9   : > { %v2492_v60 = vpop.f32.mrb[0].mxu0  ;;  %v2494_v61 = vpop.f32.mrb[0].mxu1 }
  0xfa   : > { %v370_v0 = vpop.f32.mrb[1].mxu0  ;;  %v443_v1 = vpop.f32.mrb[1].mxu1 }
  0xfb   : > { %v372_v3 = vpop.f32.mrb[2].mxu0  ;;  %v445_v4 = vpop.f32.mrb[2].mxu1 }
  0xfc   : > { %v2498_v7 = vadd.f32 %v372_v3, %v253_v63  ;;  %v374_v8 = vpop.f32.mrb[3].mxu0  ;;  %v2501_v9 = vadd.f32 %v445_v4, %v2490_v59  ;;  %v447_v6 = vpop.f32.mrb[3].mxu1 }
  0xfd   : > { %v2503_v10 = vadd.f32 %v374_v8, %v257_v2  ;;  %v2506_v11 = vadd.f32 %v447_v6, %v2496_v62 }
 0x101   : > { %v378_v13 = vpop.f32.mrb[4].mxu0  ;;  %v451_v14 = vpop.f32.mrb[4].mxu1 }
 0x102   : > { %v2508_v15 = vadd.f32 %v378_v13, %v253_v63  ;;  %v380_v16 = vpop.f32.mrb[5].mxu0  ;;  %v2511_v18 = vadd.f32 %v451_v14, %v2490_v59  ;;  %v453_v27 = vpop.f32.mrb[5].mxu1 }
 0x103   : > { %v2513_v36 = vadd.f32 %v380_v16, %v257_v2  ;;  %v382_v45 = vpop.f32.mrb[6].mxu0  ;;  %v2516_v53 = vadd.f32 %v453_v27, %v2496_v62  ;;  %v455_v54 = vpop.f32.mrb[6].mxu1 }
 0x104   : > { %v2518_v55 = vadd.f32 %v382_v45, %v253_v63  ;;  %v384_v56 = vpop.f32.mrb[7].mxu0  ;;  %v2521_v57 = vadd.f32 %v455_v54, %v2490_v59  ;;  %v457_v58 = vpop.f32.mrb[7].mxu1 }
 0x105   : > { %3049 = vst [vmem:[#allocation5_spill] sm:$0xff] %v2516_v53  ;;  %v2523_v3 = vadd.f32 %v384_v56, %v257_v2  ;;  %v2526_v4 = vadd.f32 %v457_v58, %v2496_v62 }
 0x106   : > { %3050 = vst [vmem:[#allocation6_spill] sm:$0xff] %v2518_v55  ;;  %3051 = vst [vmem:[#allocation7_spill] sm:$0xff] %v2521_v57 }
 0x107   : > { %3052 = vst [vmem:[#allocation8_spill] sm:$0xff] %v2523_v3  ;;  %3053 = vst [vmem:[#allocation9_spill] sm:$0xff] %v2526_v4 }
 0x109   : > { %v388_v8 = vpop.f32.mrb[8].mxu0  ;;  %v461_v6 = vpop.f32.mrb[8].mxu1 }
 0x10a   : > { %v2528_v13 = vadd.f32 %v388_v8, %v253_v63  ;;  %v390_v14 = vpop.f32.mrb[9].mxu0  ;;  %v2531_v16 = vadd.f32 %v461_v6, %v2490_v59  ;;  %v463_v27 = vpop.f32.mrb[9].mxu1 }
 0x10b   : > { %v2533_v45 = vadd.f32 %v390_v14, %v257_v2  ;;  %v392_v5 = vpop.f32.mrb[10].mxu0  ;;  %v2536_v54 = vadd.f32 %v463_v27, %v2496_v62  ;;  %v465_v56 = vpop.f32.mrb[10].mxu1 }
 0x10c   : > { %3054 = vst [vmem:[#allocation10_spill] sm:$0xff] %v2528_v13  ;;  %3055 = vst [vmem:[#allocation11_spill] sm:$0xff] %v2531_v16  ;;  %v2538_v3 = vadd.f32 %v392_v5, %v253_v63  ;;  %v394_v58 = vpop.f32.mrb[11].mxu0  ;;  %v2541_v4 = vadd.f32 %v465_v56, %v2490_v59  ;;  %v467_v8 = vpop.f32.mrb[11].mxu1 }
 0x10d   : > { %3056 = vst [vmem:[#allocation12_spill] sm:$0xff] %v2533_v45  ;;  %3057 = vst [vmem:[#allocation13_spill] sm:$0xff] %v2536_v54  ;;  %v2543_v13 = vadd.f32 %v394_v58, %v257_v2  ;;  %v2546_v6 = vadd.f32 %v467_v8, %v2496_v62 }
 0x10e   : > { %3058 = vst [vmem:[#allocation14_spill] sm:$0xff] %v2538_v3  ;;  %3059 = vst [vmem:[#allocation15_spill] sm:$0xff] %v2541_v4 }
 0x10f   : > { %3060 = vst [vmem:[#allocation16_spill] sm:$0xff] %v2543_v13  ;;  %3061 = vst [vmem:[#allocation17_spill] sm:$0xff] %v2546_v6 }
 0x111   : > { %v398_v16 = vpop.f32.mrb[12].mxu0  ;;  %v471_v14 = vpop.f32.mrb[12].mxu1 }
 0x112   : > { %v2548_v45 = vadd.f32 %v398_v16, %v253_v63  ;;  %v400_v57 = vpop.f32.mrb[13].mxu0  ;;  %v2551_v27 = vadd.f32 %v471_v14, %v2490_v59  ;;  %v473_v5 = vpop.f32.mrb[13].mxu1 }
 0x113   : > { %v2553_v3 = vadd.f32 %v400_v57, %v257_v2  ;;  %v402_v54 = vpop.f32.mrb[14].mxu0  ;;  %v2556_v56 = vadd.f32 %v473_v5, %v2496_v62  ;;  %v475_v58 = vpop.f32.mrb[14].mxu1  ;;  %v369_v57 = vadd.f32 %v2492_v60, %v253_v63  ;;  %v371_v5 = vadd.f32 %v370_v0, %v257_v2 }
 0x114   : > { %3062 = vst [vmem:[#allocation18_spill] sm:$0xff] %v2548_v45  ;;  %3063 = vst [vmem:[#allocation19_spill] sm:$0xff] %v2551_v27  ;;  %v2558_v13 = vadd.f32 %v402_v54, %v253_v63  ;;  %v404_v8 = vpop.f32.mrb[15].mxu0  ;;  %v2561_v6 = vadd.f32 %v475_v58, %v2490_v59  ;;  %v477_v16 = vpop.f32.mrb[15].mxu1 }
 0x115   : > { %3064 = vst [vmem:[#allocation20_spill] sm:$0xff] %v2553_v3  ;;  %3065 = vst [vmem:[#allocation21_spill] sm:$0xff] %v2556_v56  ;;  %v2563_v45 = vadd.f32 %v404_v8, %v257_v2  ;;  %v2566_v14 = vadd.f32 %v477_v16, %v2496_v62  ;;  %v442_v3 = vadd.f32 %v2494_v61, %v2490_v59 }
 0x116   : > { %3066 = vst [vmem:[#allocation22_spill] sm:$0xff] %v2558_v13  ;;  %3067 = vst [vmem:[#allocation23_spill] sm:$0xff] %v2561_v6  ;;  %v444_v56 = vadd.f32 %v443_v1, %v2496_v62 }
 0x117   : > { %3068 = vst [vmem:[#allocation24_spill] sm:$0xff] %v2563_v45  ;;  %3069 = vst [vmem:[#allocation25_spill] sm:$0xff] %v2566_v14 }
 0x119   : > { %v748_v54 = vpop.f32.mrb[16].mxu0  ;;  %v789_v13 = vpop.f32.mrb[16].mxu1 }
 0x11a   : > { %v796_v27 = vadd.f32 %v748_v54, %v369_v57  ;;  %v798_v4 = vadd.f32 %v789_v13, %v442_v3  ;;  %v750_v58 = vpop.f32.mrb[17].mxu0  ;;  %v791_v6 = vpop.f32.mrb[17].mxu1  ;;  %v545_v3 = vld [vmem:[#allocation3] sm:$0xff] }
 0x11b   : > { %v797_v55 = vadd.f32 %v750_v58, %v371_v5  ;;  %v799_v8 = vadd.f32 %v791_v6, %v444_v56  ;;  %v752_v45 = vpop.f32.mrb[18].mxu0  ;;  %v793_v53 = vpop.f32.mrb[18].mxu1 }
 0x11c   : > { %v1865_v16 = vmul.f32 -1.442695, %v796_v27  ;;  %v753_v14 = vpop.f32.mrb[19].mxu0  ;;  %v794_v60 = vpop.f32.mrb[19].mxu1  ;;  %v827_v45 = vstv %s826_s9 }
 0x11d   : > { %v1866_v63 = vmul.f32 -1.442695, %v797_v55  ;;  %v1867_v59 = vmul.f32 -1.442695, %v799_v8  ;;  %vm828_vm2 = vcmp.eq.s32.totalorder %v827_v45, 1 }
 0x11e   : > { %1979 = vpow2.f32 %v1865_v16  ;;  %v3070_v16 = vmov 0  }
 0x11f   : > { %1981 = vpow2.f32 %v1866_v63 }
 0x120   : > { %1983 = vpow2.f32 %v1867_v59 }
 0x121   : > { %1985 = vtanh.f32 %v798_v4 }
 0x128   : > { %v1980_v61 = vpop.eup %1979 }
 0x129   : > { %v1982_v62 = vpop.eup %1981  ;;  %v803_v0 = vadd.f32 1.0, %v1980_v61 }
 0x12a   : > { %v809_v1 = vadd.f32 1.0, %v1982_v62  ;;  %v1984_v2 = vpop.eup %1983 }
 0x12b   : > { %1987 = vrcp.f32 %v803_v0  ;;  %v1986_v53 = vpop.eup %1985  ;;  %v816_v27 = vadd.f32 1.0, %v1984_v2 }
 0x12c   : > { %1989 = vrcp.f32 %v809_v1 }
 0x12d   : > { %1991 = vrcp.f32 %v816_v27 }
 0x135   : > { %v1988_v13 = vpop.eup %1987 }
 0x136   : > { %v1990_v55 = vpop.eup %1989  ;;  %v820_v6 = vmul.f32 %v1988_v13, %v1986_v53 }
 0x137   : > { %v819_v56 = vmul.f32 %v1990_v55, %v545_v3  ;;  %v1992_v57 = vpop.eup %1991 }
 0x139   : > { %v821_v14 = vadd.f32 %v820_v6, %v819_v56 }
 0x13b   : > { %1993 = vtanh.f32 %v821_v14  ;;  %v2573_v4 = vsel %vm828_vm2, %v821_v14, %v545_v3 }
 0x145   : > { %v1994_v5 = vpop.eup %1993 }
 0x146   : > { %v823_v54 = vmul.f32 %v1994_v5, %v1992_v57  ;;  %v953_v57 = vstv %s952_s11 }
 0x147   : > { %vm954_vm3 = vcmp.eq.s32.totalorder %v953_v57, 1 }
 0x148   : > { %v2576_v58 = vsel %vm828_vm2, %v823_v54, %v2437_v52 }
 0x149   : > { %v831_v8 = vpack.c.bf16 %v2576_v58, %v2576_v58 }
 0x14b   : > { %832 = vst [vmem:[%s2221_s27] sm:$0xf] %v831_v8  ;;  %873 = vmatmul.mubr.bf16.vlgmr.msra.gmra.mrb[20].mxu0 %v831_v8  ;;  %914 = vmatmul.mubr.bf16.vlgmr.msra.gmra.mrb[20].mxu1 %v831_v8 }
 0x14c   : > { %968 = vmatpush1.bf16.msra.mxu0 %v2245_v19  ;;  %1009 = vmatpush1.bf16.msra.mxu1 %v2250_v20 }
 0x14d   : > { %969 = vmatprep.subr.bf16.mxu0 %v2255_v21  ;;  %1010 = vmatprep.subr.bf16.mxu1 %v2262_v22 }
 0x14e   : > { %999 = vmatprep.mubr.bf16.mxu0 %v3070_v16  ;;  %1040 = vmatprep.mubr.bf16.mxu1 %v3070_v16 }
 0x150   : > { %970 = vmatpush1.bf16.msra.mxu0 %v2271_v23  ;;  %1011 = vmatpush1.bf16.msra.mxu1 %v2276_v24 }
 0x151   : > { %971 = vmatprep.subr.bf16.mxu0 %v2281_v25  ;;  %1012 = vmatprep.subr.bf16.mxu1 %v2288_v26 }
 0x154   : > { %972 = vmatpush1.bf16.msra.mxu0 %v2296_v28  ;;  %1013 = vmatpush1.bf16.msra.mxu1 %v2301_v29 }
 0x155   : > { %973 = vmatprep.subr.bf16.mxu0 %v2308_v30  ;;  %1014 = vmatprep.subr.bf16.mxu1 %v2315_v31 }
 0x158   : > { %974 = vmatpush1.bf16.msra.mxu0 %v2322_v32  ;;  %1015 = vmatpush1.bf16.msra.mxu1 %v2329_v33 }
 0x159   : > { %975 = vmatprep.subr.bf16.mxu0 %v2336_v34  ;;  %1016 = vmatprep.subr.bf16.mxu1 %v2341_v35 }
 0x15c   : > { %976 = vmatpush1.bf16.msra.mxu0 %v2351_v37  ;;  %1017 = vmatpush1.bf16.msra.mxu1 %v2356_v38 }
 0x15d   : > { %977 = vmatprep.subr.bf16.mxu0 %v2363_v39  ;;  %1018 = vmatprep.subr.bf16.mxu1 %v2368_v40 }
 0x160   : > { %978 = vmatpush1.bf16.msra.mxu0 %v2377_v41  ;;  %1019 = vmatpush1.bf16.msra.mxu1 %v2382_v42 }
 0x161   : > { %979 = vmatprep.subr.bf16.mxu0 %v2389_v43  ;;  %1020 = vmatprep.subr.bf16.mxu1 %v2394_v44 }
 0x164   : > { %980 = vmatpush1.bf16.msra.mxu0 %v2404_v46  ;;  %1021 = vmatpush1.bf16.msra.mxu1 %v2409_v47 }
 0x165   : > { %981 = vmatprep.subr.bf16.mxu0 %v2416_v48  ;;  %1022 = vmatprep.subr.bf16.mxu1 %v2421_v49 }
 0x168   : > { %982 = vmatpush1.bf16.msra.mxu0 %v2430_v50  ;;  %1023 = vmatpush1.bf16.msra.mxu1 %v2435_v51 }
 0x169   : > { %1094 = vmatprep.subr.bf16.mxu0 %v2234_v12  ;;  %1135 = vmatprep.subr.bf16.mxu1 %v2239_v17 }
 0x21e   : > { %v874_v52 = vpop.f32.mrb[20].mxu0  ;;  %v915_v60 = vpop.f32.mrb[20].mxu1 }
 0x21f   : > { %v922_v63 = vadd.f32 %v874_v52, %v2498_v7  ;;  %v924_v59 = vadd.f32 %v915_v60, %v2501_v9  ;;  %v876_v61 = vpop.f32.mrb[21].mxu0  ;;  %v917_v62 = vpop.f32.mrb[21].mxu1 }
 0x220   : > { %v923_v0 = vadd.f32 %v876_v61, %v2503_v10  ;;  %v925_v1 = vadd.f32 %v917_v62, %v2506_v11  ;;  %v878_v2 = vpop.f32.mrb[22].mxu0  ;;  %v919_v53 = vpop.f32.mrb[22].mxu1 }
 0x221   : > { %v1869_v3 = vmul.f32 -1.442695, %v922_v63  ;;  %v879_v13 = vpop.f32.mrb[23].mxu0  ;;  %v920_v45 = vpop.f32.mrb[23].mxu1 }
 0x222   : > { %v1870_v55 = vmul.f32 -1.442695, %v923_v0  ;;  %v1871_v6 = vmul.f32 -1.442695, %v925_v1 }
 0x223   : > { %1995 = vpow2.f32 %v1869_v3 }
 0x224   : > { %1997 = vpow2.f32 %v1870_v55  ;;  %v3071_v55 = vld [vmem:[#allocation5_spill] sm:$0xff] }
 0x225   : > { %1999 = vpow2.f32 %v1871_v6 }
 0x226   : > { %2001 = vtanh.f32 %v924_v59 }
 0x22d   : > { %v1996_v27 = vpop.eup %1995 }
 0x22e   : > { %v1998_v7 = vpop.eup %1997  ;;  %v929_v56 = vadd.f32 1.0, %v1996_v27 }
 0x22f   : > { %v935_v9 = vadd.f32 1.0, %v1998_v7  ;;  %v2000_v10 = vpop.eup %1999 }
 0x230   : > { %2003 = vrcp.f32 %v929_v56  ;;  %v2002_v11 = vpop.eup %2001  ;;  %v942_v8 = vadd.f32 1.0, %v2000_v10 }
 0x231   : > { %2005 = vrcp.f32 %v935_v9 }
 0x232   : > { %2007 = vrcp.f32 %v942_v8 }
 0x23a   : > { %v2004_v14 = vpop.eup %2003 }
 0x23b   : > { %v2006_v5 = vpop.eup %2005  ;;  %v946_v54 = vmul.f32 %v2004_v14, %v2002_v11 }
 0x23c   : > { %v945_v52 = vmul.f32 %v2006_v5, %v2573_v4  ;;  %v2008_v59 = vpop.eup %2007 }
 0x23e   : > { %v947_v60 = vadd.f32 %v946_v54, %v945_v52  ;;  %v1080_v52 = vstv %s1079_s13 }
 0x23f   : > { %vm1081_vm4 = vcmp.eq.s32.totalorder %v1080_v52, 1 }
 0x240   : > { %2009 = vtanh.f32 %v947_v60  ;;  %v2622_v63 = vsel %vm954_vm3, %v947_v60, %v2573_v4 }
 0x24a   : > { %v2010_v61 = vpop.eup %2009 }
 0x24b   : > { %v949_v62 = vmul.f32 %v2010_v61, %v2008_v59 }
 0x24d   : > { %v2625_v0 = vsel %vm954_vm3, %v949_v62, %v2576_v58 }
 0x24e   : > { %v957_v1 = vpack.c.bf16 %v2625_v0, %v2625_v0 }
 0x250   : > { %1872 = vst [vmem:[%s2221_s27 + $0x4] sm:$0xf] %v957_v1  ;;  %1000 = vmatmul.mubr.bf16.vlgmr.msra.gmra.mrb[24].mxu0 %v957_v1  ;;  %1041 = vmatmul.mubr.bf16.vlgmr.msra.gmra.mrb[24].mxu1 %v957_v1 }
 0x251   : > { %1095 = vmatpush1.bf16.msra.mxu0 %v2245_v19  ;;  %1136 = vmatpush1.bf16.msra.mxu1 %v2250_v20 }
 0x252   : > { %1096 = vmatprep.subr.bf16.mxu0 %v2255_v21  ;;  %1137 = vmatprep.subr.bf16.mxu1 %v2262_v22 }
 0x253   : > { %1126 = vmatprep.mubr.bf16.mxu0 %v3070_v16  ;;  %1167 = vmatprep.mubr.bf16.mxu1 %v3070_v16 }
 0x255   : > { %1097 = vmatpush1.bf16.msra.mxu0 %v2271_v23  ;;  %1138 = vmatpush1.bf16.msra.mxu1 %v2276_v24 }
 0x256   : > { %1098 = vmatprep.subr.bf16.mxu0 %v2281_v25  ;;  %1139 = vmatprep.subr.bf16.mxu1 %v2288_v26 }
 0x259   : > { %1099 = vmatpush1.bf16.msra.mxu0 %v2296_v28  ;;  %1140 = vmatpush1.bf16.msra.mxu1 %v2301_v29 }
 0x25a   : > { %1100 = vmatprep.subr.bf16.mxu0 %v2308_v30  ;;  %1141 = vmatprep.subr.bf16.mxu1 %v2315_v31 }
 0x25d   : > { %1101 = vmatpush1.bf16.msra.mxu0 %v2322_v32  ;;  %1142 = vmatpush1.bf16.msra.mxu1 %v2329_v33 }
 0x25e   : > { %1102 = vmatprep.subr.bf16.mxu0 %v2336_v34  ;;  %1143 = vmatprep.subr.bf16.mxu1 %v2341_v35 }
 0x261   : > { %1103 = vmatpush1.bf16.msra.mxu0 %v2351_v37  ;;  %1144 = vmatpush1.bf16.msra.mxu1 %v2356_v38 }
 0x262   : > { %1104 = vmatprep.subr.bf16.mxu0 %v2363_v39  ;;  %1145 = vmatprep.subr.bf16.mxu1 %v2368_v40 }
 0x265   : > { %1105 = vmatpush1.bf16.msra.mxu0 %v2377_v41  ;;  %1146 = vmatpush1.bf16.msra.mxu1 %v2382_v42 }
 0x266   : > { %1106 = vmatprep.subr.bf16.mxu0 %v2389_v43  ;;  %1147 = vmatprep.subr.bf16.mxu1 %v2394_v44 }
 0x269   : > { %1107 = vmatpush1.bf16.msra.mxu0 %v2404_v46  ;;  %1148 = vmatpush1.bf16.msra.mxu1 %v2409_v47 }
 0x26a   : > { %1108 = vmatprep.subr.bf16.mxu0 %v2416_v48  ;;  %1149 = vmatprep.subr.bf16.mxu1 %v2421_v49 }
 0x26d   : > { %1109 = vmatpush1.bf16.msra.mxu0 %v2430_v50  ;;  %1150 = vmatpush1.bf16.msra.mxu1 %v2435_v51 }
 0x26e   : > { %1221 = vmatprep.subr.bf16.mxu0 %v2234_v12  ;;  %1262 = vmatprep.subr.bf16.mxu1 %v2239_v17 }
 0x323   : > { %v1001_v4 = vpop.f32.mrb[24].mxu0  ;;  %v1042_v58 = vpop.f32.mrb[24].mxu1 }
 0x324   : > { %v1049_v2 = vadd.f32 %v1001_v4, %v2508_v15  ;;  %v1051_v53 = vadd.f32 %v1042_v58, %v2511_v18  ;;  %v1003_v3 = vpop.f32.mrb[25].mxu0  ;;  %v1044_v13 = vpop.f32.mrb[25].mxu1 }
 0x325   : > { %v1050_v45 = vadd.f32 %v1003_v3, %v2513_v36  ;;  %v1052_v6 = vadd.f32 %v1044_v13, %v3071_v55  ;;  %v1005_v27 = vpop.f32.mrb[26].mxu0  ;;  %v1046_v7 = vpop.f32.mrb[26].mxu1 }
 0x326   : > { %v1873_v56 = vmul.f32 -1.442695, %v1049_v2  ;;  %v1006_v9 = vpop.f32.mrb[27].mxu0  ;;  %v1047_v10 = vpop.f32.mrb[27].mxu1  ;;  %v3074_v27 = vld [vmem:[#allocation8_spill] sm:$0xff] }
 0x327   : > { %v1874_v11 = vmul.f32 -1.442695, %v1050_v45  ;;  %v1875_v14 = vmul.f32 -1.442695, %v1052_v6 }
 0x328   : > { %2011 = vpow2.f32 %v1873_v56  ;;  %v3075_v56 = vld [vmem:[#allocation9_spill] sm:$0xff] }
 0x329   : > { %2013 = vpow2.f32 %v1874_v11 }
 0x32a   : > { %2015 = vpow2.f32 %v1875_v14 }
 0x32b   : > { %2017 = vtanh.f32 %v1051_v53 }
 0x332   : > { %v2012_v57 = vpop.eup %2011 }
 0x333   : > { %v2014_v15 = vpop.eup %2013  ;;  %v1056_v5 = vadd.f32 1.0, %v2012_v57 }
 0x334   : > { %v1062_v18 = vadd.f32 1.0, %v2014_v15  ;;  %v2016_v36 = vpop.eup %2015 }
 0x335   : > { %2019 = vrcp.f32 %v1056_v5  ;;  %v2018_v54 = vpop.eup %2017  ;;  %v1069_v61 = vadd.f32 1.0, %v2016_v36 }
 0x336   : > { %2021 = vrcp.f32 %v1062_v18 }
 0x337   : > { %2023 = vrcp.f32 %v1069_v61 }
 0x33f   : > { %v2020_v8 = vpop.eup %2019 }
 0x340   : > { %v2022_v60 = vpop.eup %2021  ;;  %v1073_v59 = vmul.f32 %v2020_v8, %v2018_v54 }
 0x341   : > { %v1072_v62 = vmul.f32 %v2022_v60, %v2622_v63  ;;  %v2024_v58 = vpop.eup %2023 }
 0x343   : > { %v1074_v1 = vadd.f32 %v1073_v59, %v1072_v62  ;;  %v1207_v59 = vstv %s1206_s15 }
 0x344   : > { %vm1208_vm5 = vcmp.eq.s32.totalorder %v1207_v59, 1  ;;  %v2858_v59 = vld [vmem:[%s3044_s2 + $0x6c] ss:$16 sps:$4 sm:$0xff]  }
 0x345   : > { %2025 = vtanh.f32 %v1074_v1  ;;  %v2671_v4 = vsel %vm1081_vm4, %v1074_v1, %v2622_v63 }
 0x34f   : > { %v2026_v2 = vpop.eup %2025 }
 0x350   : > { %v1076_v53 = vmul.f32 %v2026_v2, %v2024_v58 }
 0x352   : > { %v2674_v3 = vsel %vm1081_vm4, %v1076_v53, %v2625_v0  ;;  %v3073_v0 = vld [vmem:[#allocation7_spill] sm:$0xff] }
 0x353   : > { %v1084_v13 = vpack.c.bf16 %v2674_v3, %v2674_v3 }
 0x355   : > { %1876 = vst [vmem:[%s2221_s27 + $0x8] sm:$0xf] %v1084_v13  ;;  %1127 = vmatmul.mubr.bf16.vlgmr.msra.gmra.mrb[28].mxu0 %v1084_v13  ;;  %1168 = vmatmul.mubr.bf16.vlgmr.msra.gmra.mrb[28].mxu1 %v1084_v13 }
 0x356   : > { %1222 = vmatpush1.bf16.msra.mxu0 %v2245_v19  ;;  %1263 = vmatpush1.bf16.msra.mxu1 %v2250_v20 }
 0x357   : > { %1223 = vmatprep.subr.bf16.mxu0 %v2255_v21  ;;  %1264 = vmatprep.subr.bf16.mxu1 %v2262_v22  ;;  %v3072_v21 = vld [vmem:[#allocation6_spill] sm:$0xff] }
 0x358   : > { %1253 = vmatprep.mubr.bf16.mxu0 %v3070_v16  ;;  %1294 = vmatprep.mubr.bf16.mxu1 %v3070_v16 }
 0x35a   : > { %1224 = vmatpush1.bf16.msra.mxu0 %v2271_v23  ;;  %1265 = vmatpush1.bf16.msra.mxu1 %v2276_v24 }
 0x35b   : > { %1225 = vmatprep.subr.bf16.mxu0 %v2281_v25  ;;  %1266 = vmatprep.subr.bf16.mxu1 %v2288_v26 }
 0x35e   : > { %1226 = vmatpush1.bf16.msra.mxu0 %v2296_v28  ;;  %1267 = vmatpush1.bf16.msra.mxu1 %v2301_v29 }
 0x35f   : > { %1227 = vmatprep.subr.bf16.mxu0 %v2308_v30  ;;  %1268 = vmatprep.subr.bf16.mxu1 %v2315_v31 }
 0x362   : > { %1228 = vmatpush1.bf16.msra.mxu0 %v2322_v32  ;;  %1269 = vmatpush1.bf16.msra.mxu1 %v2329_v33 }
 0x363   : > { %1229 = vmatprep.subr.bf16.mxu0 %v2336_v34  ;;  %1270 = vmatprep.subr.bf16.mxu1 %v2341_v35 }
 0x366   : > { %1230 = vmatpush1.bf16.msra.mxu0 %v2351_v37  ;;  %1271 = vmatpush1.bf16.msra.mxu1 %v2356_v38 }
 0x367   : > { %1231 = vmatprep.subr.bf16.mxu0 %v2363_v39  ;;  %1272 = vmatprep.subr.bf16.mxu1 %v2368_v40 }
 0x36a   : > { %1232 = vmatpush1.bf16.msra.mxu0 %v2377_v41  ;;  %1273 = vmatpush1.bf16.msra.mxu1 %v2382_v42 }
 0x36b   : > { %1233 = vmatprep.subr.bf16.mxu0 %v2389_v43  ;;  %1274 = vmatprep.subr.bf16.mxu1 %v2394_v44 }
 0x36e   : > { %1234 = vmatpush1.bf16.msra.mxu0 %v2404_v46  ;;  %1275 = vmatpush1.bf16.msra.mxu1 %v2409_v47 }
 0x36f   : > { %1235 = vmatprep.subr.bf16.mxu0 %v2416_v48  ;;  %1276 = vmatprep.subr.bf16.mxu1 %v2421_v49 }
 0x372   : > { %1236 = vmatpush1.bf16.msra.mxu0 %v2430_v50  ;;  %1277 = vmatpush1.bf16.msra.mxu1 %v2435_v51 }
 0x373   : > { %1348 = vmatprep.subr.bf16.mxu0 %v2234_v12  ;;  %1389 = vmatprep.subr.bf16.mxu1 %v2239_v17 }
 0x428   : > { %v1128_v19 = vpop.f32.mrb[28].mxu0  ;;  %v1169_v20 = vpop.f32.mrb[28].mxu1 }
 0x429   : > { %v1176_v63 = vadd.f32 %v1128_v19, %v3072_v21  ;;  %v1178_v45 = vadd.f32 %v1169_v20, %v3073_v0  ;;  %v1130_v55 = vpop.f32.mrb[29].mxu0  ;;  %v1171_v6 = vpop.f32.mrb[29].mxu1  ;;  %v2731_v0 = vld [vmem:[%s3044_s2] ss:$16 sps:$4 sm:$0xff]  }
 0x42a   : > { %v1177_v7 = vadd.f32 %v1130_v55, %v3074_v27  ;;  %v1179_v9 = vadd.f32 %v1171_v6, %v3075_v56  ;;  %v1132_v10 = vpop.f32.mrb[30].mxu0  ;;  %v1173_v11 = vpop.f32.mrb[30].mxu1  ;;  %v1334_v55 = vstv %s1333_s6 }
 0x42b   : > { %v1877_v14 = vmul.f32 -1.442695, %v1176_v63  ;;  %v1133_v57 = vpop.f32.mrb[31].mxu0  ;;  %v1174_v12 = vpop.f32.mrb[31].mxu1  ;;  %vm1335_vm6 = vcmp.eq.s32.totalorder %v1334_v55, 1 }
 0x42c   : > { %v1878_v15 = vmul.f32 -1.442695, %v1177_v7  ;;  %v1879_v17 = vmul.f32 -1.442695, %v1179_v9 }
 0x42d   : > { %2027 = vpow2.f32 %v1877_v14 }
 0x42e   : > { %2029 = vpow2.f32 %v1878_v15 }
 0x42f   : > { %2031 = vpow2.f32 %v1879_v17  ;;  %v2808_v17 = vld [vmem:[%s3044_s2 + $0x2c] ss:$16 sps:$4 sm:$0xff]  }
 0x430   : > { %2033 = vtanh.f32 %v1178_v45 }
 0x437   : > { %v2028_v5 = vpop.eup %2027 }
 0x438   : > { %v2030_v18 = vpop.eup %2029  ;;  %v1183_v36 = vadd.f32 1.0, %v2028_v5  ;;  %v2816_v5 = vld [vmem:[%s3044_s2 + $0x20] ss:$16 sps:$4 sm:$0xff]  }
 0x439   : > { %v1189_v54 = vadd.f32 1.0, %v2030_v18  ;;  %v2032_v8 = vpop.eup %2031  ;;  %v2822_v18 = vld [vmem:[%s3044_s2 + $0x28] ss:$16 sps:$4 sm:$0xff]  }
 0x43a   : > { %2035 = vrcp.f32 %v1183_v36  ;;  %v2034_v52 = vpop.eup %2033  ;;  %v1196_v1 = vadd.f32 1.0, %v2032_v8  ;;  %v2828_v36 = vld [vmem:[%s3044_s2 + $0x44] ss:$16 sps:$4 sm:$0xff]   ;;  %v2840_v8 = vld [vmem:[%s3044_s2 + $0x40] ss:$16 sps:$4 sm:$0xff]  }
 0x43b   : > { %2037 = vrcp.f32 %v1189_v54  ;;  %v2834_v54 = vld [vmem:[%s3044_s2 + $0x4c] ss:$16 sps:$4 sm:$0xff]  }
 0x43c   : > { %2039 = vrcp.f32 %v1196_v1  ;;  %v2876_v1 = vld [vmem:[%s3044_s2 + $0x84] ss:$16 sps:$4 sm:$0xff]  }
 0x444   : > { %v2036_v60 = vpop.eup %2035 }
 0x445   : > { %v2038_v61 = vpop.eup %2037  ;;  %v1200_v62 = vmul.f32 %v2036_v60, %v2034_v52  ;;  %v2846_v52 = vld [vmem:[%s3044_s2 + $0x48] ss:$16 sps:$4 sm:$0xff]   ;;  %v2852_v60 = vld [vmem:[%s3044_s2 + $0x64] ss:$16 sps:$4 sm:$0xff]  }
 0x446   : > { %v1199_v58 = vmul.f32 %v2038_v61, %v2671_v4  ;;  %v2040_v13 = vpop.eup %2039  ;;  %v2864_v61 = vld [vmem:[%s3044_s2 + $0x60] ss:$16 sps:$4 sm:$0xff]  }
 0x448   : > { %v1201_v2 = vadd.f32 %v1200_v62, %v1199_v58  ;;  %v2870_v62 = vld [vmem:[%s3044_s2 + $0x68] ss:$16 sps:$4 sm:$0xff]   ;;  %v2882_v58 = vld [vmem:[%s3044_s2 + $0x8c] ss:$16 sps:$4 sm:$0xff]  }
 0x44a   : > { %2041 = vtanh.f32 %v1201_v2  ;;  %v2720_v53 = vsel %vm1208_vm5, %v1201_v2, %v2671_v4  ;;  %v2737_v4 = vld [vmem:[%s3044_s2 + $0x8] ss:$16 sps:$4 sm:$0xff]   ;;  %v2888_v2 = vld [vmem:[%s3044_s2 + $0x80] ss:$16 sps:$4 sm:$0xff]  }
 0x454   : > { %v2042_v19 = vpop.eup %2041 }
 0x455   : > { %v1203_v20 = vmul.f32 %v2042_v19, %v2040_v13  ;;  %v2900_v13 = vld [vmem:[%s3044_s2 + $0xa4] ss:$16 sps:$4 sm:$0xff]   ;;  %v2906_v19 = vld [vmem:[%s3044_s2 + $0xac] ss:$16 sps:$4 sm:$0xff]  }
 0x457   : > { %v2723_v21 = vsel %vm1208_vm5, %v1203_v20, %v2674_v3  ;;  %v2743_v3 = vld [vmem:[%s3044_s2 + $0x24] ss:$16 sps:$4 sm:$0xff]   ;;  %v2912_v20 = vld [vmem:[%s3044_s2 + $0xa0] ss:$16 sps:$4 sm:$0xff]  }
 0x458   : > { %v1211_v63 = vpack.c.bf16 %v2723_v21, %v2723_v21 }
 0x45a   : > { %1880 = vst [vmem:[%s2221_s27 + $0xc] sm:$0xf] %v1211_v63  ;;  %1254 = vmatmul.mubr.bf16.vlgmr.msra.gmra.mrb[32].mxu0 %v1211_v63  ;;  %1295 = vmatmul.mubr.bf16.vlgmr.msra.gmra.mrb[32].mxu1 %v1211_v63  ;;  %v2924_v63 = vld [vmem:[%s3044_s2 + $0xc4] ss:$16 sps:$4 sm:$0xff]  }
 0x45b   : > { %1349 = vmatpush1.bf16.msra.mxu0 %v2731_v0  ;;  %1390 = vmatpush1.bf16.msra.mxu1 %v2737_v4 }
 0x45c   : > { %1350 = vmatprep.subr.bf16.mxu0 %v2743_v3  ;;  %1391 = vmatprep.subr.bf16.mxu1 %v2262_v22  ;;  %v2778_v22 = vld [vmem:[%s3044_s2 + $0x4] ss:$16 sps:$4 sm:$0xff]  }
 0x45d   : > { %1380 = vmatprep.mubr.bf16.mxu0 %v3070_v16  ;;  %1421 = vmatprep.mubr.bf16.mxu1 %v3070_v16 }
 0x45f   : > { %1351 = vmatpush1.bf16.msra.mxu0 %v2271_v23  ;;  %1392 = vmatpush1.bf16.msra.mxu1 %v2276_v24  ;;  %v2784_v23 = vld [vmem:[%s3044_s2 + $0xc] ss:$16 sps:$4 sm:$0xff]  }
 0x460   : > { %1352 = vmatprep.subr.bf16.mxu0 %v2281_v25  ;;  %1393 = vmatprep.subr.bf16.mxu1 %v2288_v26  ;;  %v3076_v26 = vld [vmem:[#allocation10_spill] sm:$0xff] }
 0x463   : > { %1353 = vmatpush1.bf16.msra.mxu0 %v2296_v28  ;;  %1394 = vmatpush1.bf16.msra.mxu1 %v2301_v29  ;;  %v3077_v29 = vld [vmem:[#allocation11_spill] sm:$0xff] }
 0x464   : > { %1354 = vmatprep.subr.bf16.mxu0 %v2308_v30  ;;  %1395 = vmatprep.subr.bf16.mxu1 %v2315_v31 }
 0x467   : > { %1355 = vmatpush1.bf16.msra.mxu0 %v2322_v32  ;;  %1396 = vmatpush1.bf16.msra.mxu1 %v2329_v33  ;;  %v3078_v33 = vld [vmem:[#allocation12_spill] sm:$0xff] }
 0x468   : > { %1356 = vmatprep.subr.bf16.mxu0 %v2336_v34  ;;  %1397 = vmatprep.subr.bf16.mxu1 %v2341_v35  ;;  %v3079_v35 = vld [vmem:[#allocation13_spill] sm:$0xff] }
 0x46b   : > { %1357 = vmatpush1.bf16.msra.mxu0 %v2351_v37  ;;  %1398 = vmatpush1.bf16.msra.mxu1 %v2356_v38 }
 0x46c   : > { %1358 = vmatprep.subr.bf16.mxu0 %v2363_v39  ;;  %1399 = vmatprep.subr.bf16.mxu1 %v2368_v40 }
 0x46f   : > { %1359 = vmatpush1.bf16.msra.mxu0 %v2377_v41  ;;  %1400 = vmatpush1.bf16.msra.mxu1 %v2382_v42 }
 0x470   : > { %1360 = vmatprep.subr.bf16.mxu0 %v2389_v43  ;;  %1401 = vmatprep.subr.bf16.mxu1 %v2394_v44 }
 0x473   : > { %1361 = vmatpush1.bf16.msra.mxu0 %v2404_v46  ;;  %1402 = vmatpush1.bf16.msra.mxu1 %v2409_v47 }
 0x474   : > { %1362 = vmatprep.subr.bf16.mxu0 %v2416_v48  ;;  %1403 = vmatprep.subr.bf16.mxu1 %v2421_v49 }
 0x477   : > { %1363 = vmatpush1.bf16.msra.mxu0 %v2430_v50  ;;  %1404 = vmatpush1.bf16.msra.mxu1 %v2435_v51 }
 0x478   : > { %1475 = vmatprep.subr.bf16.mxu0 %v2778_v22  ;;  %1516 = vmatprep.subr.bf16.mxu1 %v2784_v23 }
 0x52d   : > { %v1255_v24 = vpop.f32.mrb[32].mxu0  ;;  %v1296_v25 = vpop.f32.mrb[32].mxu1 }
 0x52e   : > { %v1303_v28 = vadd.f32 %v1255_v24, %v3076_v26  ;;  %v1305_v30 = vadd.f32 %v1296_v25, %v3077_v29  ;;  %v1257_v31 = vpop.f32.mrb[33].mxu0  ;;  %v1298_v32 = vpop.f32.mrb[33].mxu1  ;;  %v2930_v24 = vld [vmem:[%s3044_s2 + $0xcc] ss:$16 sps:$4 sm:$0xff]   ;;  %v2936_v25 = vld [vmem:[%s3044_s2 + $0xc0] ss:$16 sps:$4 sm:$0xff]  }
 0x52f   : > { %v1304_v34 = vadd.f32 %v1257_v31, %v3078_v33  ;;  %v1306_v37 = vadd.f32 %v1298_v32, %v3079_v35  ;;  %v1259_v38 = vpop.f32.mrb[34].mxu0  ;;  %v1300_v39 = vpop.f32.mrb[34].mxu1  ;;  %v2942_v26 = vld [vmem:[%s3044_s2 + $0xc8] ss:$16 sps:$4 sm:$0xff]   ;;  %v2954_v29 = vld [vmem:[%s3044_s2 + $0xec] ss:$16 sps:$4 sm:$0xff]  }
 0x530   : > { %v1881_v40 = vmul.f32 -1.442695, %v1303_v28  ;;  %v1260_v41 = vpop.f32.mrb[35].mxu0  ;;  %v1301_v42 = vpop.f32.mrb[35].mxu1  ;;  %v2948_v28 = vld [vmem:[%s3044_s2 + $0xe4] ss:$16 sps:$4 sm:$0xff]  }
 0x531   : > { %v1882_v43 = vmul.f32 -1.442695, %v1304_v34  ;;  %v1883_v44 = vmul.f32 -1.442695, %v1306_v37  ;;  %v2966_v31 = vld [vmem:[%s3044_s2 + $0xe8] ss:$16 sps:$4 sm:$0xff]  }
 0x532   : > { %2043 = vpow2.f32 %v1881_v40  ;;  %v3080_v34 = vld [vmem:[#allocation14_spill] sm:$0xff]  ;;  %v3081_v37 = vld [vmem:[#allocation15_spill] sm:$0xff]  ;;  %v3082_v41 = vld [vmem:[#allocation16_spill] sm:$0xff] }
 0x533   : > { %2045 = vpow2.f32 %v1882_v43  ;;  %v3083_v43 = vld [vmem:[#allocation17_spill] sm:$0xff] }
 0x534   : > { %2047 = vpow2.f32 %v1883_v44 }
 0x535   : > { %2049 = vtanh.f32 %v1305_v30  ;;  %v2960_v30 = vld [vmem:[%s3044_s2 + $0xe0] ss:$16 sps:$4 sm:$0xff]  }
 0x53c   : > { %v2044_v46 = vpop.eup %2043 }
 0x53d   : > { %v2046_v47 = vpop.eup %2045  ;;  %v1310_v48 = vadd.f32 1.0, %v2044_v46 }
 0x53e   : > { %v1316_v49 = vadd.f32 1.0, %v2046_v47  ;;  %v2048_v50 = vpop.eup %2047 }
 0x53f   : > { %2051 = vrcp.f32 %v1310_v48  ;;  %v2050_v51 = vpop.eup %2049  ;;  %v1323_v7 = vadd.f32 1.0, %v2048_v50 }
 0x540   : > { %2053 = vrcp.f32 %v1316_v49 }
 0x541   : > { %2055 = vrcp.f32 %v1323_v7 }
 0x549   : > { %v2052_v45 = vpop.eup %2051 }
 0x54a   : > { %v2054_v6 = vpop.eup %2053  ;;  %v1327_v27 = vmul.f32 %v2052_v45, %v2050_v51 }
 0x54b   : > { %v1326_v56 = vmul.f32 %v2054_v6, %v2720_v53  ;;  %v2056_v11 = vpop.eup %2055 }
 0x54d   : > { %v1328_v9 = vadd.f32 %v1327_v27, %v1326_v56 }
 0x54f   : > { %2057 = vtanh.f32 %v1328_v9  ;;  %v2794_v10 = vsel %vm1335_vm6, %v1328_v9, %v2720_v53  ;;  %v2894_v53 = vld [vmem:[%s3044_s2 + $0x88] ss:$16 sps:$4 sm:$0xff]   ;;  %v1461_v9 = vstv %s1460_s25 }
 0x550   : > { %vm1462_vm7 = vcmp.eq.s32.totalorder %v1461_v9, 1 }
 0x559   : > { %v2058_v14 = vpop.eup %2057 }
 0x55a   : > { %v1330_v57 = vmul.f32 %v2058_v14, %v2056_v11 }
 0x55c   : > { %v2797_v12 = vsel %vm1335_vm6, %v1330_v57, %v2723_v21  ;;  %v2918_v21 = vld [vmem:[%s3044_s2 + $0xa8] ss:$16 sps:$4 sm:$0xff]  }
 0x55d   : > { %v1338_v15 = vpack.c.bf16 %v2797_v12, %v2797_v12 }
 0x55f   : > { %1884 = vst [vmem:[%s2221_s27 + $0x10] sm:$0xf] %v1338_v15  ;;  %1381 = vmatmul.mubr.bf16.vlgmr.msra.gmra.mrb[36].mxu0 %v1338_v15  ;;  %1422 = vmatmul.mubr.bf16.vlgmr.msra.gmra.mrb[36].mxu1 %v1338_v15 }
 0x560   : > { %1476 = vmatpush1.bf16.msra.mxu0 %v2731_v0  ;;  %1517 = vmatpush1.bf16.msra.mxu1 %v2737_v4 }
 0x561   : > { %1477 = vmatprep.subr.bf16.mxu0 %v2743_v3  ;;  %1518 = vmatprep.subr.bf16.mxu1 %v2808_v17 }
 0x562   : > { %1507 = vmatprep.mubr.bf16.mxu0 %v3070_v16  ;;  %1548 = vmatprep.mubr.bf16.mxu1 %v3070_v16 }
 0x564   : > { %1478 = vmatpush1.bf16.msra.mxu0 %v2816_v5  ;;  %1519 = vmatpush1.bf16.msra.mxu1 %v2822_v18 }
 0x565   : > { %1479 = vmatprep.subr.bf16.mxu0 %v2828_v36  ;;  %1520 = vmatprep.subr.bf16.mxu1 %v2834_v54 }
 0x568   : > { %1480 = vmatpush1.bf16.msra.mxu0 %v2840_v8  ;;  %1521 = vmatpush1.bf16.msra.mxu1 %v2846_v52 }
 0x569   : > { %1481 = vmatprep.subr.bf16.mxu0 %v2852_v60  ;;  %1522 = vmatprep.subr.bf16.mxu1 %v2858_v59 }
 0x56c   : > { %1482 = vmatpush1.bf16.msra.mxu0 %v2864_v61  ;;  %1523 = vmatpush1.bf16.msra.mxu1 %v2870_v62 }
 0x56d   : > { %1483 = vmatprep.subr.bf16.mxu0 %v2876_v1  ;;  %1524 = vmatprep.subr.bf16.mxu1 %v2882_v58 }
 0x570   : > { %1484 = vmatpush1.bf16.msra.mxu0 %v2888_v2  ;;  %1525 = vmatpush1.bf16.msra.mxu1 %v2894_v53 }
 0x571   : > { %1485 = vmatprep.subr.bf16.mxu0 %v2900_v13  ;;  %1526 = vmatprep.subr.bf16.mxu1 %v2906_v19 }
 0x574   : > { %1486 = vmatpush1.bf16.msra.mxu0 %v2912_v20  ;;  %1527 = vmatpush1.bf16.msra.mxu1 %v2918_v21 }
 0x575   : > { %1487 = vmatprep.subr.bf16.mxu0 %v2924_v63  ;;  %1528 = vmatprep.subr.bf16.mxu1 %v2930_v24 }
 0x578   : > { %1488 = vmatpush1.bf16.msra.mxu0 %v2936_v25  ;;  %1529 = vmatpush1.bf16.msra.mxu1 %v2942_v26 }
 0x579   : > { %1489 = vmatprep.subr.bf16.mxu0 %v2948_v28  ;;  %1530 = vmatprep.subr.bf16.mxu1 %v2954_v29 }
 0x57c   : > { %1490 = vmatpush1.bf16.msra.mxu0 %v2960_v30  ;;  %1531 = vmatpush1.bf16.msra.mxu1 %v2966_v31 }
 0x57d   : > { %1602 = vmatprep.subr.bf16.mxu0 %v2778_v22  ;;  %1643 = vmatprep.subr.bf16.mxu1 %v2784_v23 }
 0x632   : > { %v1382_v32 = vpop.f32.mrb[36].mxu0  ;;  %v1423_v33 = vpop.f32.mrb[36].mxu1 }
 0x633   : > { %v1430_v35 = vadd.f32 %v1382_v32, %v3080_v34  ;;  %v1432_v38 = vadd.f32 %v1423_v33, %v3081_v37  ;;  %v1384_v39 = vpop.f32.mrb[37].mxu0  ;;  %v1425_v40 = vpop.f32.mrb[37].mxu1 }
 0x634   : > { %v1431_v42 = vadd.f32 %v1384_v39, %v3082_v41  ;;  %v1433_v44 = vadd.f32 %v1425_v40, %v3083_v43  ;;  %v1386_v46 = vpop.f32.mrb[38].mxu0  ;;  %v1427_v47 = vpop.f32.mrb[38].mxu1 }
 0x635   : > { %v1885_v48 = vmul.f32 -1.442695, %v1430_v35  ;;  %v1387_v49 = vpop.f32.mrb[39].mxu0  ;;  %v1428_v22 = vpop.f32.mrb[39].mxu1 }
 0x636   : > { %v1886_v50 = vmul.f32 -1.442695, %v1431_v42  ;;  %v1887_v23 = vmul.f32 -1.442695, %v1433_v44  ;;  %v3089_v22 = vld [vmem:[#allocation23_spill] sm:$0xff] }
 0x637   : > { %2059 = vpow2.f32 %v1885_v48  ;;  %v3088_v48 = vld [vmem:[#allocation22_spill] sm:$0xff] }
 0x638   : > { %2061 = vpow2.f32 %v1886_v50 }
 0x639   : > { %2063 = vpow2.f32 %v1887_v23 }
 0x63a   : > { %2065 = vtanh.f32 %v1432_v38 }
 0x641   : > { %v2060_v51 = vpop.eup %2059 }
 0x642   : > { %v2062_v45 = vpop.eup %2061  ;;  %v1437_v55 = vadd.f32 1.0, %v2060_v51 }
 0x643   : > { %v1443_v6 = vadd.f32 1.0, %v2062_v45  ;;  %v2064_v27 = vpop.eup %2063  ;;  %v3090_v45 = vld [vmem:[#allocation24_spill] sm:$0xff] }
 0x644   : > { %2067 = vrcp.f32 %v1437_v55  ;;  %v2066_v7 = vpop.eup %2065  ;;  %v1450_v57 = vadd.f32 1.0, %v2064_v27 }
 0x645   : > { %2069 = vrcp.f32 %v1443_v6  ;;  %v3091_v6 = vld [vmem:[#allocation25_spill] sm:$0xff] }
 0x646   : > { %2071 = vrcp.f32 %v1450_v57 }
 0x64e   : > { %v2068_v56 = vpop.eup %2067 }
 0x64f   : > { %v2070_v11 = vpop.eup %2069  ;;  %v1454_v14 = vmul.f32 %v2068_v56, %v2066_v7 }
 0x650   : > { %v1453_v15 = vmul.f32 %v2070_v11, %v2794_v10  ;;  %v2072_v34 = vpop.eup %2071 }
 0x652   : > { %v1455_v32 = vadd.f32 %v1454_v14, %v1453_v15 }
 0x654   : > { %2073 = vtanh.f32 %v1455_v32  ;;  %v2978_v33 = vsel %vm1462_vm7, %v1455_v32, %v2794_v10  ;;  %v3085_v10 = vld [vmem:[#allocation19_spill] sm:$0xff] }
 0x65e   : > { %v2074_v35 = vpop.eup %2073 }
 0x65f   : > { %v1457_v37 = vmul.f32 %v2074_v35, %v2072_v34 }
 0x661   : > { %v2981_v38 = vsel %vm1462_vm7, %v1457_v37, %v2797_v12 }
 0x662   : > { %v1465_v39 = vpack.c.bf16 %v2981_v38, %v2981_v38 }
 0x664   : > { %1888 = vst [vmem:[%s2221_s27 + $0x14] sm:$0xf] %v1465_v39  ;;  %1508 = vmatmul.mubr.bf16.vlgmr.msra.gmra.mrb[40].mxu0 %v1465_v39  ;;  %1549 = vmatmul.mubr.bf16.vlgmr.msra.gmra.mrb[40].mxu1 %v1465_v39 }
 0x665   : > { %1603 = vmatpush1.bf16.msra.mxu0 %v2731_v0  ;;  %1644 = vmatpush1.bf16.msra.mxu1 %v2737_v4  ;;  %v3084_v4 = vld [vmem:[#allocation18_spill] sm:$0xff] }
 0x666   : > { %1604 = vmatprep.subr.bf16.mxu0 %v2743_v3  ;;  %1645 = vmatprep.subr.bf16.mxu1 %v2808_v17 }
 0x667   : > { %1634 = vmatprep.mubr.bf16.mxu0 %v3070_v16  ;;  %1675 = vmatprep.mubr.bf16.mxu1 %v3070_v16 }
 0x669   : > { %1605 = vmatpush1.bf16.msra.mxu0 %v2816_v5  ;;  %1646 = vmatpush1.bf16.msra.mxu1 %v2822_v18  ;;  %v3086_v18 = vld [vmem:[#allocation20_spill] sm:$0xff] }
 0x66a   : > { %1606 = vmatprep.subr.bf16.mxu0 %v2828_v36  ;;  %1647 = vmatprep.subr.bf16.mxu1 %v2834_v54  ;;  %v3087_v54 = vld [vmem:[#allocation21_spill] sm:$0xff] }
 0x66d   : > { %1607 = vmatpush1.bf16.msra.mxu0 %v2840_v8  ;;  %1648 = vmatpush1.bf16.msra.mxu1 %v2846_v52 }
 0x66e   : > { %1608 = vmatprep.subr.bf16.mxu0 %v2852_v60  ;;  %1649 = vmatprep.subr.bf16.mxu1 %v2858_v59 }
 0x671   : > { %1609 = vmatpush1.bf16.msra.mxu0 %v2864_v61  ;;  %1650 = vmatpush1.bf16.msra.mxu1 %v2870_v62 }
 0x672   : > { %1610 = vmatprep.subr.bf16.mxu0 %v2876_v1  ;;  %1651 = vmatprep.subr.bf16.mxu1 %v2882_v58 }
 0x675   : > { %1611 = vmatpush1.bf16.msra.mxu0 %v2888_v2  ;;  %1652 = vmatpush1.bf16.msra.mxu1 %v2894_v53 }
 0x676   : > { %1612 = vmatprep.subr.bf16.mxu0 %v2900_v13  ;;  %1653 = vmatprep.subr.bf16.mxu1 %v2906_v19 }
 0x679   : > { %1613 = vmatpush1.bf16.msra.mxu0 %v2912_v20  ;;  %1654 = vmatpush1.bf16.msra.mxu1 %v2918_v21 }
 0x67a   : > { %1614 = vmatprep.subr.bf16.mxu0 %v2924_v63  ;;  %1655 = vmatprep.subr.bf16.mxu1 %v2930_v24  ;;  %v1588_v24 = vstv %s1587_s26 }
 0x67b   : > { %vm1589_vm8 = vcmp.eq.s32.totalorder %v1588_v24, 1 }
 0x67d   : > { %1615 = vmatpush1.bf16.msra.mxu0 %v2936_v25  ;;  %1656 = vmatpush1.bf16.msra.mxu1 %v2942_v26 }
 0x67e   : > { %1616 = vmatprep.subr.bf16.mxu0 %v2948_v28  ;;  %1657 = vmatprep.subr.bf16.mxu1 %v2954_v29 }
 0x681   : > { %1617 = vmatpush1.bf16.msra.mxu0 %v2960_v30  ;;  %1658 = vmatpush1.bf16.msra.mxu1 %v2966_v31 }
 0x737   : > { %v1509_v16 = vpop.f32.mrb[40].mxu0  ;;  %v1550_v0 = vpop.f32.mrb[40].mxu1 }
 0x738   : > { %v1557_v3 = vadd.f32 %v1509_v16, %v3084_v4  ;;  %v1559_v12 = vadd.f32 %v1550_v0, %v3085_v10  ;;  %v1511_v17 = vpop.f32.mrb[41].mxu0  ;;  %v1552_v5 = vpop.f32.mrb[41].mxu1  ;;  %v1715_v16 = vstv %s1714_s29 }
 0x739   : > { %v1558_v36 = vadd.f32 %v1511_v17, %v3086_v18  ;;  %v1560_v8 = vadd.f32 %v1552_v5, %v3087_v54  ;;  %v1513_v52 = vpop.f32.mrb[42].mxu0  ;;  %v1554_v60 = vpop.f32.mrb[42].mxu1  ;;  %vm1716_vm9 = vcmp.eq.s32.totalorder %v1715_v16, 1 }
 0x73a   : > { %v1889_v59 = vmul.f32 -1.442695, %v1557_v3  ;;  %v1514_v61 = vpop.f32.mrb[43].mxu0  ;;  %v1555_v62 = vpop.f32.mrb[43].mxu1 }
 0x73b   : > { %v1890_v1 = vmul.f32 -1.442695, %v1558_v36  ;;  %v1891_v58 = vmul.f32 -1.442695, %v1560_v8 }
 0x73c   : > { %2075 = vpow2.f32 %v1889_v59 }
 0x73d   : > { %2077 = vpow2.f32 %v1890_v1 }
 0x73e   : > { %2079 = vpow2.f32 %v1891_v58 }
 0x73f   : > { %2081 = vtanh.f32 %v1559_v12 }
 0x746   : > { %v2076_v2 = vpop.eup %2075 }
 0x747   : > { %v2078_v53 = vpop.eup %2077  ;;  %v1564_v13 = vadd.f32 1.0, %v2076_v2 }
 0x748   : > { %v1570_v19 = vadd.f32 1.0, %v2078_v53  ;;  %v2080_v20 = vpop.eup %2079 }
 0x749   : > { %2083 = vrcp.f32 %v1564_v13  ;;  %v2082_v21 = vpop.eup %2081  ;;  %v1577_v28 = vadd.f32 1.0, %v2080_v20 }
 0x74a   : > { %2085 = vrcp.f32 %v1570_v19 }
 0x74b   : > { %2087 = vrcp.f32 %v1577_v28 }
 0x753   : > { %v2084_v63 = vpop.eup %2083 }
 0x754   : > { %v2086_v25 = vpop.eup %2085  ;;  %v1581_v26 = vmul.f32 %v2084_v63, %v2082_v21 }
 0x755   : > { %v1580_v29 = vmul.f32 %v2086_v25, %v2978_v33  ;;  %v2088_v40 = vpop.eup %2087 }
 0x757   : > { %v1582_v30 = vadd.f32 %v1581_v26, %v1580_v29 }
 0x759   : > { %2089 = vtanh.f32 %v1582_v30  ;;  %v1591_v31 = vsel %vm1589_vm8, %v1582_v30, %v2978_v33 }
 0x763   : > { %v2090_v41 = vpop.eup %2089 }
 0x764   : > { %v1584_v42 = vmul.f32 %v2090_v41, %v2088_v40 }
 0x766   : > { %v1590_v43 = vsel %vm1589_vm8, %v1584_v42, %v2981_v38 }
 0x767   : > { %v1592_v44 = vpack.c.bf16 %v1590_v43, %v1590_v43 }
 0x769   : > { %1892 = vst [vmem:[%s2221_s27 + $0x18] sm:$0xf] %v1592_v44  ;;  %1635 = vmatmul.mubr.bf16.vlgmr.msra.gmra.mrb[44].mxu0 %v1592_v44  ;;  %1676 = vmatmul.mubr.bf16.vlgmr.msra.gmra.mrb[44].mxu1 %v1592_v44 }
 0x83c   : > { %v1636_v46 = vpop.f32.mrb[44].mxu0  ;;  %v1677_v47 = vpop.f32.mrb[44].mxu1 }
 0x83d   : > { %v1684_v49 = vadd.f32 %v1636_v46, %v3088_v48  ;;  %v1686_v50 = vadd.f32 %v1677_v47, %v3089_v22  ;;  %v1638_v23 = vpop.f32.mrb[45].mxu0  ;;  %v1679_v51 = vpop.f32.mrb[45].mxu1 }
 0x83e   : > { %v1685_v55 = vadd.f32 %v1638_v23, %v3090_v45  ;;  %v1687_v27 = vadd.f32 %v1679_v51, %v3091_v6  ;;  %v1640_v7 = vpop.f32.mrb[46].mxu0  ;;  %v1681_v56 = vpop.f32.mrb[46].mxu1 }
 0x83f   : > { %v1893_v9 = vmul.f32 -1.442695, %v1684_v49  ;;  %v1641_v11 = vpop.f32.mrb[47].mxu0  ;;  %v1682_v14 = vpop.f32.mrb[47].mxu1 }
 0x840   : > { %v1894_v57 = vmul.f32 -1.442695, %v1685_v55  ;;  %v1895_v15 = vmul.f32 -1.442695, %v1687_v27 }
 0x841   : > { %2091 = vpow2.f32 %v1893_v9 }
 0x842   : > { %2093 = vpow2.f32 %v1894_v57 }
 0x843   : > { %2095 = vpow2.f32 %v1895_v15 }
 0x844   : > { %2097 = vtanh.f32 %v1686_v50 }
 0x84b   : > { %v2092_v32 = vpop.eup %2091 }
 0x84c   : > { %v2094_v33 = vpop.eup %2093  ;;  %v1691_v34 = vadd.f32 1.0, %v2092_v32 }
 0x84d   : > { %v1697_v35 = vadd.f32 1.0, %v2094_v33  ;;  %v2096_v37 = vpop.eup %2095 }
 0x84e   : > { %2099 = vrcp.f32 %v1691_v34  ;;  %v2098_v38 = vpop.eup %2097  ;;  %v1704_v3 = vadd.f32 1.0, %v2096_v37 }
 0x84f   : > { %2101 = vrcp.f32 %v1697_v35 }
 0x850   : > { %2103 = vrcp.f32 %v1704_v3 }
 0x858   : > { %v2100_v39 = vpop.eup %2099 }
 0x859   : > { %v2102_v0 = vpop.eup %2101  ;;  %v1708_v4 = vmul.f32 %v2100_v39, %v2098_v38 }
 0x85a   : > { %v1707_v10 = vmul.f32 %v2102_v0, %v1591_v31  ;;  %v2104_v5 = vpop.eup %2103 }
 0x85c   : > { %v1709_v12 = vadd.f32 %v1708_v4, %v1707_v10 }
 0x85e   : > { %2105 = vtanh.f32 %v1709_v12  ;;  %v1718_v17 = vsel %vm1716_vm9, %v1709_v12, %v1591_v31 }
 0x85f   : > { %1723 = vst [vmem:[#allocation3] sm:$0xff] %v1718_v17 }
 0x868   : > { %v2106_v18 = vpop.eup %2105 }
 0x869   : > { %v1711_v36 = vmul.f32 %v2106_v18, %v2104_v5 }
 0x86b   : > { %v1717_v54 = vsel %vm1716_vm9, %v1711_v36, %v1590_v43 }
 0x86c   : > { %v1719_v8 = vpack.c.bf16 %v1717_v54, %v1717_v54  ;;  %1722 = vst [vmem:[#allocation2] sm:$0xff] %v1717_v54 }
 0x86e   : > { %1896 = vst [vmem:[%s2221_s27 + $0x1c] sm:$0xf] %v1719_v8 }
 0x86f PF: > { %s14_s17 = sadd.s32 1, %s2161_s17   ;;  %s3092_s15 = smov %s2157_s16 }
 0x870   : > { %p11_p0 = scmp.ge.s32.totalorder %s14_s17, 4   ;;  %s3093_s16 = smov %s3095_s18 }
 0x872   :  { %13 = sbr.rel (!%p11_p0) target bundleno = 2 (0x2), region = 85 }

// kernel: _lambda_.3
= control target key start
LH: loop header
LB: loop body
LE: loop exit
PB: predicated region body
PF: predicated region fallthrough
CT: control target
= control target key end

     0   :  { %s2609_s23 = smov 0   ;;  %s2611_s24 = smov 0   ;;  %s3581_s0 = inlined_call_operand.vmem [shape: bf16[16,8,128], index: 0, kind: input, shape index: {}]   ;;  %s3582_s1 = inlined_call_operand.vmem [shape: bf16[128,512], index: 1, kind: input, shape index: {}]   ;;  %s3583_s2 = inlined_call_operand.vmem [shape: bf16[128,512], index: 2, kind: input, shape index: {}]   ;;  %s3584_s3 = inlined_call_operand.vmem [shape: f32[1,512], index: 3, kind: input, shape index: {}]   ;;  %s3585_s4 = inlined_call_operand.vmem [shape: f32[128,1], index: 4, kind: input, shape index: {}]   ;;  %s3586_s5 = inlined_call_operand.<no memory space> [shape: f32[1,1], index: 5, kind: input, shape index: {}]   ;;  %s3587_s6 = inlined_call_operand.vmem [shape: f32[8,1], index: 6, kind: output, shape index: {}]  }
   0x1   :  { %v11_v0 = vstv %s3586_s5  ;;  %s2613_s25 = smov 0  }
   0x2   :  { %12 = vst [vmem:[#allocation5] sm:$0x1] %v11_v0 }
   0x3 LB: > { %s27_s5 = sadd.s32 1, %s2560_s24  ;;  %p2075_p0 = scmp.ge.s32.totalorder %s2564_s25, 1  ;;  %s2564_s25 = sphi %s2613_s25, %s18_s25   ;;  %s2560_s24 = sphi %s2611_s24, %s3634_s24   ;;  %s2556_s23 = sphi %s2609_s23, %s3633_s23  }
   0x4   : > { %p28_p1 = scmp.ge.s32.totalorder %s27_s5, 2  ;;  %p232_p2 = scmp.lt.s32.totalorder %s2564_s25, 3 }
   0x6   : > { %s3636_s5 = smov (%p28_p1, %s27_s5), 0  ;;  %p233_p3 = pnand %p2075_p0, %p232_p2 }
   0x8   : > { %236 = sbr.rel (%p233_p3) target bundleno = 2395 (0x95b), region = 44 }
   0xf   : > { %s2630_s26 = sshll.u32 %s2556_s23, 3  ;;  %p2078_p5 = scmp.ne.s32.totalorder %s2556_s23, 0 }
  0x10   : > { %p265_p4 = scmp.lt.s32.totalorder %s2630_s26, 15  ;;  %v2566_v1 = vmov (!%p2078_p5), 0.0  }
  0x11   : > { %281 = sbr.rel (%p2078_p5) target bundleno = 24 (0x18), region = 48  ;;  %282 = vst [vmem:[#allocation2] sm:$0xff] (!%p2078_p5), %v2566_v1  ;;  %283 = vst [vmem:[#allocation3] sm:$0xff] (!%p2078_p5), %v2566_v1 }
  0x12   : > { %s266_s27 = scalar_select %p265_p4, %s2630_s26, 15 }
  0x14   : > { %s2077_s28 = sshll.u32 %s266_s27, 2 }
  0x15   : > { %s2637_s7 = scalar_lea.vmem %s3581_s0, %s2077_s28 }
  0x18 PF: > { %v2282_v2 = vld [vmem:[%s3582_s1 + $0x4] ss:$16 sps:$4 sm:$0xff]   ;;  %v2284_v3 = vld [vmem:[%s3582_s1 + $0xc] ss:$16 sps:$4 sm:$0xff]   ;;  %v3588_v4 = vmov 0   ;;  %p1021_p6 = scmp.lt.s32.totalorder %s2630_s26, 12 }
  0x19   : > { %562 = vmatprep.mubr.bf16.mxu0 %v3588_v4  ;;  %635 = vmatprep.mubr.bf16.mxu1 %v3588_v4  ;;  %v2286_v5 = vld [vmem:[%s3582_s1] ss:$16 sps:$4 sm:$0xff]   ;;  %v2287_v6 = vld [vmem:[%s3582_s1 + $0x8] ss:$16 sps:$4 sm:$0xff]   ;;  %v2288_v7 = vld [vmem:[%s3582_s1 + $0x24] ss:$16 sps:$4 sm:$0xff]  }
  0x1a   : > { %530 = vmatprep.subr.bf16.mxu0 %v2282_v2  ;;  %603 = vmatprep.subr.bf16.mxu1 %v2284_v3  ;;  %v2290_v8 = vld [vmem:[%s3582_s1 + $0x2c] ss:$16 sps:$4 sm:$0xff]   ;;  %v2292_v9 = vld [vmem:[%s3582_s1 + $0x20] ss:$16 sps:$4 sm:$0xff]   ;;  %v2293_v10 = vld [vmem:[%s3582_s1 + $0x28] ss:$16 sps:$4 sm:$0xff]  }
  0x1b   : > { %531 = vmatpush1.bf16.msra.mxu0 %v2286_v5  ;;  %604 = vmatpush1.bf16.msra.mxu1 %v2287_v6  ;;  %v2294_v11 = vld [vmem:[%s3582_s1 + $0x44] ss:$16 sps:$4 sm:$0xff]   ;;  %v2296_v12 = vld [vmem:[%s3582_s1 + $0x4c] ss:$16 sps:$4 sm:$0xff]   ;;  %v2298_v13 = vld [vmem:[%s3582_s1 + $0x40] ss:$16 sps:$4 sm:$0xff]  }
  0x1c   : > { %532 = vmatprep.subr.bf16.mxu0 %v2288_v7  ;;  %605 = vmatprep.subr.bf16.mxu1 %v2290_v8  ;;  %v2299_v14 = vld [vmem:[%s3582_s1 + $0x48] ss:$16 sps:$4 sm:$0xff]   ;;  %v2300_v15 = vld [vmem:[%s3582_s1 + $0x64] ss:$16 sps:$4 sm:$0xff]   ;;  %v2302_v16 = vld [vmem:[%s3582_s1 + $0x6c] ss:$16 sps:$4 sm:$0xff]  }
  0x1d   : > { %v2304_v17 = vld [vmem:[%s3582_s1 + $0x60] ss:$16 sps:$4 sm:$0xff]   ;;  %v2305_v18 = vld [vmem:[%s3582_s1 + $0x68] ss:$16 sps:$4 sm:$0xff]   ;;  %v2306_v19 = vld [vmem:[%s3582_s1 + $0x84] ss:$16 sps:$4 sm:$0xff]  }
  0x1e   : > { %v2308_v20 = vld [vmem:[%s3582_s1 + $0x8c] ss:$16 sps:$4 sm:$0xff]   ;;  %v2310_v21 = vld [vmem:[%s3582_s1 + $0x80] ss:$16 sps:$4 sm:$0xff]   ;;  %v2311_v22 = vld [vmem:[%s3582_s1 + $0x88] ss:$16 sps:$4 sm:$0xff]  }
  0x1f   : > { %533 = vmatpush1.bf16.msra.mxu0 %v2292_v9  ;;  %606 = vmatpush1.bf16.msra.mxu1 %v2293_v10  ;;  %v2312_v23 = vld [vmem:[%s3582_s1 + $0xa4] ss:$16 sps:$4 sm:$0xff]   ;;  %v2314_v24 = vld [vmem:[%s3582_s1 + $0xac] ss:$16 sps:$4 sm:$0xff]   ;;  %v2316_v25 = vld [vmem:[%s3582_s1 + $0xa0] ss:$16 sps:$4 sm:$0xff]   ;;  %v326_v10 = vlaneseq }
  0x20   : > { %534 = vmatprep.subr.bf16.mxu0 %v2294_v11  ;;  %607 = vmatprep.subr.bf16.mxu1 %v2296_v12  ;;  %v2317_v26 = vld [vmem:[%s3582_s1 + $0xa8] ss:$16 sps:$4 sm:$0xff]   ;;  %v2318_v27 = vld [vmem:[%s3582_s1 + $0xc4] ss:$16 sps:$4 sm:$0xff]   ;;  %v2320_v28 = vld [vmem:[%s3582_s1 + $0xcc] ss:$16 sps:$4 sm:$0xff]  }
  0x21   : > { %v2322_v29 = vld [vmem:[%s3582_s1 + $0xc0] ss:$16 sps:$4 sm:$0xff]   ;;  %v2323_v30 = vld [vmem:[%s3582_s1 + $0xc8] ss:$16 sps:$4 sm:$0xff]   ;;  %v2324_v31 = vld [vmem:[%s3582_s1 + $0xe4] ss:$16 sps:$4 sm:$0xff]  }
  0x22   : > { %v2326_v32 = vld [vmem:[%s3582_s1 + $0xec] ss:$16 sps:$4 sm:$0xff]   ;;  %v2328_v33 = vld [vmem:[%s3582_s1 + $0xe0] ss:$16 sps:$4 sm:$0xff]   ;;  %v2329_v34 = vld [vmem:[%s3582_s1 + $0xe8] ss:$16 sps:$4 sm:$0xff]  }
  0x23   : > { %535 = vmatpush1.bf16.msra.mxu0 %v2298_v13  ;;  %608 = vmatpush1.bf16.msra.mxu1 %v2299_v14  ;;  %v2741_v35 = vld [vmem:[%s3583_s2 + $0x4] ss:$16 sps:$4 sm:$0xff]   ;;  %v2746_v36 = vld [vmem:[%s3583_s2 + $0xc] ss:$16 sps:$4 sm:$0xff]   ;;  %v2752_v38 = vld [vmem:[%s3583_s2] ss:$16 sps:$4 sm:$0xff]  }
  0x24   : > { %536 = vmatprep.subr.bf16.mxu0 %v2300_v15  ;;  %609 = vmatprep.subr.bf16.mxu1 %v2302_v16  ;;  %v2330_v37 = vld [vmem:[%s2637_s7] sm:$0xff]   ;;  %v2757_v39 = vld [vmem:[%s3583_s2 + $0x8] ss:$16 sps:$4 sm:$0xff]   ;;  %v2769_v41 = vld [vmem:[%s3583_s2 + $0x2c] ss:$16 sps:$4 sm:$0xff]   ;;  %v327_v11 = vshrl.u32 %v326_v10, 7 }
  0x25   : > { %v2764_v40 = vld [vmem:[%s3583_s2 + $0x24] ss:$16 sps:$4 sm:$0xff]   ;;  %v2774_v42 = vld [vmem:[%s3583_s2 + $0x20] ss:$16 sps:$4 sm:$0xff]   ;;  %v2781_v43 = vld [vmem:[%s3583_s2 + $0x28] ss:$16 sps:$4 sm:$0xff]  }
  0x26   : > { %v2788_v44 = vld [vmem:[%s3583_s2 + $0x44] ss:$16 sps:$4 sm:$0xff]   ;;  %v2793_v45 = vld [vmem:[%s3583_s2 + $0x4c] ss:$16 sps:$4 sm:$0xff]   ;;  %v2801_v47 = vld [vmem:[%s3583_s2 + $0x40] ss:$16 sps:$4 sm:$0xff]  }
  0x27   : > { %537 = vmatpush1.bf16.msra.mxu0 %v2304_v17  ;;  %610 = vmatpush1.bf16.msra.mxu1 %v2305_v18  ;;  %v2343_v46 = vld [vmem:[%s2637_s7 + $0x8] sm:$0xff]   ;;  %v2813_v49 = vld [vmem:[%s3583_s2 + $0x64] ss:$16 sps:$4 sm:$0xff]   ;;  %v2825_v51 = vld [vmem:[%s3583_s2 + $0x60] ss:$16 sps:$4 sm:$0xff]   ;;  %v336_v12 = vsub.s32 2, %v327_v11 }
  0x28   : > { %538 = vmatprep.subr.bf16.mxu0 %v2306_v19  ;;  %611 = vmatprep.subr.bf16.mxu1 %v2308_v20  ;;  %v2806_v48 = vld [vmem:[%s3583_s2 + $0x48] ss:$16 sps:$4 sm:$0xff]   ;;  %v2820_v50 = vld [vmem:[%s3583_s2 + $0x6c] ss:$16 sps:$4 sm:$0xff]   ;;  %v2837_v53 = vld [vmem:[%s3583_s2 + $0x84] ss:$16 sps:$4 sm:$0xff]  }
  0x29   : > { %v2830_v52 = vld [vmem:[%s3583_s2 + $0x68] ss:$16 sps:$4 sm:$0xff]   ;;  %v2844_v54 = vld [vmem:[%s3583_s2 + $0x8c] ss:$16 sps:$4 sm:$0xff]   ;;  %v2356_v55 = vld [vmem:[%s2637_s7 + $0x10] sm:$0xff]   ;;  %v340_v13 = vsub.s32 3, %v327_v11 }
  0x2a   : > { %v2854_v56 = vld [vmem:[%s3583_s2 + $0x80] ss:$16 sps:$4 sm:$0xff]   ;;  %v2859_v57 = vld [vmem:[%s3583_s2 + $0x88] ss:$16 sps:$4 sm:$0xff]   ;;  %v2866_v58 = vld [vmem:[%s3583_s2 + $0xa4] ss:$16 sps:$4 sm:$0xff]  }
  0x2b   : > { %539 = vmatpush1.bf16.msra.mxu0 %v2310_v21  ;;  %612 = vmatpush1.bf16.msra.mxu1 %v2311_v22  ;;  %v2871_v59 = vld [vmem:[%s3583_s2 + $0xac] ss:$16 sps:$4 sm:$0xff]   ;;  %v2878_v60 = vld [vmem:[%s3583_s2 + $0xa0] ss:$16 sps:$4 sm:$0xff]   ;;  %v2883_v61 = vld [vmem:[%s3583_s2 + $0xa8] ss:$16 sps:$4 sm:$0xff]  }
  0x2c   : > { %540 = vmatprep.subr.bf16.mxu0 %v2312_v23  ;;  %613 = vmatprep.subr.bf16.mxu1 %v2314_v24  ;;  %v2890_v62 = vld [vmem:[%s3583_s2 + $0xc4] ss:$16 sps:$4 sm:$0xff]   ;;  %v2895_v63 = vld [vmem:[%s3583_s2 + $0xcc] ss:$16 sps:$4 sm:$0xff]   ;;  %v2905_v1 = vld [vmem:[%s3583_s2 + $0xc0] ss:$16 sps:$4 sm:$0xff]  }
  0x2d   : > { %v2369_v0 = vld [vmem:[%s2637_s7 + $0x18] sm:$0xff]   ;;  %v2917_v3 = vld [vmem:[%s3583_s2 + $0xe4] ss:$16 sps:$4 sm:$0xff]   ;;  %v2929_v6 = vld [vmem:[%s3583_s2 + $0xe0] ss:$16 sps:$4 sm:$0xff]   ;;  %v328_v14 = vsub.s32 0, %v327_v11 }
  0x2e   : > { %v2910_v2 = vld [vmem:[%s3583_s2 + $0xc8] ss:$16 sps:$4 sm:$0xff]   ;;  %v2922_v5 = vld [vmem:[%s3583_s2 + $0xec] ss:$16 sps:$4 sm:$0xff]   ;;  %v2936_v8 = vld [vmem:[#allocation2] sm:$0xff]  ;;  %v332_v16 = vsub.s32 1, %v327_v11 }
  0x2f   : > { %541 = vmatpush1.bf16.msra.mxu0 %v2316_v25  ;;  %614 = vmatpush1.bf16.msra.mxu1 %v2317_v26  ;;  %v2934_v7 = vld [vmem:[%s3583_s2 + $0xe8] ss:$16 sps:$4 sm:$0xff]   ;;  %v749_v9 = vpack.c.bf16 %v2936_v8, %v2936_v8  ;;  %v324_v15 = vld [vmem:[%s3584_s3] sm:$0xf]  ;;  %s1022_s27 = scalar_select %p1021_p6, 1, 0 }
  0x30   : > { %542 = vmatprep.subr.bf16.mxu0 %v2318_v27  ;;  %615 = vmatprep.subr.bf16.mxu1 %v2320_v28  ;;  %v2985_v17 = vrot.slane %v324_v15, %v336_v12  ;;  %v2991_v20 = vrot.slane %v324_v15, %v340_v13  ;;  %v329_v21 = vrot.slane %v324_v15, %v328_v14  ;;  %s1145_s28 = sadd.s32 1, %s2630_s26  ;;  %s1270_s30 = sadd.s32 2, %s2630_s26 }
  0x31   : > { %v333_v24 = vrot.slane %v324_v15, %v332_v16  ;;  %p1146_p7 = scmp.lt.s32.totalorder %s1145_s28, 12  ;;  %p1271_p8 = scmp.lt.s32.totalorder %s1270_s30, 12 }
  0x32   : > { %s1395_s9 = sadd.s32 3, %s2630_s26  ;;  %s1520_s18 = sadd.s32 4, %s2630_s26 }
  0x33   : > { %543 = vmatpush1.bf16.msra.mxu0 %v2322_v29  ;;  %616 = vmatpush1.bf16.msra.mxu1 %v2323_v30  ;;  %s1147_s29 = scalar_select %p1146_p7, 1, 0 }
  0x34   : > { %544 = vmatprep.subr.bf16.mxu0 %v2324_v31  ;;  %617 = vmatprep.subr.bf16.mxu1 %v2326_v32  ;;  %s1272_s8 = scalar_select %p1271_p8, 1, 0 }
  0x35   : > { %p1396_p9 = scmp.lt.s32.totalorder %s1395_s9, 12  ;;  %p1521_p10 = scmp.lt.s32.totalorder %s1520_s18, 12 }
  0x36   : > { %s1645_s16 = sadd.s32 5, %s2630_s26  ;;  %s1770_s18 = sadd.s32 6, %s2630_s26 }
  0x37   : > { %545 = vmatpush1.bf16.msra.mxu0 %v2328_v33  ;;  %618 = vmatpush1.bf16.msra.mxu1 %v2329_v34  ;;  %s1397_s10 = scalar_select %p1396_p9, 1, 0 }
  0x38   : > { %910 = vmatprep.subr.bf16.mxu0 %v2741_v35  ;;  %951 = vmatprep.subr.bf16.mxu1 %v2746_v36  ;;  %s1522_s19 = scalar_select %p1521_p10, 1, 0 }
  0x39   : > { %p1646_p11 = scmp.lt.s32.totalorder %s1645_s16, 12  ;;  %p1771_p12 = scmp.lt.s32.totalorder %s1770_s18, 12 }
  0x3a   : > { %563 = vmatmul.mubr.bf16.vlgmr.msra.gmra.mrb[0].mxu0 %v2330_v37  ;;  %636 = vmatmul.mubr.bf16.vlgmr.msra.gmra.mrb[0].mxu1 %v2330_v37  ;;  %s1895_s20 = sadd.s32 7, %s2630_s26  ;;  %p2172_p0 = scmp.ne.s32.totalorder %s2556_s23, 1 }
  0x3b   : > { %911 = vmatpush1.bf16.msra.mxu0 %v2752_v38  ;;  %952 = vmatpush1.bf16.msra.mxu1 %v2757_v39  ;;  %s1647_s17 = scalar_select %p1646_p11, 1, 0 }
  0x3c   : > { %912 = vmatprep.subr.bf16.mxu0 %v2764_v40  ;;  %953 = vmatprep.subr.bf16.mxu1 %v2769_v41  ;;  %p1896_p13 = scmp.lt.s32.totalorder %s1895_s20, 12  ;;  %vm2569_vm8 = vmmov (!%p2172_p0), 0   ;;  %vm2001_vm9 = vcmask (!%p2172_p0), 7168  }
  0x3d   : > { %572 = vmatprep.mubr.bf16.mxu0 %v3588_v4  ;;  %645 = vmatprep.mubr.bf16.mxu1 %v3588_v4 }
  0x3e   : > { %s1897_s21 = scalar_select %p1896_p13, 1, 0 }
  0x3f   : > { %913 = vmatpush1.bf16.msra.mxu0 %v2774_v42  ;;  %954 = vmatpush1.bf16.msra.mxu1 %v2781_v43 }
  0x40   : > { %914 = vmatprep.subr.bf16.mxu0 %v2788_v44  ;;  %955 = vmatprep.subr.bf16.mxu1 %v2793_v45 }
  0x42   : > { %573 = vmatmul.mubr.bf16.gmra.mrb[4].mxu0 %v2343_v46  ;;  %646 = vmatmul.mubr.bf16.gmra.mrb[4].mxu1 %v2343_v46 }
  0x43   : > { %915 = vmatpush1.bf16.msra.mxu0 %v2801_v47  ;;  %956 = vmatpush1.bf16.msra.mxu1 %v2806_v48 }
  0x44   : > { %916 = vmatprep.subr.bf16.mxu0 %v2813_v49  ;;  %957 = vmatprep.subr.bf16.mxu1 %v2820_v50 }
  0x45   : > { %582 = vmatprep.mubr.bf16.mxu0 %v3588_v4  ;;  %655 = vmatprep.mubr.bf16.mxu1 %v3588_v4 }
  0x47   : > { %917 = vmatpush1.bf16.msra.mxu0 %v2825_v51  ;;  %958 = vmatpush1.bf16.msra.mxu1 %v2830_v52 }
  0x48   : > { %918 = vmatprep.subr.bf16.mxu0 %v2837_v53  ;;  %959 = vmatprep.subr.bf16.mxu1 %v2844_v54 }
  0x4a   : > { %583 = vmatmul.mubr.bf16.gmra.mrb[8].mxu0 %v2356_v55  ;;  %656 = vmatmul.mubr.bf16.gmra.mrb[8].mxu1 %v2356_v55 }
  0x4b   : > { %919 = vmatpush1.bf16.msra.mxu0 %v2854_v56  ;;  %960 = vmatpush1.bf16.msra.mxu1 %v2859_v57 }
  0x4c   : > { %920 = vmatprep.subr.bf16.mxu0 %v2866_v58  ;;  %961 = vmatprep.subr.bf16.mxu1 %v2871_v59 }
  0x4d   : > { %592 = vmatprep.mubr.bf16.mxu0 %v3588_v4  ;;  %665 = vmatprep.mubr.bf16.mxu1 %v3588_v4 }
  0x4f   : > { %921 = vmatpush1.bf16.msra.mxu0 %v2878_v60  ;;  %962 = vmatpush1.bf16.msra.mxu1 %v2883_v61 }
  0x50   : > { %922 = vmatprep.subr.bf16.mxu0 %v2890_v62  ;;  %963 = vmatprep.subr.bf16.mxu1 %v2895_v63 }
  0x52   : > { %593 = vmatmul.mubr.bf16.gmra.mrb[12].mxu0 %v2369_v0  ;;  %666 = vmatmul.mubr.bf16.gmra.mrb[12].mxu1 %v2369_v0 }
  0x53   : > { %923 = vmatpush1.bf16.msra.mxu0 %v2905_v1  ;;  %964 = vmatpush1.bf16.msra.mxu1 %v2910_v2 }
  0x54   : > { %924 = vmatprep.subr.bf16.mxu0 %v2917_v3  ;;  %965 = vmatprep.subr.bf16.mxu1 %v2922_v5 }
  0x55   : > { %942 = vmatprep.mubr.bf16.mxu0 %v3588_v4  ;;  %983 = vmatprep.mubr.bf16.mxu1 %v3588_v4 }
  0x57   : > { %925 = vmatpush1.bf16.msra.mxu0 %v2929_v6  ;;  %966 = vmatpush1.bf16.msra.mxu1 %v2934_v7 }
  0x58   : > { %1035 = vmatprep.subr.bf16.mxu0 %v2741_v35  ;;  %1076 = vmatprep.subr.bf16.mxu1 %v2746_v36 }
  0x5a   : > { %943 = vmatmul.mubr.bf16.vlgmr.msra.gmra.mrb[16].mxu0 %v749_v9  ;;  %984 = vmatmul.mubr.bf16.vlgmr.msra.gmra.mrb[16].mxu1 %v749_v9 }
  0x5b   : > { %1036 = vmatpush1.bf16.msra.mxu0 %v2752_v38  ;;  %1077 = vmatpush1.bf16.msra.mxu1 %v2757_v39 }
  0x5c   : > { %1037 = vmatprep.subr.bf16.mxu0 %v2764_v40  ;;  %1078 = vmatprep.subr.bf16.mxu1 %v2769_v41 }
  0x5d   : > { %1067 = vmatprep.mubr.bf16.mxu0 %v3588_v4  ;;  %1108 = vmatprep.mubr.bf16.mxu1 %v3588_v4 }
  0x5f   : > { %1038 = vmatpush1.bf16.msra.mxu0 %v2774_v42  ;;  %1079 = vmatpush1.bf16.msra.mxu1 %v2781_v43 }
  0x60   : > { %1039 = vmatprep.subr.bf16.mxu0 %v2788_v44  ;;  %1080 = vmatprep.subr.bf16.mxu1 %v2793_v45 }
  0x63   : > { %1040 = vmatpush1.bf16.msra.mxu0 %v2801_v47  ;;  %1081 = vmatpush1.bf16.msra.mxu1 %v2806_v48 }
  0x64   : > { %1041 = vmatprep.subr.bf16.mxu0 %v2813_v49  ;;  %1082 = vmatprep.subr.bf16.mxu1 %v2820_v50 }
  0x67   : > { %1042 = vmatpush1.bf16.msra.mxu0 %v2825_v51  ;;  %1083 = vmatpush1.bf16.msra.mxu1 %v2830_v52 }
  0x68   : > { %1043 = vmatprep.subr.bf16.mxu0 %v2837_v53  ;;  %1084 = vmatprep.subr.bf16.mxu1 %v2844_v54 }
  0x6b   : > { %1044 = vmatpush1.bf16.msra.mxu0 %v2854_v56  ;;  %1085 = vmatpush1.bf16.msra.mxu1 %v2859_v57 }
  0x6c   : > { %1045 = vmatprep.subr.bf16.mxu0 %v2866_v58  ;;  %1086 = vmatprep.subr.bf16.mxu1 %v2871_v59 }
  0x6f   : > { %1046 = vmatpush1.bf16.msra.mxu0 %v2878_v60  ;;  %1087 = vmatpush1.bf16.msra.mxu1 %v2883_v61 }
  0x70   : > { %1047 = vmatprep.subr.bf16.mxu0 %v2890_v62  ;;  %1088 = vmatprep.subr.bf16.mxu1 %v2895_v63 }
  0x73   : > { %1048 = vmatpush1.bf16.msra.mxu0 %v2905_v1  ;;  %1089 = vmatpush1.bf16.msra.mxu1 %v2910_v2 }
  0x74   : > { %1049 = vmatprep.subr.bf16.mxu0 %v2917_v3  ;;  %1090 = vmatprep.subr.bf16.mxu1 %v2922_v5 }
  0x77   : > { %1050 = vmatpush1.bf16.msra.mxu0 %v2929_v6  ;;  %1091 = vmatpush1.bf16.msra.mxu1 %v2934_v7 }
  0x78   : > { %1160 = vmatprep.subr.bf16.mxu0 %v2741_v35  ;;  %1201 = vmatprep.subr.bf16.mxu1 %v2746_v36 }
 0x10d   : > { %v2987_v18 = vpop.f32.mrb[0].mxu0  ;;  %v2989_v19 = vpop.f32.mrb[0].mxu1 }
 0x10e   : > { %v566_v22 = vpop.f32.mrb[1].mxu0  ;;  %v639_v23 = vpop.f32.mrb[1].mxu1 }
 0x10f   : > { %v568_v25 = vpop.f32.mrb[2].mxu0  ;;  %v641_v26 = vpop.f32.mrb[2].mxu1 }
 0x110   : > { %v2993_v27 = vadd.f32 %v568_v25, %v329_v21  ;;  %v570_v28 = vpop.f32.mrb[3].mxu0  ;;  %v2996_v29 = vadd.f32 %v641_v26, %v2985_v17  ;;  %v643_v30 = vpop.f32.mrb[3].mxu1 }
 0x111   : > { %v2998_v31 = vadd.f32 %v570_v28, %v333_v24  ;;  %v3001_v32 = vadd.f32 %v643_v30, %v2991_v20 }
 0x115   : > { %v574_v33 = vpop.f32.mrb[4].mxu0  ;;  %v647_v34 = vpop.f32.mrb[4].mxu1 }
 0x116   : > { %v3003_v37 = vadd.f32 %v574_v33, %v329_v21  ;;  %v576_v46 = vpop.f32.mrb[5].mxu0  ;;  %v3006_v55 = vadd.f32 %v647_v34, %v2985_v17  ;;  %v649_v0 = vpop.f32.mrb[5].mxu1 }
 0x117   : > { %v3008_v9 = vadd.f32 %v576_v46, %v333_v24  ;;  %v578_v10 = vpop.f32.mrb[6].mxu0  ;;  %v3011_v11 = vadd.f32 %v649_v0, %v2991_v20  ;;  %v651_v12 = vpop.f32.mrb[6].mxu1 }
 0x118   : > { %v3013_v13 = vadd.f32 %v578_v10, %v329_v21  ;;  %v580_v14 = vpop.f32.mrb[7].mxu0  ;;  %v3016_v15 = vadd.f32 %v651_v12, %v2985_v17  ;;  %v653_v16 = vpop.f32.mrb[7].mxu1 }
 0x119   : > { %3590 = vst [vmem:[#allocation6_spill] sm:$0xff] %v3011_v11  ;;  %v3018_v25 = vadd.f32 %v580_v14, %v333_v24  ;;  %v3021_v26 = vadd.f32 %v653_v16, %v2991_v20 }
 0x11a   : > { %3591 = vst [vmem:[#allocation7_spill] sm:$0xff] %v3013_v13  ;;  %3592 = vst [vmem:[#allocation8_spill] sm:$0xff] %v3016_v15 }
 0x11b   : > { %3593 = vst [vmem:[#allocation9_spill] sm:$0xff] %v3018_v25  ;;  %3594 = vst [vmem:[#allocation10_spill] sm:$0xff] %v3021_v26 }
 0x11d   : > { %v584_v28 = vpop.f32.mrb[8].mxu0  ;;  %v657_v30 = vpop.f32.mrb[8].mxu1 }
 0x11e   : > { %v3023_v33 = vadd.f32 %v584_v28, %v329_v21  ;;  %v586_v34 = vpop.f32.mrb[9].mxu0  ;;  %v3026_v46 = vadd.f32 %v657_v30, %v2985_v17  ;;  %v659_v0 = vpop.f32.mrb[9].mxu1 }
 0x11f   : > { %v3028_v10 = vadd.f32 %v586_v34, %v333_v24  ;;  %v588_v4 = vpop.f32.mrb[10].mxu0  ;;  %v3031_v12 = vadd.f32 %v659_v0, %v2991_v20  ;;  %v661_v14 = vpop.f32.mrb[10].mxu1 }
 0x120   : > { %3595 = vst [vmem:[#allocation11_spill] sm:$0xff] %v3023_v33  ;;  %3596 = vst [vmem:[#allocation12_spill] sm:$0xff] %v3026_v46  ;;  %v3033_v25 = vadd.f32 %v588_v4, %v329_v21  ;;  %v590_v16 = vpop.f32.mrb[11].mxu0  ;;  %v3036_v26 = vadd.f32 %v661_v14, %v2985_v17  ;;  %v663_v28 = vpop.f32.mrb[11].mxu1 }
 0x121   : > { %3597 = vst [vmem:[#allocation13_spill] sm:$0xff] %v3028_v10  ;;  %3598 = vst [vmem:[#allocation14_spill] sm:$0xff] %v3031_v12  ;;  %v3038_v33 = vadd.f32 %v590_v16, %v333_v24  ;;  %v3041_v30 = vadd.f32 %v663_v28, %v2991_v20 }
 0x122   : > { %3599 = vst [vmem:[#allocation15_spill] sm:$0xff] %v3033_v25  ;;  %3600 = vst [vmem:[#allocation16_spill] sm:$0xff] %v3036_v26 }
 0x123   : > { %3601 = vst [vmem:[#allocation17_spill] sm:$0xff] %v3038_v33  ;;  %3602 = vst [vmem:[#allocation18_spill] sm:$0xff] %v3041_v30 }
 0x125   : > { %v594_v46 = vpop.f32.mrb[12].mxu0  ;;  %v667_v34 = vpop.f32.mrb[12].mxu1 }
 0x126   : > { %v3043_v10 = vadd.f32 %v594_v46, %v329_v21  ;;  %v596_v15 = vpop.f32.mrb[13].mxu0  ;;  %v3046_v0 = vadd.f32 %v667_v34, %v2985_v17  ;;  %v669_v4 = vpop.f32.mrb[13].mxu1 }
 0x127   : > { %v3048_v25 = vadd.f32 %v596_v15, %v333_v24  ;;  %v598_v12 = vpop.f32.mrb[14].mxu0  ;;  %v3051_v14 = vadd.f32 %v669_v4, %v2991_v20  ;;  %v671_v16 = vpop.f32.mrb[14].mxu1  ;;  %v565_v15 = vadd.f32 %v2987_v18, %v329_v21  ;;  %v567_v4 = vadd.f32 %v566_v22, %v333_v24 }
 0x128   : > { %3603 = vst [vmem:[#allocation19_spill] sm:$0xff] %v3043_v10  ;;  %3604 = vst [vmem:[#allocation20_spill] sm:$0xff] %v3046_v0  ;;  %v3053_v33 = vadd.f32 %v598_v12, %v329_v21  ;;  %v600_v28 = vpop.f32.mrb[15].mxu0  ;;  %v3056_v30 = vadd.f32 %v671_v16, %v2985_v17  ;;  %v673_v46 = vpop.f32.mrb[15].mxu1 }
 0x129   : > { %3605 = vst [vmem:[#allocation21_spill] sm:$0xff] %v3048_v25  ;;  %3606 = vst [vmem:[#allocation22_spill] sm:$0xff] %v3051_v14  ;;  %v3058_v10 = vadd.f32 %v600_v28, %v333_v24  ;;  %v3061_v34 = vadd.f32 %v673_v46, %v2991_v20  ;;  %v638_v25 = vadd.f32 %v2989_v19, %v2985_v17 }
 0x12a   : > { %3607 = vst [vmem:[#allocation23_spill] sm:$0xff] %v3053_v33  ;;  %3608 = vst [vmem:[#allocation24_spill] sm:$0xff] %v3056_v30  ;;  %v640_v14 = vadd.f32 %v639_v23, %v2991_v20 }
 0x12b   : > { %3609 = vst [vmem:[#allocation25_spill] sm:$0xff] %v3058_v10  ;;  %3610 = vst [vmem:[#allocation26_spill] sm:$0xff] %v3061_v34 }
 0x12d   : > { %v944_v12 = vpop.f32.mrb[16].mxu0  ;;  %v985_v33 = vpop.f32.mrb[16].mxu1 }
 0x12e   : > { %v992_v0 = vadd.f32 %v944_v12, %v565_v15  ;;  %v994_v26 = vadd.f32 %v985_v33, %v638_v25  ;;  %v946_v16 = vpop.f32.mrb[17].mxu0  ;;  %v987_v30 = vpop.f32.mrb[17].mxu1  ;;  %v741_v25 = vld [vmem:[#allocation3] sm:$0xff] }
 0x12f   : > { %v993_v13 = vadd.f32 %v946_v16, %v567_v4  ;;  %v995_v28 = vadd.f32 %v987_v30, %v640_v14  ;;  %v948_v10 = vpop.f32.mrb[18].mxu0  ;;  %v989_v11 = vpop.f32.mrb[18].mxu1 }
 0x130   : > { %v2147_v46 = vmul.f32 -1.442695, %v992_v0  ;;  %v949_v34 = vpop.f32.mrb[19].mxu0  ;;  %v990_v18 = vpop.f32.mrb[19].mxu1  ;;  %v1023_v10 = vstv %s1022_s27 }
 0x131   : > { %v2148_v21 = vmul.f32 -1.442695, %v993_v13  ;;  %v2149_v17 = vmul.f32 -1.442695, %v995_v28  ;;  %vm1024_vm0 = vcmp.eq.s32.totalorder %v1023_v10, 1 }
 0x132   : > { %2382 = vpow2.f32 %v2147_v46  ;;  %v3611_v46 = vmov 0  }
 0x133   : > { %2384 = vpow2.f32 %v2148_v21 }
 0x134   : > { %2386 = vpow2.f32 %v2149_v17 }
 0x135   : > { %2388 = vtanh.f32 %v994_v26 }
 0x13c   : > { %v2383_v19 = vpop.eup %2382 }
 0x13d   : > { %v2385_v20 = vpop.eup %2384  ;;  %v999_v22 = vadd.f32 1.0, %v2383_v19 }
 0x13e   : > { %v1005_v23 = vadd.f32 1.0, %v2385_v20  ;;  %v2387_v24 = vpop.eup %2386 }
 0x13f   : > { %2390 = vrcp.f32 %v999_v22  ;;  %v2389_v11 = vpop.eup %2388  ;;  %v1012_v0 = vadd.f32 1.0, %v2387_v24 }
 0x140   : > { %2392 = vrcp.f32 %v1005_v23 }
 0x141   : > { %2394 = vrcp.f32 %v1012_v0 }
 0x149   : > { %v2391_v33 = vpop.eup %2390 }
 0x14a   : > { %v2393_v30 = vpop.eup %2392  ;;  %v1016_v13 = vmul.f32 %v2391_v33, %v2389_v11 }
 0x14b   : > { %v1015_v14 = vmul.f32 %v2393_v30, %v741_v25  ;;  %v2395_v26 = vpop.eup %2394 }
 0x14d   : > { %v1017_v34 = vadd.f32 %v1016_v13, %v1015_v14 }
 0x14f   : > { %2396 = vtanh.f32 %v1017_v34  ;;  %v3068_v15 = vsel %vm1024_vm0, %v1017_v34, %v741_v25 }
 0x159   : > { %v2397_v4 = vpop.eup %2396 }
 0x15a   : > { %v1019_v12 = vmul.f32 %v2397_v4, %v2395_v26  ;;  %v1148_v26 = vstv %s1147_s29 }
 0x15b   : > { %vm1149_vm1 = vcmp.eq.s32.totalorder %v1148_v26, 1 }
 0x15c   : > { %v3071_v16 = vsel %vm1024_vm0, %v1019_v12, %v2936_v8 }
 0x15d   : > { %v1034_v28 = vpack.c.bf16 %v3071_v16, %v3071_v16 }
 0x15f   : > { %1068 = vmatmul.mubr.bf16.vlgmr.msra.gmra.mrb[20].mxu0 %v1034_v28  ;;  %1109 = vmatmul.mubr.bf16.vlgmr.msra.gmra.mrb[20].mxu1 %v1034_v28 }
 0x160   : > { %1161 = vmatpush1.bf16.msra.mxu0 %v2752_v38  ;;  %1202 = vmatpush1.bf16.msra.mxu1 %v2757_v39 }
 0x161   : > { %1162 = vmatprep.subr.bf16.mxu0 %v2764_v40  ;;  %1203 = vmatprep.subr.bf16.mxu1 %v2769_v41 }
 0x162   : > { %1192 = vmatprep.mubr.bf16.mxu0 %v3611_v46  ;;  %1233 = vmatprep.mubr.bf16.mxu1 %v3611_v46 }
 0x164   : > { %1163 = vmatpush1.bf16.msra.mxu0 %v2774_v42  ;;  %1204 = vmatpush1.bf16.msra.mxu1 %v2781_v43 }
 0x165   : > { %1164 = vmatprep.subr.bf16.mxu0 %v2788_v44  ;;  %1205 = vmatprep.subr.bf16.mxu1 %v2793_v45 }
 0x168   : > { %1165 = vmatpush1.bf16.msra.mxu0 %v2801_v47  ;;  %1206 = vmatpush1.bf16.msra.mxu1 %v2806_v48 }
 0x169   : > { %1166 = vmatprep.subr.bf16.mxu0 %v2813_v49  ;;  %1207 = vmatprep.subr.bf16.mxu1 %v2820_v50 }
 0x16c   : > { %1167 = vmatpush1.bf16.msra.mxu0 %v2825_v51  ;;  %1208 = vmatpush1.bf16.msra.mxu1 %v2830_v52 }
 0x16d   : > { %1168 = vmatprep.subr.bf16.mxu0 %v2837_v53  ;;  %1209 = vmatprep.subr.bf16.mxu1 %v2844_v54 }
 0x170   : > { %1169 = vmatpush1.bf16.msra.mxu0 %v2854_v56  ;;  %1210 = vmatpush1.bf16.msra.mxu1 %v2859_v57 }
 0x171   : > { %1170 = vmatprep.subr.bf16.mxu0 %v2866_v58  ;;  %1211 = vmatprep.subr.bf16.mxu1 %v2871_v59 }
 0x174   : > { %1171 = vmatpush1.bf16.msra.mxu0 %v2878_v60  ;;  %1212 = vmatpush1.bf16.msra.mxu1 %v2883_v61 }
 0x175   : > { %1172 = vmatprep.subr.bf16.mxu0 %v2890_v62  ;;  %1213 = vmatprep.subr.bf16.mxu1 %v2895_v63 }
 0x178   : > { %1173 = vmatpush1.bf16.msra.mxu0 %v2905_v1  ;;  %1214 = vmatpush1.bf16.msra.mxu1 %v2910_v2 }
 0x179   : > { %1174 = vmatprep.subr.bf16.mxu0 %v2917_v3  ;;  %1215 = vmatprep.subr.bf16.mxu1 %v2922_v5 }
 0x17c   : > { %1175 = vmatpush1.bf16.msra.mxu0 %v2929_v6  ;;  %1216 = vmatpush1.bf16.msra.mxu1 %v2934_v7 }
 0x17d   : > { %1285 = vmatprep.subr.bf16.mxu0 %v2741_v35  ;;  %1326 = vmatprep.subr.bf16.mxu1 %v2746_v36 }
 0x232   : > { %v1069_v8 = vpop.f32.mrb[20].mxu0  ;;  %v1110_v18 = vpop.f32.mrb[20].mxu1 }
 0x233   : > { %v1117_v21 = vadd.f32 %v1069_v8, %v2993_v27  ;;  %v1119_v17 = vadd.f32 %v1110_v18, %v2996_v29  ;;  %v1071_v19 = vpop.f32.mrb[21].mxu0  ;;  %v1112_v20 = vpop.f32.mrb[21].mxu1 }
 0x234   : > { %v1118_v22 = vadd.f32 %v1071_v19, %v2998_v31  ;;  %v1120_v23 = vadd.f32 %v1112_v20, %v3001_v32  ;;  %v1073_v24 = vpop.f32.mrb[22].mxu0  ;;  %v1114_v11 = vpop.f32.mrb[22].mxu1 }
 0x235   : > { %v2151_v25 = vmul.f32 -1.442695, %v1117_v21  ;;  %v1074_v33 = vpop.f32.mrb[23].mxu0  ;;  %v1115_v10 = vpop.f32.mrb[23].mxu1 }
 0x236   : > { %v2152_v30 = vmul.f32 -1.442695, %v1118_v22  ;;  %v2153_v13 = vmul.f32 -1.442695, %v1120_v23 }
 0x237   : > { %2398 = vpow2.f32 %v2151_v25 }
 0x238   : > { %2400 = vpow2.f32 %v2152_v30  ;;  %v3612_v30 = vld [vmem:[#allocation6_spill] sm:$0xff] }
 0x239   : > { %2402 = vpow2.f32 %v2153_v13 }
 0x23a   : > { %2404 = vtanh.f32 %v1119_v17 }
 0x241   : > { %v2399_v0 = vpop.eup %2398 }
 0x242   : > { %v2401_v27 = vpop.eup %2400  ;;  %v1124_v14 = vadd.f32 1.0, %v2399_v0 }
 0x243   : > { %v1130_v29 = vadd.f32 1.0, %v2401_v27  ;;  %v2403_v31 = vpop.eup %2402 }
 0x244   : > { %2406 = vrcp.f32 %v1124_v14  ;;  %v2405_v32 = vpop.eup %2404  ;;  %v1137_v28 = vadd.f32 1.0, %v2403_v31 }
 0x245   : > { %2408 = vrcp.f32 %v1130_v29 }
 0x246   : > { %2410 = vrcp.f32 %v1137_v28 }
 0x24e   : > { %v2407_v34 = vpop.eup %2406 }
 0x24f   : > { %v2409_v4 = vpop.eup %2408  ;;  %v1141_v12 = vmul.f32 %v2407_v34, %v2405_v32 }
 0x250   : > { %v1140_v8 = vmul.f32 %v2409_v4, %v3068_v15  ;;  %v2411_v17 = vpop.eup %2410 }
 0x252   : > { %v1142_v18 = vadd.f32 %v1141_v12, %v1140_v8  ;;  %v1273_v8 = vstv %s1272_s8 }
 0x253   : > { %vm1274_vm2 = vcmp.eq.s32.totalorder %v1273_v8, 1 }
 0x254   : > { %2412 = vtanh.f32 %v1142_v18  ;;  %v3116_v21 = vsel %vm1149_vm1, %v1142_v18, %v3068_v15 }
 0x25e   : > { %v2413_v19 = vpop.eup %2412 }
 0x25f   : > { %v1144_v20 = vmul.f32 %v2413_v19, %v2411_v17 }
 0x261   : > { %v3119_v22 = vsel %vm1149_vm1, %v1144_v20, %v3071_v16 }
 0x262   : > { %v1159_v23 = vpack.c.bf16 %v3119_v22, %v3119_v22 }
 0x264   : > { %1193 = vmatmul.mubr.bf16.vlgmr.msra.gmra.mrb[24].mxu0 %v1159_v23  ;;  %1234 = vmatmul.mubr.bf16.vlgmr.msra.gmra.mrb[24].mxu1 %v1159_v23 }
 0x265   : > { %1286 = vmatpush1.bf16.msra.mxu0 %v2752_v38  ;;  %1327 = vmatpush1.bf16.msra.mxu1 %v2757_v39 }
 0x266   : > { %1287 = vmatprep.subr.bf16.mxu0 %v2764_v40  ;;  %1328 = vmatprep.subr.bf16.mxu1 %v2769_v41 }
 0x267   : > { %1317 = vmatprep.mubr.bf16.mxu0 %v3611_v46  ;;  %1358 = vmatprep.mubr.bf16.mxu1 %v3611_v46 }
 0x269   : > { %1288 = vmatpush1.bf16.msra.mxu0 %v2774_v42  ;;  %1329 = vmatpush1.bf16.msra.mxu1 %v2781_v43 }
 0x26a   : > { %1289 = vmatprep.subr.bf16.mxu0 %v2788_v44  ;;  %1330 = vmatprep.subr.bf16.mxu1 %v2793_v45 }
 0x26d   : > { %1290 = vmatpush1.bf16.msra.mxu0 %v2801_v47  ;;  %1331 = vmatpush1.bf16.msra.mxu1 %v2806_v48 }
 0x26e   : > { %1291 = vmatprep.subr.bf16.mxu0 %v2813_v49  ;;  %1332 = vmatprep.subr.bf16.mxu1 %v2820_v50 }
 0x271   : > { %1292 = vmatpush1.bf16.msra.mxu0 %v2825_v51  ;;  %1333 = vmatpush1.bf16.msra.mxu1 %v2830_v52 }
 0x272   : > { %1293 = vmatprep.subr.bf16.mxu0 %v2837_v53  ;;  %1334 = vmatprep.subr.bf16.mxu1 %v2844_v54 }
 0x275   : > { %1294 = vmatpush1.bf16.msra.mxu0 %v2854_v56  ;;  %1335 = vmatpush1.bf16.msra.mxu1 %v2859_v57 }
 0x276   : > { %1295 = vmatprep.subr.bf16.mxu0 %v2866_v58  ;;  %1336 = vmatprep.subr.bf16.mxu1 %v2871_v59 }
 0x279   : > { %1296 = vmatpush1.bf16.msra.mxu0 %v2878_v60  ;;  %1337 = vmatpush1.bf16.msra.mxu1 %v2883_v61 }
 0x27a   : > { %1297 = vmatprep.subr.bf16.mxu0 %v2890_v62  ;;  %1338 = vmatprep.subr.bf16.mxu1 %v2895_v63 }
 0x27d   : > { %1298 = vmatpush1.bf16.msra.mxu0 %v2905_v1  ;;  %1339 = vmatpush1.bf16.msra.mxu1 %v2910_v2 }
 0x27e   : > { %1299 = vmatprep.subr.bf16.mxu0 %v2917_v3  ;;  %1340 = vmatprep.subr.bf16.mxu1 %v2922_v5 }
 0x281   : > { %1300 = vmatpush1.bf16.msra.mxu0 %v2929_v6  ;;  %1341 = vmatpush1.bf16.msra.mxu1 %v2934_v7 }
 0x282   : > { %1410 = vmatprep.subr.bf16.mxu0 %v2741_v35  ;;  %1451 = vmatprep.subr.bf16.mxu1 %v2746_v36 }
 0x337   : > { %v1194_v15 = vpop.f32.mrb[24].mxu0  ;;  %v1235_v16 = vpop.f32.mrb[24].mxu1 }
 0x338   : > { %v1242_v24 = vadd.f32 %v1194_v15, %v3003_v37  ;;  %v1244_v11 = vadd.f32 %v1235_v16, %v3006_v55  ;;  %v1196_v25 = vpop.f32.mrb[25].mxu0  ;;  %v1237_v33 = vpop.f32.mrb[25].mxu1 }
 0x339   : > { %v1243_v10 = vadd.f32 %v1196_v25, %v3008_v9  ;;  %v1245_v13 = vadd.f32 %v1237_v33, %v3612_v30  ;;  %v1198_v0 = vpop.f32.mrb[26].mxu0  ;;  %v1239_v27 = vpop.f32.mrb[26].mxu1 }
 0x33a   : > { %v2154_v14 = vmul.f32 -1.442695, %v1242_v24  ;;  %v1199_v29 = vpop.f32.mrb[27].mxu0  ;;  %v1240_v31 = vpop.f32.mrb[27].mxu1  ;;  %v3615_v27 = vld [vmem:[#allocation9_spill] sm:$0xff] }
 0x33b   : > { %v2155_v32 = vmul.f32 -1.442695, %v1243_v10  ;;  %v2156_v34 = vmul.f32 -1.442695, %v1245_v13  ;;  %v3614_v10 = vld [vmem:[#allocation8_spill] sm:$0xff]  ;;  %v3616_v29 = vld [vmem:[#allocation10_spill] sm:$0xff] }
 0x33c   : > { %2414 = vpow2.f32 %v2154_v14 }
 0x33d   : > { %2416 = vpow2.f32 %v2155_v32 }
 0x33e   : > { %2418 = vpow2.f32 %v2156_v34 }
 0x33f   : > { %2420 = vtanh.f32 %v1244_v11 }
 0x346   : > { %v2415_v26 = vpop.eup %2414 }
 0x347   : > { %v2417_v37 = vpop.eup %2416  ;;  %v1249_v4 = vadd.f32 1.0, %v2415_v26 }
 0x348   : > { %v1255_v55 = vadd.f32 1.0, %v2417_v37  ;;  %v2419_v9 = vpop.eup %2418 }
 0x349   : > { %2422 = vrcp.f32 %v1249_v4  ;;  %v2421_v12 = vpop.eup %2420  ;;  %v1262_v19 = vadd.f32 1.0, %v2419_v9 }
 0x34a   : > { %2424 = vrcp.f32 %v1255_v55 }
 0x34b   : > { %2426 = vrcp.f32 %v1262_v19  ;;  %v1398_v19 = vstv %s1397_s10 }
 0x34c   : > { %vm1399_vm3 = vcmp.eq.s32.totalorder %v1398_v19, 1  ;;  %v3348_v19 = vld [vmem:[%s3583_s2 + $0x6c] ss:$16 sps:$4 sm:$0xff]  }
 0x353   : > { %v2423_v28 = vpop.eup %2422 }
 0x354   : > { %v2425_v18 = vpop.eup %2424  ;;  %v1266_v17 = vmul.f32 %v2423_v28, %v2421_v12 }
 0x355   : > { %v1265_v20 = vmul.f32 %v2425_v18, %v3116_v21  ;;  %v2427_v16 = vpop.eup %2426 }
 0x357   : > { %v1267_v23 = vadd.f32 %v1266_v17, %v1265_v20 }
 0x359   : > { %2428 = vtanh.f32 %v1267_v23  ;;  %v3164_v15 = vsel %vm1274_vm2, %v1267_v23, %v3116_v21  ;;  %v3613_v21 = vld [vmem:[#allocation7_spill] sm:$0xff] }
 0x363   : > { %v2429_v24 = vpop.eup %2428 }
 0x364   : > { %v1269_v11 = vmul.f32 %v2429_v24, %v2427_v16 }
 0x366   : > { %v3167_v25 = vsel %vm1274_vm2, %v1269_v11, %v3119_v22 }
 0x367   : > { %v1284_v33 = vpack.c.bf16 %v3167_v25, %v3167_v25 }
 0x369   : > { %1318 = vmatmul.mubr.bf16.vlgmr.msra.gmra.mrb[28].mxu0 %v1284_v33  ;;  %1359 = vmatmul.mubr.bf16.vlgmr.msra.gmra.mrb[28].mxu1 %v1284_v33 }
 0x36a   : > { %1411 = vmatpush1.bf16.msra.mxu0 %v2752_v38  ;;  %1452 = vmatpush1.bf16.msra.mxu1 %v2757_v39 }
 0x36b   : > { %1412 = vmatprep.subr.bf16.mxu0 %v2764_v40  ;;  %1453 = vmatprep.subr.bf16.mxu1 %v2769_v41 }
 0x36c   : > { %1442 = vmatprep.mubr.bf16.mxu0 %v3611_v46  ;;  %1483 = vmatprep.mubr.bf16.mxu1 %v3611_v46 }
 0x36e   : > { %1413 = vmatpush1.bf16.msra.mxu0 %v2774_v42  ;;  %1454 = vmatpush1.bf16.msra.mxu1 %v2781_v43 }
 0x36f   : > { %1414 = vmatprep.subr.bf16.mxu0 %v2788_v44  ;;  %1455 = vmatprep.subr.bf16.mxu1 %v2793_v45 }
 0x372   : > { %1415 = vmatpush1.bf16.msra.mxu0 %v2801_v47  ;;  %1456 = vmatpush1.bf16.msra.mxu1 %v2806_v48 }
 0x373   : > { %1416 = vmatprep.subr.bf16.mxu0 %v2813_v49  ;;  %1457 = vmatprep.subr.bf16.mxu1 %v2820_v50 }
 0x376   : > { %1417 = vmatpush1.bf16.msra.mxu0 %v2825_v51  ;;  %1458 = vmatpush1.bf16.msra.mxu1 %v2830_v52 }
 0x377   : > { %1418 = vmatprep.subr.bf16.mxu0 %v2837_v53  ;;  %1459 = vmatprep.subr.bf16.mxu1 %v2844_v54 }
 0x37a   : > { %1419 = vmatpush1.bf16.msra.mxu0 %v2854_v56  ;;  %1460 = vmatpush1.bf16.msra.mxu1 %v2859_v57 }
 0x37b   : > { %1420 = vmatprep.subr.bf16.mxu0 %v2866_v58  ;;  %1461 = vmatprep.subr.bf16.mxu1 %v2871_v59 }
 0x37e   : > { %1421 = vmatpush1.bf16.msra.mxu0 %v2878_v60  ;;  %1462 = vmatpush1.bf16.msra.mxu1 %v2883_v61 }
 0x37f   : > { %1422 = vmatprep.subr.bf16.mxu0 %v2890_v62  ;;  %1463 = vmatprep.subr.bf16.mxu1 %v2895_v63 }
 0x382   : > { %1423 = vmatpush1.bf16.msra.mxu0 %v2905_v1  ;;  %1464 = vmatpush1.bf16.msra.mxu1 %v2910_v2 }
 0x383   : > { %1424 = vmatprep.subr.bf16.mxu0 %v2917_v3  ;;  %1465 = vmatprep.subr.bf16.mxu1 %v2922_v5 }
 0x386   : > { %1425 = vmatpush1.bf16.msra.mxu0 %v2929_v6  ;;  %1466 = vmatpush1.bf16.msra.mxu1 %v2934_v7 }
 0x387   : > { %1535 = vmatprep.subr.bf16.mxu0 %v2741_v35  ;;  %1576 = vmatprep.subr.bf16.mxu1 %v2746_v36 }
 0x43c   : > { %v1319_v38 = vpop.f32.mrb[28].mxu0  ;;  %v1360_v39 = vpop.f32.mrb[28].mxu1 }
 0x43d   : > { %v1367_v22 = vadd.f32 %v1319_v38, %v3613_v21  ;;  %v1369_v30 = vadd.f32 %v1360_v39, %v3614_v10  ;;  %v1321_v13 = vpop.f32.mrb[29].mxu0  ;;  %v1362_v0 = vpop.f32.mrb[29].mxu1 }
 0x43e   : > { %v1368_v14 = vadd.f32 %v1321_v13, %v3615_v27  ;;  %v1370_v31 = vadd.f32 %v1362_v0, %v3616_v29  ;;  %v1323_v32 = vpop.f32.mrb[30].mxu0  ;;  %v1364_v34 = vpop.f32.mrb[30].mxu1 }
 0x43f   : > { %v2157_v26 = vmul.f32 -1.442695, %v1367_v22  ;;  %v1324_v37 = vpop.f32.mrb[31].mxu0  ;;  %v1365_v35 = vpop.f32.mrb[31].mxu1 }
 0x440   : > { %v2158_v4 = vmul.f32 -1.442695, %v1368_v14  ;;  %v2159_v36 = vmul.f32 -1.442695, %v1370_v31 }
 0x441   : > { %2430 = vpow2.f32 %v2157_v26 }
 0x442   : > { %2432 = vpow2.f32 %v2158_v4  ;;  %v3292_v4 = vld [vmem:[%s3583_s2 + $0x24] ss:$16 sps:$4 sm:$0xff]  }
 0x443   : > { %2434 = vpow2.f32 %v2159_v36  ;;  %v3298_v36 = vld [vmem:[%s3583_s2 + $0x2c] ss:$16 sps:$4 sm:$0xff]  }
 0x444   : > { %2436 = vtanh.f32 %v1369_v30  ;;  %v3222_v30 = vld [vmem:[%s3583_s2] ss:$16 sps:$4 sm:$0xff]  }
 0x44b   : > { %v2431_v55 = vpop.eup %2430 }
 0x44c   : > { %v2433_v9 = vpop.eup %2432  ;;  %v1374_v12 = vadd.f32 1.0, %v2431_v55  ;;  %v3306_v55 = vld [vmem:[%s3583_s2 + $0x20] ss:$16 sps:$4 sm:$0xff]  }
 0x44d   : > { %v1380_v28 = vadd.f32 1.0, %v2433_v9  ;;  %v2435_v8 = vpop.eup %2434  ;;  %v3312_v9 = vld [vmem:[%s3583_s2 + $0x28] ss:$16 sps:$4 sm:$0xff]  }
 0x44e   : > { %2438 = vrcp.f32 %v1374_v12  ;;  %v2437_v18 = vpop.eup %2436  ;;  %v1387_v16 = vadd.f32 1.0, %v2435_v8  ;;  %v3318_v12 = vld [vmem:[%s3583_s2 + $0x44] ss:$16 sps:$4 sm:$0xff]   ;;  %v3330_v8 = vld [vmem:[%s3583_s2 + $0x40] ss:$16 sps:$4 sm:$0xff]  }
 0x44f   : > { %2440 = vrcp.f32 %v1380_v28  ;;  %v3324_v28 = vld [vmem:[%s3583_s2 + $0x4c] ss:$16 sps:$4 sm:$0xff]  }
 0x450   : > { %2442 = vrcp.f32 %v1387_v16  ;;  %v3366_v16 = vld [vmem:[%s3583_s2 + $0x84] ss:$16 sps:$4 sm:$0xff]  }
 0x458   : > { %v2439_v17 = vpop.eup %2438 }
 0x459   : > { %v2441_v20 = vpop.eup %2440  ;;  %v1391_v23 = vmul.f32 %v2439_v17, %v2437_v18  ;;  %v3336_v18 = vld [vmem:[%s3583_s2 + $0x48] ss:$16 sps:$4 sm:$0xff]   ;;  %v3342_v17 = vld [vmem:[%s3583_s2 + $0x64] ss:$16 sps:$4 sm:$0xff]  }
 0x45a   : > { %v1390_v24 = vmul.f32 %v2441_v20, %v3164_v15  ;;  %v2443_v38 = vpop.eup %2442  ;;  %v3354_v20 = vld [vmem:[%s3583_s2 + $0x60] ss:$16 sps:$4 sm:$0xff]  }
 0x45c   : > { %v1392_v11 = vadd.f32 %v1391_v23, %v1390_v24  ;;  %v3360_v23 = vld [vmem:[%s3583_s2 + $0x68] ss:$16 sps:$4 sm:$0xff]   ;;  %v3372_v24 = vld [vmem:[%s3583_s2 + $0x8c] ss:$16 sps:$4 sm:$0xff]  }
 0x45e   : > { %2444 = vtanh.f32 %v1392_v11  ;;  %v3212_v33 = vsel %vm1399_vm3, %v1392_v11, %v3164_v15  ;;  %v3228_v15 = vld [vmem:[%s3583_s2 + $0x8] ss:$16 sps:$4 sm:$0xff]   ;;  %v3378_v11 = vld [vmem:[%s3583_s2 + $0x80] ss:$16 sps:$4 sm:$0xff]  }
 0x468   : > { %v2445_v39 = vpop.eup %2444 }
 0x469   : > { %v1394_v21 = vmul.f32 %v2445_v39, %v2443_v38  ;;  %v3390_v38 = vld [vmem:[%s3583_s2 + $0xa4] ss:$16 sps:$4 sm:$0xff]   ;;  %v3396_v39 = vld [vmem:[%s3583_s2 + $0xac] ss:$16 sps:$4 sm:$0xff]  }
 0x46b   : > { %v3215_v22 = vsel %vm1399_vm3, %v1394_v21, %v3167_v25  ;;  %v1523_v25 = vstv %s1522_s19  ;;  %v3402_v21 = vld [vmem:[%s3583_s2 + $0xa0] ss:$16 sps:$4 sm:$0xff]   ;;  %s1772_s19 = scalar_select %p1771_p12, 1, 0 }
 0x46c   : > { %v1409_v10 = vpack.c.bf16 %v3215_v22, %v3215_v22  ;;  %vm1524_vm4 = vcmp.eq.s32.totalorder %v1523_v25, 1 }
 0x46e   : > { %1443 = vmatmul.mubr.bf16.vlgmr.msra.gmra.mrb[32].mxu0 %v1409_v10  ;;  %1484 = vmatmul.mubr.bf16.vlgmr.msra.gmra.mrb[32].mxu1 %v1409_v10  ;;  %v3414_v10 = vld [vmem:[%s3583_s2 + $0xc4] ss:$16 sps:$4 sm:$0xff]  }
 0x46f   : > { %1536 = vmatpush1.bf16.msra.mxu0 %v3222_v30  ;;  %1577 = vmatpush1.bf16.msra.mxu1 %v3228_v15 }
 0x470   : > { %1537 = vmatprep.subr.bf16.mxu0 %v2764_v40  ;;  %1578 = vmatprep.subr.bf16.mxu1 %v2769_v41  ;;  %v3264_v40 = vld [vmem:[%s3583_s2 + $0x4] ss:$16 sps:$4 sm:$0xff]   ;;  %v3270_v41 = vld [vmem:[%s3583_s2 + $0xc] ss:$16 sps:$4 sm:$0xff]  }
 0x471   : > { %1567 = vmatprep.mubr.bf16.mxu0 %v3611_v46  ;;  %1608 = vmatprep.mubr.bf16.mxu1 %v3611_v46 }
 0x473   : > { %1538 = vmatpush1.bf16.msra.mxu0 %v2774_v42  ;;  %1579 = vmatpush1.bf16.msra.mxu1 %v2781_v43 }
 0x474   : > { %1539 = vmatprep.subr.bf16.mxu0 %v2788_v44  ;;  %1580 = vmatprep.subr.bf16.mxu1 %v2793_v45  ;;  %v3617_v44 = vld [vmem:[#allocation11_spill] sm:$0xff] }
 0x477   : > { %1540 = vmatpush1.bf16.msra.mxu0 %v2801_v47  ;;  %1581 = vmatpush1.bf16.msra.mxu1 %v2806_v48  ;;  %v3618_v47 = vld [vmem:[#allocation12_spill] sm:$0xff] }
 0x478   : > { %1541 = vmatprep.subr.bf16.mxu0 %v2813_v49  ;;  %1582 = vmatprep.subr.bf16.mxu1 %v2820_v50 }
 0x47b   : > { %1542 = vmatpush1.bf16.msra.mxu0 %v2825_v51  ;;  %1583 = vmatpush1.bf16.msra.mxu1 %v2830_v52  ;;  %v3619_v51 = vld [vmem:[#allocation13_spill] sm:$0xff] }
 0x47c   : > { %1543 = vmatprep.subr.bf16.mxu0 %v2837_v53  ;;  %1584 = vmatprep.subr.bf16.mxu1 %v2844_v54  ;;  %v3620_v53 = vld [vmem:[#allocation14_spill] sm:$0xff] }
 0x47f   : > { %1544 = vmatpush1.bf16.msra.mxu0 %v2854_v56  ;;  %1585 = vmatpush1.bf16.msra.mxu1 %v2859_v57 }
 0x480   : > { %1545 = vmatprep.subr.bf16.mxu0 %v2866_v58  ;;  %1586 = vmatprep.subr.bf16.mxu1 %v2871_v59 }
 0x483   : > { %1546 = vmatpush1.bf16.msra.mxu0 %v2878_v60  ;;  %1587 = vmatpush1.bf16.msra.mxu1 %v2883_v61 }
 0x484   : > { %1547 = vmatprep.subr.bf16.mxu0 %v2890_v62  ;;  %1588 = vmatprep.subr.bf16.mxu1 %v2895_v63 }
 0x487   : > { %1548 = vmatpush1.bf16.msra.mxu0 %v2905_v1  ;;  %1589 = vmatpush1.bf16.msra.mxu1 %v2910_v2 }
 0x488   : > { %1549 = vmatprep.subr.bf16.mxu0 %v2917_v3  ;;  %1590 = vmatprep.subr.bf16.mxu1 %v2922_v5 }
 0x48b   : > { %1550 = vmatpush1.bf16.msra.mxu0 %v2929_v6  ;;  %1591 = vmatpush1.bf16.msra.mxu1 %v2934_v7 }
 0x48c   : > { %1660 = vmatprep.subr.bf16.mxu0 %v3264_v40  ;;  %1701 = vmatprep.subr.bf16.mxu1 %v3270_v41 }
 0x541   : > { %v1444_v42 = vpop.f32.mrb[32].mxu0  ;;  %v1485_v43 = vpop.f32.mrb[32].mxu1 }
 0x542   : > { %v1492_v45 = vadd.f32 %v1444_v42, %v3617_v44  ;;  %v1494_v48 = vadd.f32 %v1485_v43, %v3618_v47  ;;  %v1446_v49 = vpop.f32.mrb[33].mxu0  ;;  %v1487_v50 = vpop.f32.mrb[33].mxu1  ;;  %v3420_v42 = vld [vmem:[%s3583_s2 + $0xcc] ss:$16 sps:$4 sm:$0xff]   ;;  %v3426_v43 = vld [vmem:[%s3583_s2 + $0xc0] ss:$16 sps:$4 sm:$0xff]  }
 0x543   : > { %v1493_v52 = vadd.f32 %v1446_v49, %v3619_v51  ;;  %v1495_v54 = vadd.f32 %v1487_v50, %v3620_v53  ;;  %v1448_v56 = vpop.f32.mrb[34].mxu0  ;;  %v1489_v57 = vpop.f32.mrb[34].mxu1  ;;  %v3432_v44 = vld [vmem:[%s3583_s2 + $0xc8] ss:$16 sps:$4 sm:$0xff]   ;;  %v3444_v47 = vld [vmem:[%s3583_s2 + $0xec] ss:$16 sps:$4 sm:$0xff]  }
 0x544   : > { %v2160_v58 = vmul.f32 -1.442695, %v1492_v45  ;;  %v1449_v59 = vpop.f32.mrb[35].mxu0  ;;  %v1490_v60 = vpop.f32.mrb[35].mxu1  ;;  %v3438_v45 = vld [vmem:[%s3583_s2 + $0xe4] ss:$16 sps:$4 sm:$0xff]  }
 0x545   : > { %v2161_v61 = vmul.f32 -1.442695, %v1493_v52  ;;  %v2162_v62 = vmul.f32 -1.442695, %v1495_v54  ;;  %v3456_v49 = vld [vmem:[%s3583_s2 + $0xe8] ss:$16 sps:$4 sm:$0xff]  }
 0x546   : > { %2446 = vpow2.f32 %v2160_v58  ;;  %v3621_v52 = vld [vmem:[#allocation15_spill] sm:$0xff]  ;;  %v3622_v54 = vld [vmem:[#allocation16_spill] sm:$0xff]  ;;  %v3623_v59 = vld [vmem:[#allocation17_spill] sm:$0xff] }
 0x547   : > { %2448 = vpow2.f32 %v2161_v61  ;;  %v3624_v61 = vld [vmem:[#allocation18_spill] sm:$0xff] }
 0x548   : > { %2450 = vpow2.f32 %v2162_v62 }
 0x549   : > { %2452 = vtanh.f32 %v1494_v48  ;;  %v3450_v48 = vld [vmem:[%s3583_s2 + $0xe0] ss:$16 sps:$4 sm:$0xff]  }
 0x550   : > { %v2447_v63 = vpop.eup %2446 }
 0x551   : > { %v2449_v1 = vpop.eup %2448  ;;  %v1499_v2 = vadd.f32 1.0, %v2447_v63 }
 0x552   : > { %v1505_v3 = vadd.f32 1.0, %v2449_v1  ;;  %v2451_v5 = vpop.eup %2450 }
 0x553   : > { %2454 = vrcp.f32 %v1499_v2  ;;  %v2453_v6 = vpop.eup %2452  ;;  %v1512_v27 = vadd.f32 1.0, %v2451_v5 }
 0x554   : > { %2456 = vrcp.f32 %v1505_v3 }
 0x555   : > { %2458 = vrcp.f32 %v1512_v27 }
 0x55d   : > { %v2455_v7 = vpop.eup %2454 }
 0x55e   : > { %v2457_v13 = vpop.eup %2456  ;;  %v1516_v0 = vmul.f32 %v2455_v7, %v2453_v6 }
 0x55f   : > { %v1515_v14 = vmul.f32 %v2457_v13, %v3212_v33  ;;  %v2459_v32 = vpop.eup %2458 }
 0x561   : > { %v1517_v29 = vadd.f32 %v1516_v0, %v1515_v14 }
 0x563   : > { %2460 = vtanh.f32 %v1517_v29  ;;  %v3280_v31 = vsel %vm1524_vm4, %v1517_v29, %v3212_v33  ;;  %v3384_v33 = vld [vmem:[%s3583_s2 + $0x88] ss:$16 sps:$4 sm:$0xff]   ;;  %v1648_v29 = vstv %s1647_s17 }
 0x564   : > { %vm1649_vm5 = vcmp.eq.s32.totalorder %v1648_v29, 1 }
 0x56d   : > { %v2461_v34 = vpop.eup %2460 }
 0x56e   : > { %v1519_v26 = vmul.f32 %v2461_v34, %v2459_v32 }
 0x570   : > { %v3283_v37 = vsel %vm1524_vm4, %v1519_v26, %v3215_v22  ;;  %v3408_v22 = vld [vmem:[%s3583_s2 + $0xa8] ss:$16 sps:$4 sm:$0xff]  }
 0x571   : > { %v1534_v35 = vpack.c.bf16 %v3283_v37, %v3283_v37 }
 0x573   : > { %1568 = vmatmul.mubr.bf16.vlgmr.msra.gmra.mrb[36].mxu0 %v1534_v35  ;;  %1609 = vmatmul.mubr.bf16.vlgmr.msra.gmra.mrb[36].mxu1 %v1534_v35 }
 0x574   : > { %1661 = vmatpush1.bf16.msra.mxu0 %v3222_v30  ;;  %1702 = vmatpush1.bf16.msra.mxu1 %v3228_v15 }
 0x575   : > { %1662 = vmatprep.subr.bf16.mxu0 %v3292_v4  ;;  %1703 = vmatprep.subr.bf16.mxu1 %v3298_v36 }
 0x576   : > { %1692 = vmatprep.mubr.bf16.mxu0 %v3611_v46  ;;  %1733 = vmatprep.mubr.bf16.mxu1 %v3611_v46 }
 0x578   : > { %1663 = vmatpush1.bf16.msra.mxu0 %v3306_v55  ;;  %1704 = vmatpush1.bf16.msra.mxu1 %v3312_v9 }
 0x579   : > { %1664 = vmatprep.subr.bf16.mxu0 %v3318_v12  ;;  %1705 = vmatprep.subr.bf16.mxu1 %v3324_v28 }
 0x57c   : > { %1665 = vmatpush1.bf16.msra.mxu0 %v3330_v8  ;;  %1706 = vmatpush1.bf16.msra.mxu1 %v3336_v18 }
 0x57d   : > { %1666 = vmatprep.subr.bf16.mxu0 %v3342_v17  ;;  %1707 = vmatprep.subr.bf16.mxu1 %v3348_v19 }
 0x580   : > { %1667 = vmatpush1.bf16.msra.mxu0 %v3354_v20  ;;  %1708 = vmatpush1.bf16.msra.mxu1 %v3360_v23 }
 0x581   : > { %1668 = vmatprep.subr.bf16.mxu0 %v3366_v16  ;;  %1709 = vmatprep.subr.bf16.mxu1 %v3372_v24 }
 0x584   : > { %1669 = vmatpush1.bf16.msra.mxu0 %v3378_v11  ;;  %1710 = vmatpush1.bf16.msra.mxu1 %v3384_v33 }
 0x585   : > { %1670 = vmatprep.subr.bf16.mxu0 %v3390_v38  ;;  %1711 = vmatprep.subr.bf16.mxu1 %v3396_v39 }
 0x588   : > { %1671 = vmatpush1.bf16.msra.mxu0 %v3402_v21  ;;  %1712 = vmatpush1.bf16.msra.mxu1 %v3408_v22 }
 0x589   : > { %1672 = vmatprep.subr.bf16.mxu0 %v3414_v10  ;;  %1713 = vmatprep.subr.bf16.mxu1 %v3420_v42 }
 0x58c   : > { %1673 = vmatpush1.bf16.msra.mxu0 %v3426_v43  ;;  %1714 = vmatpush1.bf16.msra.mxu1 %v3432_v44 }
 0x58d   : > { %1674 = vmatprep.subr.bf16.mxu0 %v3438_v45  ;;  %1715 = vmatprep.subr.bf16.mxu1 %v3444_v47 }
 0x590   : > { %1675 = vmatpush1.bf16.msra.mxu0 %v3450_v48  ;;  %1716 = vmatpush1.bf16.msra.mxu1 %v3456_v49 }
 0x591   : > { %1785 = vmatprep.subr.bf16.mxu0 %v3264_v40  ;;  %1826 = vmatprep.subr.bf16.mxu1 %v3270_v41 }
 0x646   : > { %v1569_v50 = vpop.f32.mrb[36].mxu0  ;;  %v1610_v51 = vpop.f32.mrb[36].mxu1 }
 0x647   : > { %v1617_v53 = vadd.f32 %v1569_v50, %v3621_v52  ;;  %v1619_v56 = vadd.f32 %v1610_v51, %v3622_v54  ;;  %v1571_v57 = vpop.f32.mrb[37].mxu0  ;;  %v1612_v58 = vpop.f32.mrb[37].mxu1 }
 0x648   : > { %v1618_v60 = vadd.f32 %v1571_v57, %v3623_v59  ;;  %v1620_v62 = vadd.f32 %v1612_v58, %v3624_v61  ;;  %v1573_v63 = vpop.f32.mrb[38].mxu0  ;;  %v1614_v1 = vpop.f32.mrb[38].mxu1 }
 0x649   : > { %v2163_v2 = vmul.f32 -1.442695, %v1617_v53  ;;  %v1574_v3 = vpop.f32.mrb[39].mxu0  ;;  %v1615_v40 = vpop.f32.mrb[39].mxu1 }
 0x64a   : > { %v2164_v5 = vmul.f32 -1.442695, %v1618_v60  ;;  %v2165_v41 = vmul.f32 -1.442695, %v1620_v62  ;;  %v3630_v40 = vld [vmem:[#allocation24_spill] sm:$0xff] }
 0x64b   : > { %2462 = vpow2.f32 %v2163_v2  ;;  %v3629_v2 = vld [vmem:[#allocation23_spill] sm:$0xff] }
 0x64c   : > { %2464 = vpow2.f32 %v2164_v5 }
 0x64d   : > { %2466 = vpow2.f32 %v2165_v41 }
 0x64e   : > { %2468 = vtanh.f32 %v1619_v56 }
 0x655   : > { %v2463_v6 = vpop.eup %2462 }
 0x656   : > { %v2465_v7 = vpop.eup %2464  ;;  %v1624_v25 = vadd.f32 1.0, %v2463_v6 }
 0x657   : > { %v1630_v13 = vadd.f32 1.0, %v2465_v7  ;;  %v2467_v0 = vpop.eup %2466  ;;  %v3631_v7 = vld [vmem:[#allocation25_spill] sm:$0xff] }
 0x658   : > { %2470 = vrcp.f32 %v1624_v25  ;;  %v2469_v27 = vpop.eup %2468  ;;  %v1637_v26 = vadd.f32 1.0, %v2467_v0 }
 0x659   : > { %2472 = vrcp.f32 %v1630_v13  ;;  %v3632_v13 = vld [vmem:[#allocation26_spill] sm:$0xff] }
 0x65a   : > { %2474 = vrcp.f32 %v1637_v26 }
 0x662   : > { %v2471_v14 = vpop.eup %2470 }
 0x663   : > { %v2473_v32 = vpop.eup %2472  ;;  %v1641_v34 = vmul.f32 %v2471_v14, %v2469_v27 }
 0x664   : > { %v1640_v35 = vmul.f32 %v2473_v32, %v3280_v31  ;;  %v2475_v52 = vpop.eup %2474 }
 0x666   : > { %v1642_v50 = vadd.f32 %v1641_v34, %v1640_v35 }
 0x668   : > { %2476 = vtanh.f32 %v1642_v50  ;;  %v3468_v51 = vsel %vm1649_vm5, %v1642_v50, %v3280_v31 }
 0x672   : > { %v2477_v53 = vpop.eup %2476 }
 0x673   : > { %v1644_v54 = vmul.f32 %v2477_v53, %v2475_v52 }
 0x675   : > { %v3471_v56 = vsel %vm1649_vm5, %v1644_v54, %v3283_v37  ;;  %v3626_v37 = vld [vmem:[#allocation20_spill] sm:$0xff] }
 0x676   : > { %v1659_v57 = vpack.c.bf16 %v3471_v56, %v3471_v56 }
 0x678   : > { %1693 = vmatmul.mubr.bf16.vlgmr.msra.gmra.mrb[40].mxu0 %v1659_v57  ;;  %1734 = vmatmul.mubr.bf16.vlgmr.msra.gmra.mrb[40].mxu1 %v1659_v57 }
 0x679   : > { %1786 = vmatpush1.bf16.msra.mxu0 %v3222_v30  ;;  %1827 = vmatpush1.bf16.msra.mxu1 %v3228_v15  ;;  %v3625_v15 = vld [vmem:[#allocation19_spill] sm:$0xff] }
 0x67a   : > { %1787 = vmatprep.subr.bf16.mxu0 %v3292_v4  ;;  %1828 = vmatprep.subr.bf16.mxu1 %v3298_v36 }
 0x67b   : > { %1817 = vmatprep.mubr.bf16.mxu0 %v3611_v46  ;;  %1858 = vmatprep.mubr.bf16.mxu1 %v3611_v46 }
 0x67d   : > { %1788 = vmatpush1.bf16.msra.mxu0 %v3306_v55  ;;  %1829 = vmatpush1.bf16.msra.mxu1 %v3312_v9  ;;  %v3627_v9 = vld [vmem:[#allocation21_spill] sm:$0xff] }
 0x67e   : > { %1789 = vmatprep.subr.bf16.mxu0 %v3318_v12  ;;  %1830 = vmatprep.subr.bf16.mxu1 %v3324_v28  ;;  %v3628_v28 = vld [vmem:[#allocation22_spill] sm:$0xff] }
 0x681   : > { %1790 = vmatpush1.bf16.msra.mxu0 %v3330_v8  ;;  %1831 = vmatpush1.bf16.msra.mxu1 %v3336_v18 }
 0x682   : > { %1791 = vmatprep.subr.bf16.mxu0 %v3342_v17  ;;  %1832 = vmatprep.subr.bf16.mxu1 %v3348_v19 }
 0x685   : > { %1792 = vmatpush1.bf16.msra.mxu0 %v3354_v20  ;;  %1833 = vmatpush1.bf16.msra.mxu1 %v3360_v23 }
 0x686   : > { %1793 = vmatprep.subr.bf16.mxu0 %v3366_v16  ;;  %1834 = vmatprep.subr.bf16.mxu1 %v3372_v24 }
 0x689   : > { %1794 = vmatpush1.bf16.msra.mxu0 %v3378_v11  ;;  %1835 = vmatpush1.bf16.msra.mxu1 %v3384_v33 }
 0x68a   : > { %1795 = vmatprep.subr.bf16.mxu0 %v3390_v38  ;;  %1836 = vmatprep.subr.bf16.mxu1 %v3396_v39 }
 0x68d   : > { %1796 = vmatpush1.bf16.msra.mxu0 %v3402_v21  ;;  %1837 = vmatpush1.bf16.msra.mxu1 %v3408_v22 }
 0x68e   : > { %1797 = vmatprep.subr.bf16.mxu0 %v3414_v10  ;;  %1838 = vmatprep.subr.bf16.mxu1 %v3420_v42  ;;  %v1773_v42 = vstv %s1772_s19 }
 0x68f   : > { %vm1774_vm6 = vcmp.eq.s32.totalorder %v1773_v42, 1  ;;  %v1917_v42 = vld [vmem:[%s3585_s4 + $0x48] sm:$0xff] (!%p2172_p0) }
 0x691   : > { %1798 = vmatpush1.bf16.msra.mxu0 %v3426_v43  ;;  %1839 = vmatpush1.bf16.msra.mxu1 %v3432_v44 }
 0x692   : > { %1799 = vmatprep.subr.bf16.mxu0 %v3438_v45  ;;  %1840 = vmatprep.subr.bf16.mxu1 %v3444_v47 }
 0x695   : > { %1800 = vmatpush1.bf16.msra.mxu0 %v3450_v48  ;;  %1841 = vmatpush1.bf16.msra.mxu1 %v3456_v49 }
 0x74b   : > { %v1694_v46 = vpop.f32.mrb[40].mxu0  ;;  %v1735_v30 = vpop.f32.mrb[40].mxu1 }
 0x74c   : > { %v1742_v31 = vadd.f32 %v1694_v46, %v3625_v15  ;;  %v1744_v4 = vadd.f32 %v1735_v30, %v3626_v37  ;;  %v1696_v36 = vpop.f32.mrb[41].mxu0  ;;  %v1737_v55 = vpop.f32.mrb[41].mxu1  ;;  %v1898_v46 = vstv %s1897_s21 }
 0x74d   : > { %v1743_v12 = vadd.f32 %v1696_v36, %v3627_v9  ;;  %v1745_v8 = vadd.f32 %v1737_v55, %v3628_v28  ;;  %v1698_v18 = vpop.f32.mrb[42].mxu0  ;;  %v1739_v17 = vpop.f32.mrb[42].mxu1  ;;  %vm1899_vm7 = vcmp.eq.s32.totalorder %v1898_v46, 1 }
 0x74e   : > { %v2166_v19 = vmul.f32 -1.442695, %v1742_v31  ;;  %v1699_v20 = vpop.f32.mrb[43].mxu0  ;;  %v1740_v23 = vpop.f32.mrb[43].mxu1  ;;  %v1909_v18 = vld [vmem:[%s3585_s4 + $0x8] sm:$0xff] (!%p2172_p0)  ;;  %v1910_v17 = vld [vmem:[%s3585_s4 + $0x10] sm:$0xff] (!%p2172_p0) }
 0x74f   : > { %v2167_v16 = vmul.f32 -1.442695, %v1743_v12  ;;  %v2168_v24 = vmul.f32 -1.442695, %v1745_v8  ;;  %v1908_v8 = vld [vmem:[%s3585_s4] sm:$0xff] (!%p2172_p0)  ;;  %v1911_v23 = vld [vmem:[%s3585_s4 + $0x18] sm:$0xff] (!%p2172_p0) }
 0x750   : > { %2478 = vpow2.f32 %v2166_v19  ;;  %v2568_v19 = vmov (!%p2172_p0), 0.0|0.0   ;;  %v2230_v20 = vpack.c.bf16 (!%p2172_p0), %v1909_v18, %v1908_v8 }
 0x751   : > { %2480 = vpow2.f32 %v2167_v16  ;;  %2229 = vmatprep.subr.bf16.mxu0 (!%p2172_p0), %v2568_v19  ;;  %v2570_v16 = vmov (!%p2172_p0), 0.0  }
 0x752   : > { %2482 = vpow2.f32 %v2168_v24  ;;  %v2233_v24 = vpack.c.bf16 (!%p2172_p0), %v1911_v23, %v1910_v17 }
 0x753   : > { %2484 = vtanh.f32 %v1744_v4 }
 0x75a   : > { %v2479_v11 = vpop.eup %2478 }
 0x75b   : > { %v2481_v33 = vpop.eup %2480  ;;  %v1749_v38 = vadd.f32 1.0, %v2479_v11  ;;  %v1912_v11 = vld [vmem:[%s3585_s4 + $0x20] sm:$0xff] (!%p2172_p0) }
 0x75c   : > { %v1755_v39 = vadd.f32 1.0, %v2481_v33  ;;  %v2483_v21 = vpop.eup %2482  ;;  %v1913_v33 = vld [vmem:[%s3585_s4 + $0x28] sm:$0xff] (!%p2172_p0) }
 0x75d   : > { %2486 = vrcp.f32 %v1749_v38  ;;  %v2485_v22 = vpop.eup %2484  ;;  %v1762_v45 = vadd.f32 1.0, %v2483_v21  ;;  %v2236_v38 = vpack.c.bf16 (!%p2172_p0), %v1913_v33, %v1912_v11  ;;  %v1915_v21 = vld [vmem:[%s3585_s4 + $0x38] sm:$0xff] (!%p2172_p0) }
 0x75e   : > { %2488 = vrcp.f32 %v1755_v39  ;;  %v1914_v39 = vld [vmem:[%s3585_s4 + $0x30] sm:$0xff] (!%p2172_p0) }
 0x75f   : > { %2490 = vrcp.f32 %v1762_v45  ;;  %v1919_v45 = vld [vmem:[%s3585_s4 + $0x58] sm:$0xff] (!%p2172_p0) }
 0x767   : > { %v2487_v10 = vpop.eup %2486 }
 0x768   : > { %v2489_v43 = vpop.eup %2488  ;;  %v1766_v44 = vmul.f32 %v2487_v10, %v2485_v22  ;;  %v2239_v22 = vpack.c.bf16 (!%p2172_p0), %v1915_v21, %v1914_v39  ;;  %v1916_v10 = vld [vmem:[%s3585_s4 + $0x40] sm:$0xff] (!%p2172_p0) }
 0x769   : > { %v1765_v47 = vmul.f32 %v2489_v43, %v3468_v51  ;;  %v2491_v58 = vpop.eup %2490  ;;  %v2242_v43 = vpack.c.bf16 (!%p2172_p0), %v1917_v42, %v1916_v10 }
 0x76b   : > { %v1767_v48 = vadd.f32 %v1766_v44, %v1765_v47  ;;  %v1918_v44 = vld [vmem:[%s3585_s4 + $0x50] sm:$0xff] (!%p2172_p0) }
 0x76c   : > { %v2245_v47 = vpack.c.bf16 (!%p2172_p0), %v1919_v45, %v1918_v44 }
 0x76d   : > { %2492 = vtanh.f32 %v1767_v48  ;;  %v1776_v49 = vsel %vm1774_vm6, %v1767_v48, %v3468_v51  ;;  %v1920_v48 = vld [vmem:[%s3585_s4 + $0x60] sm:$0xff] (!%p2172_p0) }
 0x777   : > { %v2493_v59 = vpop.eup %2492 }
 0x778   : > { %v1769_v60 = vmul.f32 %v2493_v59, %v2491_v58  ;;  %v1922_v59 = vld [vmem:[%s3585_s4 + $0x70] sm:$0xff] (!%p2172_p0) }
 0x77a   : > { %v1775_v61 = vsel %vm1774_vm6, %v1769_v60, %v3471_v56  ;;  %v1923_v60 = vld [vmem:[%s3585_s4 + $0x78] sm:$0xff] (!%p2172_p0) }
 0x77b   : > { %v1784_v62 = vpack.c.bf16 %v1775_v61, %v1775_v61 }
 0x77d   : > { %1818 = vmatmul.mubr.bf16.vlgmr.msra.gmra.mrb[44].mxu0 %v1784_v62  ;;  %1859 = vmatmul.mubr.bf16.vlgmr.msra.gmra.mrb[44].mxu1 %v1784_v62  ;;  %v2173_v62 = vld [vmem:[#allocation5] ss:$0 sm:$0xff] (!%p2172_p0) }
 0x77e   : > { %2226 = vmatprep.mubr.msk.f32.mxu0 (!%p2172_p0), %vm2569_vm8, %v2570_v16  ;;  %2231 = vmatpush3.bf16.msra.mxu0 (!%p2172_p0), %v2230_v20 }
 0x77f   : > { %2232 = vmatprep.subr.bf16.mxu0 (!%p2172_p0), %v2568_v19 }
 0x782   : > { %2234 = vmatpush3.bf16.msra.mxu0 (!%p2172_p0), %v2233_v24 }
 0x783   : > { %2235 = vmatprep.subr.bf16.mxu0 (!%p2172_p0), %v2568_v19 }
 0x786   : > { %2237 = vmatpush3.bf16.msra.mxu0 (!%p2172_p0), %v2236_v38 }
 0x787   : > { %2238 = vmatprep.subr.bf16.mxu0 (!%p2172_p0), %v2568_v19 }
 0x78a   : > { %2240 = vmatpush3.bf16.msra.mxu0 (!%p2172_p0), %v2239_v22 }
 0x78b   : > { %2241 = vmatprep.subr.bf16.mxu0 (!%p2172_p0), %v2568_v19 }
 0x78e   : > { %2243 = vmatpush3.bf16.msra.mxu0 (!%p2172_p0), %v2242_v43 }
 0x78f   : > { %2244 = vmatprep.subr.bf16.mxu0 (!%p2172_p0), %v2568_v19 }
 0x792   : > { %2246 = vmatpush3.bf16.msra.mxu0 (!%p2172_p0), %v2245_v47 }
 0x793   : > { %2247 = vmatprep.subr.bf16.mxu0 (!%p2172_p0), %v2568_v19 }
 0x850   : > { %v1819_v63 = vpop.f32.mrb[44].mxu0  ;;  %v1860_v1 = vpop.f32.mrb[44].mxu1 }
 0x851   : > { %v1867_v3 = vadd.f32 %v1819_v63, %v3629_v2  ;;  %v1869_v5 = vadd.f32 %v1860_v1, %v3630_v40  ;;  %v1821_v41 = vpop.f32.mrb[45].mxu0  ;;  %v1862_v6 = vpop.f32.mrb[45].mxu1 }
 0x852   : > { %v1868_v25 = vadd.f32 %v1821_v41, %v3631_v7  ;;  %v1870_v0 = vadd.f32 %v1862_v6, %v3632_v13  ;;  %v1823_v27 = vpop.f32.mrb[46].mxu0  ;;  %v1864_v14 = vpop.f32.mrb[46].mxu1 }
 0x853   : > { %v2169_v29 = vmul.f32 -1.442695, %v1867_v3  ;;  %v1824_v32 = vpop.f32.mrb[47].mxu0  ;;  %v1865_v34 = vpop.f32.mrb[47].mxu1 }
 0x854   : > { %v2170_v26 = vmul.f32 -1.442695, %v1868_v25  ;;  %v2171_v35 = vmul.f32 -1.442695, %v1870_v0 }
 0x855   : > { %2494 = vpow2.f32 %v2169_v29 }
 0x856   : > { %2496 = vpow2.f32 %v2170_v26 }
 0x857   : > { %2498 = vpow2.f32 %v2171_v35 }
 0x858   : > { %2500 = vtanh.f32 %v1869_v5 }
 0x85f   : > { %v2495_v50 = vpop.eup %2494 }
 0x860   : > { %v2497_v51 = vpop.eup %2496  ;;  %v1874_v52 = vadd.f32 1.0, %v2495_v50 }
 0x861   : > { %v1880_v53 = vadd.f32 1.0, %v2497_v51  ;;  %v2499_v54 = vpop.eup %2498 }
 0x862   : > { %2502 = vrcp.f32 %v1874_v52  ;;  %v2501_v56 = vpop.eup %2500  ;;  %v1887_v31 = vadd.f32 1.0, %v2499_v54 }
 0x863   : > { %2504 = vrcp.f32 %v1880_v53 }
 0x864   : > { %2506 = vrcp.f32 %v1887_v31 }
 0x86c   : > { %v2503_v57 = vpop.eup %2502 }
 0x86d   : > { %v2505_v30 = vpop.eup %2504  ;;  %v1891_v15 = vmul.f32 %v2503_v57, %v2501_v56 }
 0x86e   : > { %v1890_v37 = vmul.f32 %v2505_v30, %v1776_v49  ;;  %v2507_v55 = vpop.eup %2506 }
 0x870   : > { %v1892_v4 = vadd.f32 %v1891_v15, %v1890_v37 }
 0x872   : > { %2508 = vtanh.f32 %v1892_v4  ;;  %v1901_v36 = vsel %vm1899_vm7, %v1892_v4, %v1776_v49  ;;  %v1921_v49 = vld [vmem:[%s3585_s4 + $0x68] sm:$0xff] (!%p2172_p0) }
 0x873   : > { %1903 = vst [vmem:[#allocation3] sm:$0xff] %v1901_v36  ;;  %v2248_v58 = vpack.c.bf16 (!%p2172_p0), %v1921_v49, %v1920_v48 }
 0x875   : > { %2249 = vmatpush3.bf16.msra.mxu0 (!%p2172_p0), %v2248_v58 }
 0x876   : > { %2250 = vmatprep.subr.bf16.mxu0 (!%p2172_p0), %v2568_v19 }
 0x87a   : > { %1907 = sbr.rel (%p2172_p0) target bundleno = 2395 (0x95b), region = 52 }
 0x87c   : > { %v2509_v9 = vpop.eup %2508 }
 0x87d   : > { %v1894_v12 = vmul.f32 %v2509_v9, %v2507_v55 }
 0x87f   : > { %v1900_v28 = vsel %vm1899_vm7, %v1894_v12, %v1775_v61  ;;  %v2251_v61 = vpack.c.bf16 (!%p2172_p0), %v1923_v60, %v1922_v59 }
 0x880   : > { %1902 = vst [vmem:[#allocation2] sm:$0xff] %v1900_v28 }
 0x881   : > { %2252 = vmatpush3.bf16.msra.mxu0 %v2251_v61 }
 0x884   : > { %2227 = vmatmul.mubr.f32.vlgmr.msra.gmra.mrb[0].mxu0 %v1900_v28 }
 0x957   : > { %v1997_v63 = vpop.f32.mrb[0].mxu0 }
 0x958   : > { %v1998_v1 = vadd.f32 %v2173_v62, %v1997_v63  ;;  %v2228_v2 = vpop.f32.mrb[1].mxu0 }
 0x95a   : > { %2002 = vst.msk [vmem:[%s3587_s6] sm:$0xff] %vm2001_vm9, %v1998_v1 }
 0x95b PF: > { %s18_s25 = sadd.s32 1, %s2564_s25   ;;  %s3633_s23 = smov %s2560_s24 }
 0x95c   : > { %p15_p1 = scmp.ge.s32.totalorder %s18_s25, 4   ;;  %s3634_s24 = smov %s3636_s5 }
 0x95e   :  { %17 = sbr.rel (!%p15_p1) target bundleno = 3 (0x3), region = 90 }

</bundles_post_ra>
